<compile_context>
chip_gen: v5e
topology: v5e:2x2
jax: 0.10.0
libtpu: 0.0.40
codegen_flags: <defaults>
</compile_context>

<pallas_src>
import jax
import jax.numpy as jnp
from jax.experimental import pallas as pl
from jax.experimental.pallas import tpu as pltpu


def _round_up(x, m):
    return ((x + m - 1) // m) * m


def _cdiv(a, b):
    return (a + b - 1) // b


def _prelu(x, a):
    # torch.nn.PReLU with a single shared slope parameter `a`.
    return jnp.where(x > 0, x, a * x)


def rotmat6d_kernel(
    prelu_ref,                      # SMEM (4,)  f32: PReLU slopes
    pts_ref,                        # VMEM (B_TILE, N_CHUNK, 6) f32
    w1_ref, b1_ref,                 # (6, 64)   [mm dtype], (1, 64)   f32
    w2_ref, b2_ref,                 # (64, 128) [mm dtype], (1, 128)  f32
    w3_ref, b3_ref,                 # (128, 1024) [mm dtype], (1, 1024) f32
    hw1_ref, hb1_ref,               # (1024, 256) f32, (1, 256) f32
    hw2_ref, hb2_ref,               # (256, 128)  f32, (1, 128) f32
    hw3_ref, hb3_ref,               # (128, 128) zero-padded f32, (1, 128) f32
    out_ref,                        # VMEM (1, B_TILE, 128)  (only cols 0..5 used)
    feat_ref,                       # VMEM scratch (B_TILE, 1024) f32: running max
):
    k = pl.program_id(1)
    bt, nc, _ = pts_ref.shape
    mm_dt = w1_ref.dtype            # f32 or bf16 for the point-MLP matmuls

    a0 = prelu_ref[0]
    a1 = prelu_ref[1]
    a2 = prelu_ref[2]
    a3 = prelu_ref[3]

    # ---- PointFeatCNN layers 1 & 2 on the whole batch tile at once ----
    # (bt, nc, 6) -> (bt*nc, 6): leading-dim merge (nc % 8 == 0) => free reshape.
    pts2 = pts_ref[...].reshape(bt * nc, 6)
    h = jnp.dot(pts2.astype(mm_dt), w1_ref[...],
                preferred_element_type=jnp.float32) + b1_ref[...]
    h = _prelu(h, a0)
    h = jnp.dot(h.astype(mm_dt), w2_ref[...],
                preferred_element_type=jnp.float32) + b2_ref[...]
    h = _prelu(h, a1)                                   # (bt*nc, 128) f32

    # ---- streaming AdaptiveMaxPool1d over the point-chunk grid axis ----
    @pl.when(k == 0)
    def _():
        feat_ref[...] = jnp.full_like(feat_ref, -jnp.inf)

    # Layer 3 fused with the per-batch max-pool: the (*, 1024) temporary is
    # capped at (nc, 1024) regardless of the batch tile, and no in-kernel
    # concatenation is needed.  Static sublane-aligned slices (nc % 8 == 0).
    for i in range(bt):
        hi = h[i * nc:(i + 1) * nc, :]
        fi = jnp.dot(hi.astype(mm_dt), w3_ref[...],
                     preferred_element_type=jnp.float32) + b3_ref[...]
        feat_ref[i:i + 1, :] = jnp.maximum(
            feat_ref[i:i + 1, :], jnp.max(fi, axis=0, keepdims=True))

    # ---- head MLP once per batch tile, only on the last chunk (f32) ----
    @pl.when(k == pl.num_programs(1) - 1)
    def _():
        feat = feat_ref[...]                            # (bt, 1024) f32
        g = jnp.dot(feat, hw1_ref[...],
                    preferred_element_type=jnp.float32) + hb1_ref[...]
        g = _prelu(g, a2)
        g = jnp.dot(g, hw2_ref[...],
                    preferred_element_type=jnp.float32) + hb2_ref[...]
        g = _prelu(g, a3)
        # Lane-dense (bt, 128) store; only columns 0..5 carry the 6D output.
        out_ref[0] = jnp.dot(g, hw3_ref[...],
                             preferred_element_type=jnp.float32) + hb3_ref[...]


def init_params(key):
    """Deterministic parameter init (PyTorch-style uniform fan-in bounds)."""
    def layer(k, c_in, c_out):
        k1, k2 = jax.random.split(k)
        bound = 1.0 / float(c_in) ** 0.5
        w = jax.random.uniform(k1, (c_in, c_out), jnp.float32, -bound, bound)
        b = jax.random.uniform(k2, (1, c_out), jnp.float32, -bound, bound)
        return w, b

    keys = jax.random.split(key, 6)
    w1, b1 = layer(keys[0], 6, 64)        # Conv1d(6, 64, k=1)   (weights pre-transposed)
    w2, b2 = layer(keys[1], 64, 128)      # Conv1d(64, 128, k=1)
    w3, b3 = layer(keys[2], 128, 1024)    # Conv1d(128, 1024, k=1)
    hw1, hb1 = layer(keys[3], 1024, 256)  # Linear(1024, 256)
    hw2, hb2 = layer(keys[4], 256, 128)   # Linear(256, 128)
    hw3, hb3 = layer(keys[5], 128, 6)     # Linear(128, 6)
    prelu_a = jnp.full((4,), 0.25, jnp.float32)  # 4 PReLU modules, init=0.25
    return (w1, b1, w2, b2, w3, b3, hw1, hb1, hw2, hb2, hw3, hb3, prelu_a)


def _sixdim_to_rotmat(v6):
    """Zhou et al. 6D -> 3x3 rotation; vectorized over batch in plain XLA."""
    x_raw, y_raw = v6[:, 0:3], v6[:, 3:6]
    xb = x_raw / jnp.linalg.norm(x_raw, axis=-1, keepdims=True)
    zb = jnp.cross(xb, y_raw)
    zb = zb / jnp.linalg.norm(zb, axis=-1, keepdims=True)
    yb = jnp.cross(zb, xb)
    return jnp.stack([xb, yb, zb], axis=2)                          # (B, 3, 3)


def _tpu_vmem_capacity_bytes():
    try:
        return int(pltpu.get_tpu_info().vmem_capacity_bytes)
    except Exception:
        return 64 * 1024 * 1024   # conservative default (v7x-class)


def rotmat_6d_direct(x, params, *, use_bf16_pointmlp=False,
                     b_tile_max=8, n_chunk_max=None):
    """x: (B, 2, N, 3) float32 (PyTorch input layout). Returns (B, 3, 3)."""
    B, _, N, _ = x.shape
    (w1, b1, w2, b2, w3, b3, hw1, hb1, hw2, hb2, hw3, hb3, prelu_a) = params

    # --- generation-aware sizing ---
    vmem_cap = _tpu_vmem_capacity_bytes()
    big_vmem = vmem_cap >= 100 * 1024 * 1024      # v5e / v6e class (128 MiB)
    two_tc_chip = not big_vmem                    # v7x class: 2 TCs, 64 MiB VMEM
    if n_chunk_max is None:
        n_chunk_max = 512 if big_vmem else 256
    vmem_limit = min(int(vmem_cap * 3 // 4), 96 * 1024 * 1024)

    # Glue: feature-last point tensor (B, N, 6) — matches
    # cat([x[:,0].T, x[:,1].T], dim=1) per point in the PyTorch module.
    pts = jnp.concatenate([x[:, 0], x[:, 1]], axis=-1)

    # --- balanced point chunking: minimal replicated-point padding ---
    num_chunks = _cdiv(N, n_chunk_max)
    n_chunk = _round_up(_cdiv(N, num_chunks), 8)
    n_pad = n_chunk * num_chunks
    if n_pad != N:
        # Replicating an existing point never changes the max-pool result.
        rep = jnp.broadcast_to(pts[:, -1:, :], (B, n_pad - N, 6))
        pts = jnp.concatenate([pts, rep], axis=1)

    # --- balanced batch tiling; >=2 tiles on 2-TC chips so no core idles ---
    num_b_tiles = _cdiv(B, b_tile_max)
    if two_tc_chip and B >= 2:
        num_b_tiles = max(num_b_tiles, 2)
    b_tile = _cdiv(B, num_b_tiles)
    b_pad = b_tile * num_b_tiles
    if b_pad != B:
        pts = jnp.concatenate(
            [pts, jnp.zeros((b_pad - B, n_pad, 6), pts.dtype)], axis=0)

    # bf16 only for the point-MLP matmul weights (dominant FLOPs); head + all
    # biases / PReLU / max stay f32.
    mm_dtype = jnp.bfloat16 if use_bf16_pointmlp else jnp.float32
    w1m, w2m, w3m = (w.astype(mm_dtype) for w in (w1, w2, w3))

    # Zero-pad the last head layer to 128 output lanes for a lane-dense store.
    hw3p = jnp.zeros((hw3.shape[0], 128), jnp.float32).at[:, :6].set(hw3)
    hb3p = jnp.zeros((1, 128), jnp.float32).at[:, :6].set(hb3)

    def _run(single_buffer_weights):
        def weight_spec(arr):
            if single_buffer_weights:
                # Grid-invariant operand: never re-DMA'd across steps, so a
                # single VMEM buffer suffices (default double-buffering would
                # waste ~1x the weight footprint).
                return pl.BlockSpec(arr.shape, lambda b, k: (0, 0),
                                    pipeline_mode=pl.Buffered(1))
            return pl.BlockSpec(arr.shape, lambda b, k: (0, 0))

        return pl.pallas_call(
            rotmat6d_kernel,
            out_shape=jax.ShapeDtypeStruct((num_b_tiles, b_tile, 128),
                                           jnp.float32),
            grid=(num_b_tiles, num_chunks),
            in_specs=[
                pl.BlockSpec(memory_space=pltpu.MemorySpace.SMEM),          # PReLU slopes
                pl.BlockSpec((b_tile, n_chunk, 6), lambda b, k: (b, k, 0)),  # points
                weight_spec(w1m), weight_spec(b1),
                weight_spec(w2m), weight_spec(b2),
                weight_spec(w3m), weight_spec(b3),
                weight_spec(hw1), weight_spec(hb1),
                weight_spec(hw2), weight_spec(hb2),
                weight_spec(hw3p), weight_spec(hb3p),
            ],
            out_specs=pl.BlockSpec((1, b_tile, 128), lambda b, k: (b, 0, 0)),
            scratch_shapes=[pltpu.VMEM((b_tile, 1024), jnp.float32)],       # running max
            compiler_params=pltpu.CompilerParams(
                dimension_semantics=("parallel", "arbitrary"),
                vmem_limit_bytes=vmem_limit,
            ),
        )(prelu_a, pts, w1m, b1, w2m, b2, w3m, b3,
          hw1, hb1, hw2, hb2, hw3p, hb3p)

    try:
        out = _run(True)
    except Exception:
        # pl.Buffered(1) single-buffering hint not supported on this build;
        # fall back to default double-buffered weights (correct, more VMEM).
        out = _run(False)

    v6 = out.reshape(b_pad, 128)[:B, :6]   # drop batch padding + lane padding
    return _sixdim_to_rotmat(v6)           # Gram-Schmidt epilogue in XLA


def reference_jax(x, params, mm_dtype=jnp.float32):
    """Pure-JAX reference of the same forward pass (for correctness check)."""
    (w1, b1, w2, b2, w3, b3, hw1, hb1, hw2, hb2, hw3, hb3, a) = params
    pts = jnp.concatenate([x[:, 0], x[:, 1]], axis=-1)          # (B, N, 6)
    prelu = lambda v, s: jnp.where(v > 0, v, s * v)
    dot = lambda u, w: jnp.dot(u.astype(mm_dtype), w.astype(mm_dtype),
                               preferred_element_type=jnp.float32)
    h = prelu(dot(pts, w1) + b1, a[0])
    h = prelu(dot(h, w2) + b2, a[1])
    h = dot(h, w3) + b3
    feat = jnp.max(h, axis=1)                                    # (B, 1024)
    g = prelu(feat @ hw1 + hb1, a[2])
    g = prelu(g @ hw2 + hb2, a[3])
    v6 = g @ hw3 + hb3                                           # (B, 6)
    return _sixdim_to_rotmat(v6)                                 # (B, 3, 3)


if __name__ == "__main__":
    key = jax.random.PRNGKey(0)
    k_x, k_p, k_x2 = jax.random.split(key, 3)
    params = init_params(k_p)
    eye = jnp.eye(3)[None]

    # Case 1: small shapes, single point chunk.
    B, N = 2, 16
    x = jax.random.normal(k_x, (B, 2, N, 3), dtype=jnp.float32)
    C = jax.block_until_ready(rotmat_6d_direct(x, params))
    C_ref = jax.block_until_ready(reference_jax(x, params))
    assert C.shape == (B, 3, 3)
    assert jnp.allclose(C, C_ref, atol=1e-4, rtol=1e-4), "mismatch vs JAX reference (case 1)"
    assert jnp.allclose(jnp.einsum("bij,bkj->bik", C, C), eye, atol=1e-3)

    # Case 2: batch tiling + zero batch padding + point-chunk streaming +
    # replicated-point padding (B=10 -> b_tile=4, b_pad=12; N=20 -> n_chunk=8,
    # n_pad=24, 3 chunks).
    B2, N2 = 10, 20
    x2 = jax.random.normal(k_x2, (B2, 2, N2, 3), dtype=jnp.float32)
    C2 = jax.block_until_ready(
        rotmat_6d_direct(x2, params, b_tile_max=4, n_chunk_max=8))
    C2_ref = jax.block_until_ready(reference_jax(x2, params))
    assert C2.shape == (B2, 3, 3)
    assert jnp.allclose(C2, C2_ref, atol=1e-4, rtol=1e-4), "mismatch vs JAX reference (case 2)"
    assert jnp.allclose(jnp.einsum("bij,bkj->bik", C2, C2), eye, atol=1e-3)

    # Case 3: bf16 point-MLP MXU path, checked against a bf16-matmul JAX
    # reference (identical arithmetic, f32 accumulation; only reduction-order
    # differences remain).
    C3 = jax.block_until_ready(
        rotmat_6d_direct(x2, params, use_bf16_pointmlp=True))
    C3_ref = jax.block_until_ready(reference_jax(x2, params, mm_dtype=jnp.bfloat16))
    assert C3.shape == (B2, 3, 3)
    assert jnp.allclose(C3, C3_ref, atol=1e-3, rtol=1e-3), "mismatch vs bf16 JAX reference (case 3)"
    assert jnp.allclose(jnp.einsum("bij,bkj->bik", C3, C3), eye, atol=1e-3)

    print("KERNEL_OK")
</pallas_src>

<mosaic_0001>
module attributes {stable_mosaic.version = 11 : i64} {
  func.func @rotmat6d_kernel(%arg0: i32, %arg1: i32, %arg2: memref<4xf32, #tpu.memory_space<smem>>, %arg3: memref<1x16x6xf32, #tpu.memory_space<vmem>>, %arg4: memref<6x64xf32, #tpu.memory_space<vmem>>, %arg5: memref<1x64xf32, #tpu.memory_space<vmem>>, %arg6: memref<64x128xf32, #tpu.memory_space<vmem>>, %arg7: memref<1x128xf32, #tpu.memory_space<vmem>>, %arg8: memref<128x1024xf32, #tpu.memory_space<vmem>>, %arg9: memref<1x1024xf32, #tpu.memory_space<vmem>>, %arg10: memref<1024x256xf32, #tpu.memory_space<vmem>>, %arg11: memref<1x256xf32, #tpu.memory_space<vmem>>, %arg12: memref<256x128xf32, #tpu.memory_space<vmem>>, %arg13: memref<1x128xf32, #tpu.memory_space<vmem>>, %arg14: memref<128x128xf32, #tpu.memory_space<vmem>>, %arg15: memref<1x128xf32, #tpu.memory_space<vmem>>, %arg16: memref<1x1x128xf32, #tpu.memory_space<vmem>>, %arg17: memref<1x1024xf32, #tpu.memory_space<vmem>>) attributes {dimension_semantics = [#tpu.dimension_semantics<parallel>, #tpu.dimension_semantics<arbitrary>], iteration_bounds = array<i64: 2, 1>, scalar_prefetch = 0 : i64, scratch_operands = 1 : i64, tpu.core_type = #tpu.core_type<tc>, window_params = [{transform_indices = @transform_0, window_bounds = array<i64: 4>}, {transform_indices = @transform_1, window_bounds = array<i64: 1, 16, 6>}, {pipeline_mode = #tpu.pipeline_mode<synchronous>, transform_indices = @transform_2, window_bounds = array<i64: 6, 64>}, {pipeline_mode = #tpu.pipeline_mode<synchronous>, transform_indices = @transform_3, window_bounds = array<i64: 1, 64>}, {pipeline_mode = #tpu.pipeline_mode<synchronous>, transform_indices = @transform_4, window_bounds = array<i64: 64, 128>}, {pipeline_mode = #tpu.pipeline_mode<synchronous>, transform_indices = @transform_5, window_bounds = array<i64: 1, 128>}, {pipeline_mode = #tpu.pipeline_mode<synchronous>, transform_indices = @transform_6, window_bounds = array<i64: 128, 1024>}, {pipeline_mode = #tpu.pipeline_mode<synchronous>, transform_indices = @transform_7, window_bounds = array<i64: 1, 1024>}, {pipeline_mode = #tpu.pipeline_mode<synchronous>, transform_indices = @transform_8, window_bounds = array<i64: 1024, 256>}, {pipeline_mode = #tpu.pipeline_mode<synchronous>, transform_indices = @transform_9, window_bounds = array<i64: 1, 256>}, {pipeline_mode = #tpu.pipeline_mode<synchronous>, transform_indices = @transform_10, window_bounds = array<i64: 256, 128>}, {pipeline_mode = #tpu.pipeline_mode<synchronous>, transform_indices = @transform_11, window_bounds = array<i64: 1, 128>}, {pipeline_mode = #tpu.pipeline_mode<synchronous>, transform_indices = @transform_12, window_bounds = array<i64: 128, 128>}, {pipeline_mode = #tpu.pipeline_mode<synchronous>, transform_indices = @transform_13, window_bounds = array<i64: 1, 128>}, {transform_indices = @transform_14, window_bounds = array<i64: 1, 1, 128>}]} {
    %c0 = arith.constant 0 : index
    %0 = memref.load %arg2[%c0] : memref<4xf32, #tpu.memory_space<smem>>
    %c1 = arith.constant 1 : index
    %1 = memref.load %arg2[%c1] : memref<4xf32, #tpu.memory_space<smem>>
    %c2 = arith.constant 2 : index
    %2 = memref.load %arg2[%c2] : memref<4xf32, #tpu.memory_space<smem>>
    %c3 = arith.constant 3 : index
    %3 = memref.load %arg2[%c3] : memref<4xf32, #tpu.memory_space<smem>>
    %c0_0 = arith.constant 0 : index
    %c0_1 = arith.constant 0 : index
    %c0_2 = arith.constant 0 : index
    %4 = vector.load %arg3[%c0_0, %c0_1, %c0_2] : memref<1x16x6xf32, #tpu.memory_space<vmem>>, vector<1x16x6xf32>
    %5 = vector.shape_cast %4 : vector<1x16x6xf32> to vector<16x6xf32>
    %c0_3 = arith.constant 0 : index
    %c0_4 = arith.constant 0 : index
    %6 = vector.load %arg4[%c0_3, %c0_4] : memref<6x64xf32, #tpu.memory_space<vmem>>, vector<6x64xf32>
    %cst = arith.constant dense<0.000000e+00> : vector<16x64xf32>
    %7 = tpu.matmul %5, %6, %cst {dimension_numbers = #tpu.dot_dimension_numbers<[1], [0], [0], [1], [0, 0, 1, 1], [], []>} : vector<16x6xf32>, vector<6x64xf32>, vector<16x64xf32> -> vector<16x64xf32>
    %c0_5 = arith.constant 0 : index
    %c0_6 = arith.constant 0 : index
    %8 = vector.load %arg5[%c0_5, %c0_6] : memref<1x64xf32, #tpu.memory_space<vmem>>, vector<1x64xf32>
    %9 = vector.broadcast %8 : vector<1x64xf32> to vector<16x64xf32>
    %10 = arith.addf %7, %9 : vector<16x64xf32>
    %cst_7 = arith.constant 0.000000e+00 : f32
    %11 = vector.broadcast %cst_7 : f32 to vector<16x64xf32>
    %12 = arith.cmpf ogt, %10, %11 : vector<16x64xf32>
    %13 = vector.broadcast %0 : f32 to vector<16x64xf32>
    %14 = arith.mulf %13, %10 : vector<16x64xf32>
    %15 = arith.select %12, %10, %14 : vector<16x64xi1>, vector<16x64xf32>
    %c0_8 = arith.constant 0 : index
    %c0_9 = arith.constant 0 : index
    %16 = vector.load %arg6[%c0_8, %c0_9] : memref<64x128xf32, #tpu.memory_space<vmem>>, vector<64x128xf32>
    %cst_10 = arith.constant dense<0.000000e+00> : vector<16x128xf32>
    %17 = tpu.matmul %15, %16, %cst_10 {dimension_numbers = #tpu.dot_dimension_numbers<[1], [0], [0], [1], [0, 0, 1, 1], [], []>} : vector<16x64xf32>, vector<64x128xf32>, vector<16x128xf32> -> vector<16x128xf32>
    %c0_11 = arith.constant 0 : index
    %c0_12 = arith.constant 0 : index
    %18 = vector.load %arg7[%c0_11, %c0_12] : memref<1x128xf32, #tpu.memory_space<vmem>>, vector<1x128xf32>
    %19 = vector.broadcast %18 : vector<1x128xf32> to vector<16x128xf32>
    %20 = arith.addf %17, %19 : vector<16x128xf32>
    %cst_13 = arith.constant 0.000000e+00 : f32
    %21 = vector.broadcast %cst_13 : f32 to vector<16x128xf32>
    %22 = arith.cmpf ogt, %20, %21 : vector<16x128xf32>
    %23 = vector.broadcast %1 : f32 to vector<16x128xf32>
    %24 = arith.mulf %23, %20 : vector<16x128xf32>
    %25 = arith.select %22, %20, %24 : vector<16x128xi1>, vector<16x128xf32>
    %c0_i32 = arith.constant 0 : i32
    %26 = arith.cmpi eq, %arg1, %c0_i32 : i32
    %27 = arith.extui %26 : i1 to i32
    %c0_i32_14 = arith.constant 0 : i32
    %28 = arith.cmpi ne, %27, %c0_i32_14 : i32
    scf.if %28 {
      %cst_27 = arith.constant 0xFF800000 : f32
      %42 = vector.broadcast %cst_27 : f32 to vector<1x1024xf32>
      %c0_28 = arith.constant 0 : index
      %c0_29 = arith.constant 0 : index
      %43 = vector.load %arg17[%c0_28, %c0_29] : memref<1x1024xf32, #tpu.memory_space<vmem>>, vector<1x1024xf32>
      tpu.vector_store %arg17[%c0_28, %c0_29], %42 {strides = array<i32>} : memref<1x1024xf32, #tpu.memory_space<vmem>>, vector<1x1024xf32>,
    } else {
    }
    %c0_15 = arith.constant 0 : index
    %c0_16 = arith.constant 0 : index
    %29 = vector.load %arg8[%c0_15, %c0_16] : memref<128x1024xf32, #tpu.memory_space<vmem>>, vector<128x1024xf32>
    %cst_17 = arith.constant dense<0.000000e+00> : vector<16x1024xf32>
    %30 = tpu.matmul %25, %29, %cst_17 {dimension_numbers = #tpu.dot_dimension_numbers<[1], [0], [0], [1], [0, 0, 1, 1], [], []>} : vector<16x128xf32>, vector<128x1024xf32>, vector<16x1024xf32> -> vector<16x1024xf32>
    %c0_18 = arith.constant 0 : index
    %c0_19 = arith.constant 0 : index
    %31 = vector.load %arg9[%c0_18, %c0_19] : memref<1x1024xf32, #tpu.memory_space<vmem>>, vector<1x1024xf32>
    %32 = vector.broadcast %31 : vector<1x1024xf32> to vector<16x1024xf32>
    %33 = arith.addf %30, %32 : vector<16x1024xf32>
    %c0_20 = arith.constant 0 : index
    %c0_21 = arith.constant 0 : index
    %34 = vector.load %arg17[%c0_20, %c0_21] : memref<1x1024xf32, #tpu.memory_space<vmem>>, vector<1x1024xf32>
    %cst_22 = arith.constant dense<0xFF800000> : vector<1024xf32>
    %35 = vector.multi_reduction <maximumf>, %33, %cst_22 [0] : vector<16x1024xf32> to vector<1024xf32>
    %36 = vector.shape_cast %35 : vector<1024xf32> to vector<1x1024xf32>
    %37 = arith.maximumf %34, %36 : vector<1x1024xf32>
    %c0_23 = arith.constant 0 : index
    %c0_24 = arith.constant 0 : index
    %38 = vector.load %arg17[%c0_23, %c0_24] : memref<1x1024xf32, #tpu.memory_space<vmem>>, vector<1x1024xf32>
    tpu.vector_store %arg17[%c0_23, %c0_24], %37 {strides = array<i32>} : memref<1x1024xf32, #tpu.memory_space<vmem>>, vector<1x1024xf32>,
    %c0_i32_25 = arith.constant 0 : i32
    %39 = arith.cmpi eq, %arg1, %c0_i32_25 : i32
    %40 = arith.extui %39 : i1 to i32
    %c0_i32_26 = arith.constant 0 : i32
    %41 = arith.cmpi ne, %40, %c0_i32_26 : i32
    scf.if %41 {
      %c0_27 = arith.constant 0 : index
      %c0_28 = arith.constant 0 : index
      %42 = vector.load %arg17[%c0_27, %c0_28] : memref<1x1024xf32, #tpu.memory_space<vmem>>, vector<1x1024xf32>
      %c0_29 = arith.constant 0 : index
      %c0_30 = arith.constant 0 : index
      %43 = vector.load %arg10[%c0_29, %c0_30] : memref<1024x256xf32, #tpu.memory_space<vmem>>, vector<1024x256xf32>
      %cst_31 = arith.constant dense<0.000000e+00> : vector<1x256xf32>
      %44 = tpu.matmul %42, %43, %cst_31 {dimension_numbers = #tpu.dot_dimension_numbers<[1], [0], [0], [1], [0, 0, 1, 1], [], []>} : vector<1x1024xf32>, vector<1024x256xf32>, vector<1x256xf32> -> vector<1x256xf32>
      %c0_32 = arith.constant 0 : index
      %c0_33 = arith.constant 0 : index
      %45 = vector.load %arg11[%c0_32, %c0_33] : memref<1x256xf32, #tpu.memory_space<vmem>>, vector<1x256xf32>
      %46 = arith.addf %44, %45 : vector<1x256xf32>
      %cst_34 = arith.constant 0.000000e+00 : f32
      %47 = vector.broadcast %cst_34 : f32 to vector<1x256xf32>
      %48 = arith.cmpf ogt, %46, %47 : vector<1x256xf32>
      %49 = vector.broadcast %2 : f32 to vector<1x256xf32>
      %50 = arith.mulf %49, %46 : vector<1x256xf32>
      %51 = arith.select %48, %46, %50 : vector<1x256xi1>, vector<1x256xf32>
      %c0_35 = arith.constant 0 : index
      %c0_36 = arith.constant 0 : index
      %52 = vector.load %arg12[%c0_35, %c0_36] : memref<256x128xf32, #tpu.memory_space<vmem>>, vector<256x128xf32>
      %cst_37 = arith.constant dense<0.000000e+00> : vector<1x128xf32>
      %53 = tpu.matmul %51, %52, %cst_37 {dimension_numbers = #tpu.dot_dimension_numbers<[1], [0], [0], [1], [0, 0, 1, 1], [], []>} : vector<1x256xf32>, vector<256x128xf32>, vector<1x128xf32> -> vector<1x128xf32>
      %c0_38 = arith.constant 0 : index
      %c0_39 = arith.constant 0 : index
      %54 = vector.load %arg13[%c0_38, %c0_39] : memref<1x128xf32, #tpu.memory_space<vmem>>, vector<1x128xf32>
      %55 = arith.addf %53, %54 : vector<1x128xf32>
      %cst_40 = arith.constant 0.000000e+00 : f32
      %56 = vector.broadcast %cst_40 : f32 to vector<1x128xf32>
      %57 = arith.cmpf ogt, %55, %56 : vector<1x128xf32>
      %58 = vector.broadcast %3 : f32 to vector<1x128xf32>
      %59 = arith.mulf %58, %55 : vector<1x128xf32>
      %60 = arith.select %57, %55, %59 : vector<1x128xi1>, vector<1x128xf32>
      %c0_41 = arith.constant 0 : index
      %c0_42 = arith.constant 0 : index
      %61 = vector.load %arg14[%c0_41, %c0_42] : memref<128x128xf32, #tpu.memory_space<vmem>>, vector<128x128xf32>
      %cst_43 = arith.constant dense<0.000000e+00> : vector<1x128xf32>
      %62 = tpu.matmul %60, %61, %cst_43 {dimension_numbers = #tpu.dot_dimension_numbers<[1], [0], [0], [1], [0, 0, 1, 1], [], []>} : vector<1x128xf32>, vector<128x128xf32>, vector<1x128xf32> -> vector<1x128xf32>
      %c0_44 = arith.constant 0 : index
      %c0_45 = arith.constant 0 : index
      %63 = vector.load %arg15[%c0_44, %c0_45] : memref<1x128xf32, #tpu.memory_space<vmem>>, vector<1x128xf32>
      %64 = arith.addf %62, %63 : vector<1x128xf32>
      %c0_46 = arith.constant 0 : index
      %c0_47 = arith.constant 0 : index
      %c0_48 = arith.constant 0 : index
      %65 = vector.load %arg16[%c0_46, %c0_47, %c0_48] : memref<1x1x128xf32, #tpu.memory_space<vmem>>, vector<1x1x128xf32>
      %66 = vector.shape_cast %65 : vector<1x1x128xf32> to vector<1x128xf32>
      %67 = vector.shape_cast %64 : vector<1x128xf32> to vector<1x1x128xf32>
      tpu.vector_store %arg16[%c0_46, %c0_47, %c0_48], %67 {strides = array<i32>} : memref<1x1x128xf32, #tpu.memory_space<vmem>>, vector<1x1x128xf32>,
    } else {
    }
    return
  }
  func.func @transform_0(%arg0: i32, %arg1: i32) -> i32 {
    %c0_i32 = arith.constant 0 : i32
    %c0_i32_0 = arith.constant 0 : i32
    return %c0_i32 : i32
  }
  func.func @transform_1(%arg0: i32, %arg1: i32) -> (i32, i32, i32) {
    %c0_i32 = arith.constant 0 : i32
    %c0_i32_0 = arith.constant 0 : i32
    return %arg0, %arg1, %c0_i32 : i32, i32, i32
  }
  func.func @transform_2(%arg0: i32, %arg1: i32) -> (i32, i32) {
    %c0_i32 = arith.constant 0 : i32
    %c0_i32_0 = arith.constant 0 : i32
    %c0_i32_1 = arith.constant 0 : i32
    return %c0_i32, %c0_i32_0 : i32, i32
  }
  func.func @transform_3(%arg0: i32, %arg1: i32) -> (i32, i32) {
    %c0_i32 = arith.constant 0 : i32
    %c0_i32_0 = arith.constant 0 : i32
    %c0_i32_1 = arith.constant 0 : i32
    return %c0_i32, %c0_i32_0 : i32, i32
  }
  func.func @transform_4(%arg0: i32, %arg1: i32) -> (i32, i32) {
    %c0_i32 = arith.constant 0 : i32
    %c0_i32_0 = arith.constant 0 : i32
    %c0_i32_1 = arith.constant 0 : i32
    return %c0_i32, %c0_i32_0 : i32, i32
  }
  func.func @transform_5(%arg0: i32, %arg1: i32) -> (i32, i32) {
    %c0_i32 = arith.constant 0 : i32
    %c0_i32_0 = arith.constant 0 : i32
    %c0_i32_1 = arith.constant 0 : i32
    return %c0_i32, %c0_i32_0 : i32, i32
  }
  func.func @transform_6(%arg0: i32, %arg1: i32) -> (i32, i32) {
    %c0_i32 = arith.constant 0 : i32
    %c0_i32_0 = arith.constant 0 : i32
    %c0_i32_1 = arith.constant 0 : i32
    return %c0_i32, %c0_i32_0 : i32, i32
  }
  func.func @transform_7(%arg0: i32, %arg1: i32) -> (i32, i32) {
    %c0_i32 = arith.constant 0 : i32
    %c0_i32_0 = arith.constant 0 : i32
    %c0_i32_1 = arith.constant 0 : i32
    return %c0_i32, %c0_i32_0 : i32, i32
  }
  func.func @transform_8(%arg0: i32, %arg1: i32) -> (i32, i32) {
    %c0_i32 = arith.constant 0 : i32
    %c0_i32_0 = arith.constant 0 : i32
    %c0_i32_1 = arith.constant 0 : i32
    return %c0_i32, %c0_i32_0 : i32, i32
  }
  func.func @transform_9(%arg0: i32, %arg1: i32) -> (i32, i32) {
    %c0_i32 = arith.constant 0 : i32
    %c0_i32_0 = arith.constant 0 : i32
    %c0_i32_1 = arith.constant 0 : i32
    return %c0_i32, %c0_i32_0 : i32, i32
  }
  func.func @transform_10(%arg0: i32, %arg1: i32) -> (i32, i32) {
    %c0_i32 = arith.constant 0 : i32
    %c0_i32_0 = arith.constant 0 : i32
    %c0_i32_1 = arith.constant 0 : i32
    return %c0_i32, %c0_i32_0 : i32, i32
  }
  func.func @transform_11(%arg0: i32, %arg1: i32) -> (i32, i32) {
    %c0_i32 = arith.constant 0 : i32
    %c0_i32_0 = arith.constant 0 : i32
    %c0_i32_1 = arith.constant 0 : i32
    return %c0_i32, %c0_i32_0 : i32, i32
  }
  func.func @transform_12(%arg0: i32, %arg1: i32) -> (i32, i32) {
    %c0_i32 = arith.constant 0 : i32
    %c0_i32_0 = arith.constant 0 : i32
    %c0_i32_1 = arith.constant 0 : i32
    return %c0_i32, %c0_i32_0 : i32, i32
  }
  func.func @transform_13(%arg0: i32, %arg1: i32) -> (i32, i32) {
    %c0_i32 = arith.constant 0 : i32
    %c0_i32_0 = arith.constant 0 : i32
    %c0_i32_1 = arith.constant 0 : i32
    return %c0_i32, %c0_i32_0 : i32, i32
  }
  func.func @transform_14(%arg0: i32, %arg1: i32) -> (i32, i32, i32) {
    %c0_i32 = arith.constant 0 : i32
    %c0_i32_0 = arith.constant 0 : i32
    %c0_i32_1 = arith.constant 0 : i32
    return %arg0, %c0_i32, %c0_i32_0 : i32, i32, i32
  }
}

module attributes {stable_mosaic.version = 11 : i64} {
  func.func @rotmat6d_kernel(%arg0: i32, %arg1: i32, %arg2: memref<4xf32, #tpu.memory_space<smem>>, %arg3: memref<1x16x6xf32, #tpu.memory_space<vmem>>, %arg4: memref<6x64xf32, #tpu.memory_space<vmem>>, %arg5: memref<1x64xf32, #tpu.memory_space<vmem>>, %arg6: memref<64x128xf32, #tpu.memory_space<vmem>>, %arg7: memref<1x128xf32, #tpu.memory_space<vmem>>, %arg8: memref<128x1024xf32, #tpu.memory_space<vmem>>, %arg9: memref<1x1024xf32, #tpu.memory_space<vmem>>, %arg10: memref<1024x256xf32, #tpu.memory_space<vmem>>, %arg11: memref<1x256xf32, #tpu.memory_space<vmem>>, %arg12: memref<256x128xf32, #tpu.memory_space<vmem>>, %arg13: memref<1x128xf32, #tpu.memory_space<vmem>>, %arg14: memref<128x128xf32, #tpu.memory_space<vmem>>, %arg15: memref<1x128xf32, #tpu.memory_space<vmem>>, %arg16: memref<1x1x128xf32, #tpu.memory_space<vmem>>, %arg17: memref<1x1024xf32, #tpu.memory_space<vmem>>) attributes {dimension_semantics = [#tpu.dimension_semantics<parallel>, #tpu.dimension_semantics<arbitrary>], iteration_bounds = array<i64: 2, 1>, scalar_prefetch = 0 : i64, scratch_operands = 1 : i64, tpu.core_type = #tpu.core_type<tc>, window_params = [{transform_indices = @transform_0, window_bounds = array<i64: 4>}, {transform_indices = @transform_1, window_bounds = array<i64: 1, 16, 6>}, {pipeline_mode = #tpu.pipeline_mode<synchronous>, transform_indices = @transform_2, window_bounds = array<i64: 6, 64>}, {pipeline_mode = #tpu.pipeline_mode<synchronous>, transform_indices = @transform_3, window_bounds = array<i64: 1, 64>}, {pipeline_mode = #tpu.pipeline_mode<synchronous>, transform_indices = @transform_4, window_bounds = array<i64: 64, 128>}, {pipeline_mode = #tpu.pipeline_mode<synchronous>, transform_indices = @transform_5, window_bounds = array<i64: 1, 128>}, {pipeline_mode = #tpu.pipeline_mode<synchronous>, transform_indices = @transform_6, window_bounds = array<i64: 128, 1024>}, {pipeline_mode = #tpu.pipeline_mode<synchronous>, transform_indices = @transform_7, window_bounds = array<i64: 1, 1024>}, {pipeline_mode = #tpu.pipeline_mode<synchronous>, transform_indices = @transform_8, window_bounds = array<i64: 1024, 256>}, {pipeline_mode = #tpu.pipeline_mode<synchronous>, transform_indices = @transform_9, window_bounds = array<i64: 1, 256>}, {pipeline_mode = #tpu.pipeline_mode<synchronous>, transform_indices = @transform_10, window_bounds = array<i64: 256, 128>}, {pipeline_mode = #tpu.pipeline_mode<synchronous>, transform_indices = @transform_11, window_bounds = array<i64: 1, 128>}, {pipeline_mode = #tpu.pipeline_mode<synchronous>, transform_indices = @transform_12, window_bounds = array<i64: 128, 128>}, {pipeline_mode = #tpu.pipeline_mode<synchronous>, transform_indices = @transform_13, window_bounds = array<i64: 1, 128>}, {transform_indices = @transform_14, window_bounds = array<i64: 1, 1, 128>}]} {
    %c0 = arith.constant 0 : index
    %0 = memref.load %arg2[%c0] : memref<4xf32, #tpu.memory_space<smem>>
    %c1 = arith.constant 1 : index
    %1 = memref.load %arg2[%c1] : memref<4xf32, #tpu.memory_space<smem>>
    %c2 = arith.constant 2 : index
    %2 = memref.load %arg2[%c2] : memref<4xf32, #tpu.memory_space<smem>>
    %c3 = arith.constant 3 : index
    %3 = memref.load %arg2[%c3] : memref<4xf32, #tpu.memory_space<smem>>
    %c0_0 = arith.constant 0 : index
    %c0_1 = arith.constant 0 : index
    %c0_2 = arith.constant 0 : index
    %4 = vector.load %arg3[%c0_0, %c0_1, %c0_2] : memref<1x16x6xf32, #tpu.memory_space<vmem>>, vector<1x16x6xf32>
    %5 = vector.shape_cast %4 : vector<1x16x6xf32> to vector<16x6xf32>
    %c0_3 = arith.constant 0 : index
    %c0_4 = arith.constant 0 : index
    %6 = vector.load %arg4[%c0_3, %c0_4] : memref<6x64xf32, #tpu.memory_space<vmem>>, vector<6x64xf32>
    %cst = arith.constant dense<0.000000e+00> : vector<16x64xf32>
    %7 = tpu.matmul %5, %6, %cst {dimension_numbers = #tpu.dot_dimension_numbers<[1], [0], [0], [1], [0, 0, 1, 1], [], []>} : vector<16x6xf32>, vector<6x64xf32>, vector<16x64xf32> -> vector<16x64xf32>
    %c0_5 = arith.constant 0 : index
    %c0_6 = arith.constant 0 : index
    %8 = vector.load %arg5[%c0_5, %c0_6] : memref<1x64xf32, #tpu.memory_space<vmem>>, vector<1x64xf32>
    %9 = vector.broadcast %8 : vector<1x64xf32> to vector<16x64xf32>
    %10 = arith.addf %7, %9 : vector<16x64xf32>
    %cst_7 = arith.constant 0.000000e+00 : f32
    %11 = vector.broadcast %cst_7 : f32 to vector<16x64xf32>
    %12 = arith.cmpf ogt, %10, %11 : vector<16x64xf32>
    %13 = vector.broadcast %0 : f32 to vector<16x64xf32>
    %14 = arith.mulf %13, %10 : vector<16x64xf32>
    %15 = arith.select %12, %10, %14 : vector<16x64xi1>, vector<16x64xf32>
    %c0_8 = arith.constant 0 : index
    %c0_9 = arith.constant 0 : index
    %16 = vector.load %arg6[%c0_8, %c0_9] : memref<64x128xf32, #tpu.memory_space<vmem>>, vector<64x128xf32>
    %cst_10 = arith.constant dense<0.000000e+00> : vector<16x128xf32>
    %17 = tpu.matmul %15, %16, %cst_10 {dimension_numbers = #tpu.dot_dimension_numbers<[1], [0], [0], [1], [0, 0, 1, 1], [], []>} : vector<16x64xf32>, vector<64x128xf32>, vector<16x128xf32> -> vector<16x128xf32>
    %c0_11 = arith.constant 0 : index
    %c0_12 = arith.constant 0 : index
    %18 = vector.load %arg7[%c0_11, %c0_12] : memref<1x128xf32, #tpu.memory_space<vmem>>, vector<1x128xf32>
    %19 = vector.broadcast %18 : vector<1x128xf32> to vector<16x128xf32>
    %20 = arith.addf %17, %19 : vector<16x128xf32>
    %cst_13 = arith.constant 0.000000e+00 : f32
    %21 = vector.broadcast %cst_13 : f32 to vector<16x128xf32>
    %22 = arith.cmpf ogt, %20, %21 : vector<16x128xf32>
    %23 = vector.broadcast %1 : f32 to vector<16x128xf32>
    %24 = arith.mulf %23, %20 : vector<16x128xf32>
    %25 = arith.select %22, %20, %24 : vector<16x128xi1>, vector<16x128xf32>
    %c0_i32 = arith.constant 0 : i32
    %26 = arith.cmpi eq, %arg1, %c0_i32 : i32
    %27 = arith.extui %26 : i1 to i32
    %c0_i32_14 = arith.constant 0 : i32
    %28 = arith.cmpi ne, %27, %c0_i32_14 : i32
    scf.if %28 {
      %cst_27 = arith.constant 0xFF800000 : f32
      %42 = vector.broadcast %cst_27 : f32 to vector<1x1024xf32>
      %c0_28 = arith.constant 0 : index
      %c0_29 = arith.constant 0 : index
      %43 = vector.load %arg17[%c0_28, %c0_29] : memref<1x1024xf32, #tpu.memory_space<vmem>>, vector<1x1024xf32>
      tpu.vector_store %arg17[%c0_28, %c0_29], %42 {strides = array<i32>} : memref<1x1024xf32, #tpu.memory_space<vmem>>, vector<1x1024xf32>,
    } else {
    }
    %c0_15 = arith.constant 0 : index
    %c0_16 = arith.constant 0 : index
    %29 = vector.load %arg8[%c0_15, %c0_16] : memref<128x1024xf32, #tpu.memory_space<vmem>>, vector<128x1024xf32>
    %cst_17 = arith.constant dense<0.000000e+00> : vector<16x1024xf32>
    %30 = tpu.matmul %25, %29, %cst_17 {dimension_numbers = #tpu.dot_dimension_numbers<[1], [0], [0], [1], [0, 0, 1, 1], [], []>} : vector<16x128xf32>, vector<128x1024xf32>, vector<16x1024xf32> -> vector<16x1024xf32>
    %c0_18 = arith.constant 0 : index
    %c0_19 = arith.constant 0 : index
    %31 = vector.load %arg9[%c0_18, %c0_19] : memref<1x1024xf32, #tpu.memory_space<vmem>>, vector<1x1024xf32>
    %32 = vector.broadcast %31 : vector<1x1024xf32> to vector<16x1024xf32>
    %33 = arith.addf %30, %32 : vector<16x1024xf32>
    %c0_20 = arith.constant 0 : index
    %c0_21 = arith.constant 0 : index
    %34 = vector.load %arg17[%c0_20, %c0_21] : memref<1x1024xf32, #tpu.memory_space<vmem>>, vector<1x1024xf32>
    %cst_22 = arith.constant dense<0xFF800000> : vector<1024xf32>
    %35 = vector.multi_reduction <maximumf>, %33, %cst_22 [0] : vector<16x1024xf32> to vector<1024xf32>
    %36 = vector.shape_cast %35 : vector<1024xf32> to vector<1x1024xf32>
    %37 = arith.maximumf %34, %36 : vector<1x1024xf32>
    %c0_23 = arith.constant 0 : index
    %c0_24 = arith.constant 0 : index
    %38 = vector.load %arg17[%c0_23, %c0_24] : memref<1x1024xf32, #tpu.memory_space<vmem>>, vector<1x1024xf32>
    tpu.vector_store %arg17[%c0_23, %c0_24], %37 {strides = array<i32>} : memref<1x1024xf32, #tpu.memory_space<vmem>>, vector<1x1024xf32>,
    %c0_i32_25 = arith.constant 0 : i32
    %39 = arith.cmpi eq, %arg1, %c0_i32_25 : i32
    %40 = arith.extui %39 : i1 to i32
    %c0_i32_26 = arith.constant 0 : i32
    %41 = arith.cmpi ne, %40, %c0_i32_26 : i32
    scf.if %41 {
      %c0_27 = arith.constant 0 : index
      %c0_28 = arith.constant 0 : index
      %42 = vector.load %arg17[%c0_27, %c0_28] : memref<1x1024xf32, #tpu.memory_space<vmem>>, vector<1x1024xf32>
      %c0_29 = arith.constant 0 : index
      %c0_30 = arith.constant 0 : index
      %43 = vector.load %arg10[%c0_29, %c0_30] : memref<1024x256xf32, #tpu.memory_space<vmem>>, vector<1024x256xf32>
      %cst_31 = arith.constant dense<0.000000e+00> : vector<1x256xf32>
      %44 = tpu.matmul %42, %43, %cst_31 {dimension_numbers = #tpu.dot_dimension_numbers<[1], [0], [0], [1], [0, 0, 1, 1], [], []>} : vector<1x1024xf32>, vector<1024x256xf32>, vector<1x256xf32> -> vector<1x256xf32>
      %c0_32 = arith.constant 0 : index
      %c0_33 = arith.constant 0 : index
      %45 = vector.load %arg11[%c0_32, %c0_33] : memref<1x256xf32, #tpu.memory_space<vmem>>, vector<1x256xf32>
      %46 = arith.addf %44, %45 : vector<1x256xf32>
      %cst_34 = arith.constant 0.000000e+00 : f32
      %47 = vector.broadcast %cst_34 : f32 to vector<1x256xf32>
      %48 = arith.cmpf ogt, %46, %47 : vector<1x256xf32>
      %49 = vector.broadcast %2 : f32 to vector<1x256xf32>
      %50 = arith.mulf %49, %46 : vector<1x256xf32>
      %51 = arith.select %48, %46, %50 : vector<1x256xi1>, vector<1x256xf32>
      %c0_35 = arith.constant 0 : index
      %c0_36 = arith.constant 0 : index
      %52 = vector.load %arg12[%c0_35, %c0_36] : memref<256x128xf32, #tpu.memory_space<vmem>>, vector<256x128xf32>
      %cst_37 = arith.constant dense<0.000000e+00> : vector<1x128xf32>
      %53 = tpu.matmul %51, %52, %cst_37 {dimension_numbers = #tpu.dot_dimension_numbers<[1], [0], [0], [1], [0, 0, 1, 1], [], []>} : vector<1x256xf32>, vector<256x128xf32>, vector<1x128xf32> -> vector<1x128xf32>
      %c0_38 = arith.constant 0 : index
      %c0_39 = arith.constant 0 : index
      %54 = vector.load %arg13[%c0_38, %c0_39] : memref<1x128xf32, #tpu.memory_space<vmem>>, vector<1x128xf32>
      %55 = arith.addf %53, %54 : vector<1x128xf32>
      %cst_40 = arith.constant 0.000000e+00 : f32
      %56 = vector.broadcast %cst_40 : f32 to vector<1x128xf32>
      %57 = arith.cmpf ogt, %55, %56 : vector<1x128xf32>
      %58 = vector.broadcast %3 : f32 to vector<1x128xf32>
      %59 = arith.mulf %58, %55 : vector<1x128xf32>
      %60 = arith.select %57, %55, %59 : vector<1x128xi1>, vector<1x128xf32>
      %c0_41 = arith.constant 0 : index
      %c0_42 = arith.constant 0 : index
      %61 = vector.load %arg14[%c0_41, %c0_42] : memref<128x128xf32, #tpu.memory_space<vmem>>, vector<128x128xf32>
      %cst_43 = arith.constant dense<0.000000e+00> : vector<1x128xf32>
      %62 = tpu.matmul %60, %61, %cst_43 {dimension_numbers = #tpu.dot_dimension_numbers<[1], [0], [0], [1], [0, 0, 1, 1], [], []>} : vector<1x128xf32>, vector<128x128xf32>, vector<1x128xf32> -> vector<1x128xf32>
      %c0_44 = arith.constant 0 : index
      %c0_45 = arith.constant 0 : index
      %63 = vector.load %arg15[%c0_44, %c0_45] : memref<1x128xf32, #tpu.memory_space<vmem>>, vector<1x128xf32>
      %64 = arith.addf %62, %63 : vector<1x128xf32>
      %c0_46 = arith.constant 0 : index
      %c0_47 = arith.constant 0 : index
      %c0_48 = arith.constant 0 : index
      %65 = vector.load %arg16[%c0_46, %c0_47, %c0_48] : memref<1x1x128xf32, #tpu.memory_space<vmem>>, vector<1x1x128xf32>
      %66 = vector.shape_cast %65 : vector<1x1x128xf32> to vector<1x128xf32>
      %67 = vector.shape_cast %64 : vector<1x128xf32> to vector<1x1x128xf32>
      tpu.vector_store %arg16[%c0_46, %c0_47, %c0_48], %67 {strides = array<i32>} : memref<1x1x128xf32, #tpu.memory_space<vmem>>, vector<1x1x128xf32>,
    } else {
    }
    return
  }
  func.func @transform_0(%arg0: i32, %arg1: i32) -> i32 {
    %c0_i32 = arith.constant 0 : i32
    %c0_i32_0 = arith.constant 0 : i32
    return %c0_i32 : i32
  }
  func.func @transform_1(%arg0: i32, %arg1: i32) -> (i32, i32, i32) {
    %c0_i32 = arith.constant 0 : i32
    %c0_i32_0 = arith.constant 0 : i32
    return %arg0, %arg1, %c0_i32 : i32, i32, i32
  }
  func.func @transform_2(%arg0: i32, %arg1: i32) -> (i32, i32) {
    %c0_i32 = arith.constant 0 : i32
    %c0_i32_0 = arith.constant 0 : i32
    %c0_i32_1 = arith.constant 0 : i32
    return %c0_i32, %c0_i32_0 : i32, i32
  }
  func.func @transform_3(%arg0: i32, %arg1: i32) -> (i32, i32) {
    %c0_i32 = arith.constant 0 : i32
    %c0_i32_0 = arith.constant 0 : i32
    %c0_i32_1 = arith.constant 0 : i32
    return %c0_i32, %c0_i32_0 : i32, i32
  }
  func.func @transform_4(%arg0: i32, %arg1: i32) -> (i32, i32) {
    %c0_i32 = arith.constant 0 : i32
    %c0_i32_0 = arith.constant 0 : i32
    %c0_i32_1 = arith.constant 0 : i32
    return %c0_i32, %c0_i32_0 : i32, i32
  }
  func.func @transform_5(%arg0: i32, %arg1: i32) -> (i32, i32) {
    %c0_i32 = arith.constant 0 : i32
    %c0_i32_0 = arith.constant 0 : i32
    %c0_i32_1 = arith.constant 0 : i32
    return %c0_i32, %c0_i32_0 : i32, i32
  }
  func.func @transform_6(%arg0: i32, %arg1: i32) -> (i32, i32) {
    %c0_i32 = arith.constant 0 : i32
    %c0_i32_0 = arith.constant 0 : i32
    %c0_i32_1 = arith.constant 0 : i32
    return %c0_i32, %c0_i32_0 : i32, i32
  }
  func.func @transform_7(%arg0: i32, %arg1: i32) -> (i32, i32) {
    %c0_i32 = arith.constant 0 : i32
    %c0_i32_0 = arith.constant 0 : i32
    %c0_i32_1 = arith.constant 0 : i32
    return %c0_i32, %c0_i32_0 : i32, i32
  }
  func.func @transform_8(%arg0: i32, %arg1: i32) -> (i32, i32) {
    %c0_i32 = arith.constant 0 : i32
    %c0_i32_0 = arith.constant 0 : i32
    %c0_i32_1 = arith.constant 0 : i32
    return %c0_i32, %c0_i32_0 : i32, i32
  }
  func.func @transform_9(%arg0: i32, %arg1: i32) -> (i32, i32) {
    %c0_i32 = arith.constant 0 : i32
    %c0_i32_0 = arith.constant 0 : i32
    %c0_i32_1 = arith.constant 0 : i32
    return %c0_i32, %c0_i32_0 : i32, i32
  }
  func.func @transform_10(%arg0: i32, %arg1: i32) -> (i32, i32) {
    %c0_i32 = arith.constant 0 : i32
    %c0_i32_0 = arith.constant 0 : i32
    %c0_i32_1 = arith.constant 0 : i32
    return %c0_i32, %c0_i32_0 : i32, i32
  }
  func.func @transform_11(%arg0: i32, %arg1: i32) -> (i32, i32) {
    %c0_i32 = arith.constant 0 : i32
    %c0_i32_0 = arith.constant 0 : i32
    %c0_i32_1 = arith.constant 0 : i32
    return %c0_i32, %c0_i32_0 : i32, i32
  }
  func.func @transform_12(%arg0: i32, %arg1: i32) -> (i32, i32) {
    %c0_i32 = arith.constant 0 : i32
    %c0_i32_0 = arith.constant 0 : i32
    %c0_i32_1 = arith.constant 0 : i32
    return %c0_i32, %c0_i32_0 : i32, i32
  }
  func.func @transform_13(%arg0: i32, %arg1: i32) -> (i32, i32) {
    %c0_i32 = arith.constant 0 : i32
    %c0_i32_0 = arith.constant 0 : i32
    %c0_i32_1 = arith.constant 0 : i32
    return %c0_i32, %c0_i32_0 : i32, i32
  }
  func.func @transform_14(%arg0: i32, %arg1: i32) -> (i32, i32, i32) {
    %c0_i32 = arith.constant 0 : i32
    %c0_i32_0 = arith.constant 0 : i32
    %c0_i32_1 = arith.constant 0 : i32
    return %arg0, %c0_i32, %c0_i32_0 : i32, i32, i32
  }
}

</mosaic_0001>

<bundles_post_ra>
// kernel: tpu_custom_call.1
= control target key start
LH: loop header
LB: loop body
LE: loop exit
PB: predicated region body
PF: predicated region fallthrough
CT: control target
= control target key end

     0   :  { %s2737_s0 = inlined_call_operand.vmem [shape: f32[4], index: 0, kind: input, shape index: {}]   ;;  %s2738_s1 = inlined_call_operand.vmem [shape: f32[2,16,6], index: 1, kind: input, shape index: {}]   ;;  %s2739_s2 = inlined_call_operand.vmem [shape: f32[6,64], index: 2, kind: input, shape index: {}]   ;;  %s2740_s3 = inlined_call_operand.vmem [shape: f32[1,64], index: 3, kind: input, shape index: {}]   ;;  %s2741_s4 = inlined_call_operand.hbm [shape: f32[64,128], index: 4, kind: input, shape index: {}]   ;;  %s2742_s5 = inlined_call_operand.vmem [shape: f32[1,128], index: 5, kind: input, shape index: {}]   ;;  %s2743_s6 = inlined_call_operand.hbm [shape: f32[128,1024], index: 6, kind: input, shape index: {}]   ;;  %s2744_s7 = inlined_call_operand.vmem [shape: f32[1,1024], index: 7, kind: input, shape index: {}]   ;;  %s2745_s8 = inlined_call_operand.hbm [shape: f32[1024,256], index: 8, kind: input, shape index: {}]   ;;  %s2746_s9 = inlined_call_operand.vmem [shape: f32[1,256], index: 9, kind: input, shape index: {}]   ;;  %s2747_s10 = inlined_call_operand.hbm [shape: f32[256,128], index: 10, kind: input, shape index: {}]   ;;  %s2748_s11 = inlined_call_operand.vmem [shape: f32[1,128], index: 11, kind: input, shape index: {}]   ;;  %s2749_s12 = inlined_call_operand.hbm [shape: f32[128,128], index: 12, kind: input, shape index: {}]   ;;  %s2750_s13 = inlined_call_operand.vmem [shape: f32[1,128], index: 13, kind: input, shape index: {}]   ;;  %s2751_s14 = inlined_call_operand.hbm [shape: f32[2,1,128], index: 14, kind: output, shape index: {}]  }
   0x1   :  { %2762 = sst [smem:[#allocation28_spill]] %s2737_s0 }
   0x2   :  { %2763 = sst [smem:[#allocation29_spill]] %s2741_s4 }
   0x3   :  { %2764 = sst [smem:[#allocation30_spill]] %s2743_s6 }
   0x4   :  { %2765 = sst [smem:[#allocation31_spill]] %s2750_s13 }
   0x5   :  { %2766 = sst [smem:[#allocation32_spill]] %s2751_s14 }
   0x6   :  { %19 = vsyncpa [#allocation6], 0 }
   0x7   :  { %20 = vsyncpa [#allocation4], 0 }
   0x8   :  { %21 = vsyncpa [#allocation9], 0 }
   0x9   :  { %22 = vsyncpa [#allocation12], 0 }
   0xa   :  { %23 = vsyncpa [#allocation5], 0 }
   0xb   :  { %25 = vsyncpa [#allocation5 + $0x1], 0  ;;  %s2486_s29 = smov 0   ;;  %s2488_s30 = smov 0  }
   0xc   :  { %s2490_s15 = smov 0   ;;  %s2492_s16 = smov 0  }
   0xd   :  { %s2494_s17 = smov 0   ;;  %s2496_s18 = smov 0  }
   0xe LB: > { %2767 = sst [smem:[#allocation20_spill]] %s2377_s29  ;;  %s1984_s19 = sadd.s32 4294967295, %s2397_s18   ;;  %s2397_s18 = sphi %s2496_s18, %s31_s18   ;;  %s2393_s17 = sphi %s2494_s17, %s2792_s17   ;;  %s2389_s16 = sphi %s2492_s16, %s2791_s16   ;;  %s2385_s15 = sphi %s2490_s15, %s2790_s15   ;;  %s2381_s30 = sphi %s2488_s30, %s2794_s30   ;;  %s2377_s29 = sphi %s2486_s29, %s2793_s29  }
   0xf   : > { %2768 = sst [smem:[#allocation21_spill]] %s2385_s15  ;;  %s1985_s20 = sadd.s32 4294967294, %s2397_s18  }
  0x10   : > { %2769 = sst [smem:[#allocation22_spill]] %s2393_s17  ;;  %s43_s21 = sadd.s32 1, %s2393_s17 }
  0x11   : > { %2770 = sst [smem:[#allocation23_spill]] %s2397_s18  ;;  %s351_s22 = sadd.s32 1, %s2385_s15 }
  0x12   : > { %p45_p0 = scmp.ge.s32.totalorder %s43_s21, 2  ;;  %p361_p1 = scmp.ne.s32.totalorder %s2385_s15, %s2381_s30 }
  0x13   : > { %p362_p2 = scmp.eq.s32.totalorder %s1984_s19, 1  ;;  %p367_p3 = scmp.ne.s32.totalorder %s2381_s30, %s2377_s29 }
  0x14   : > { %s2796_s21 = smov (%p45_p0, %s43_s21), 0  ;;  %p368_p5 = scmp.eq.s32.totalorder %s1985_s20, 1 }
  0x15   : > { %2771 = sst [smem:[#allocation24_spill]] %s2796_s21  ;;  %p2526_p4 = por %p362_p2, %p361_p1 }
  0x16   : > { %s348_s24 = ssub.s32 %s2393_s17, %s2796_s21  ;;  %p1986_p6 = scmp.ge.s32.totalorder %s2397_s18, 1 }
  0x17   : > { %s2772_s23 = scalar_select %p2526_p4, 1, 0 }
  0x18   : > { %p349_p7 = scmp.eq.s32.totalorder %s348_s24, 0  ;;  %p2533_p8 = por %p368_p5, %p367_p3 }
  0x19   : > { %2773 = sst [smem:[#allocation25_spill]] %s2772_s23  ;;  %p375_p9 = scmp.lt.s32.totalorder %s2397_s18, 3 }
  0x1a   : > { %s2774_s25 = scalar_select %p2533_p8, 1, 0 }
  0x1b   : > { %s2539_s26 = scalar_select %p349_p7, %s2385_s15, %s351_s22  }
  0x1c   : > { %2775 = sst [smem:[#allocation26_spill]] %s2774_s25  ;;  %p2541_p10 = pnand %p1986_p6, %p375_p9 }
  0x1d   : > { %2776 = sst [smem:[#allocation27_spill]] %s2539_s26  ;;  %p2545_p11 = scmp.eq.s32.totalorder %s1984_s19, 0 }
  0x1e   : > { %s2779_s6 = sld [smem:[#allocation30_spill]]  ;;  %p2040_p12 = pneg %p2541_p10 }
  0x1f   : > { %s2399_s17 = smov [#allocation8]   ;;  %s2400_s19 = smov 1024  }
  0x20   : > { %s421_s22 = sshll.u32 %s2399_s17, 4  ;;  %p2556_p13 = pnand %p2545_p11, %p2040_p12  ;;  %s422_s22 = int_to_ptr.vmem [resolvable:$true] %s421_s22 }
  0x21   : > { %s2401_s15 = smov 64   ;;  %s2402_s25 = smov [#allocation11]  }
  0x22   : > { %s455_s17 = sshll.u32 %s2402_s25, 4  ;;  %s2403_s29 = smov 128   ;;  %s456_s17 = int_to_ptr.vmem [resolvable:$true] %s455_s17 }
  0x23   : > { %s2404_s18 = smov 8   ;;  %s2781_s0 = sld [smem:[#allocation28_spill]] }
  0x24   : > { %s419_s24 = sshll.u32 %s2779_s6, 4  ;;  %s453_s6 = sshll.u32 %s2747_s10, 4  ;;  %s420_s24 = int_to_ptr.hbm [resolvable:$true] %s419_s24  ;;  %s454_s6 = int_to_ptr.hbm [resolvable:$true] %s453_s6 }
  0x25   : > { %2049 = dma.hbm_to_vmem [thread:$0]  (!%p2556_p13), %s420_s24, 16384, %s422_s22, [#allocation9], %s2400_s19, %s2400_s19, %s2401_s15  }
  0x26   : > { %2055 = dma.hbm_to_vmem [thread:$0]  (!%p2556_p13), %s454_s6, 4096, %s456_s17, [#allocation12], %s2403_s29, %s2403_s29, %s2404_s18  }
  0x27   : > { %s2405_s15 = smov [#allocation3]   ;;  %s2782_s4 = sld [smem:[#allocation29_spill]] }
  0x28   : > { %s2406_s25 = smov [#allocation7]   ;;  %s436_s17 = sshll.u32 %s2745_s8, 4  ;;  %s437_s17 = int_to_ptr.hbm [resolvable:$true] %s436_s17 }
  0x29   : > { %s387_s14 = sshll.u32 %s2781_s0, 4  ;;  %s404_s21 = sshll.u32 %s2406_s25, 4  ;;  %s388_s14 = int_to_ptr.vmem [resolvable:$true] %s387_s14  ;;  %s405_s21 = int_to_ptr.vmem [resolvable:$true] %s404_s21 }
  0x2a   : > { %2043 = dma.vmem_to_smem (!%p2556_p13), %s388_s14, 16, %s2405_s15, [#allocation6]  }
  0x2b   : > { %s2407_s13 = smov [#allocation10]   ;;  %s2408_s14 = smov 256  }
  0x2c   : > { %s438_s23 = sshll.u32 %s2407_s13, 4  ;;  %s2409_s15 = smov 16   ;;  %s439_s23 = int_to_ptr.vmem [resolvable:$true] %s438_s23 }
  0x2d   : > { %s402_s19 = sshll.u32 %s2782_s4, 4  ;;  %s470_s25 = sshll.u32 %s2749_s12, 4  ;;  %s403_s19 = int_to_ptr.hbm [resolvable:$true] %s402_s19  ;;  %s471_s25 = int_to_ptr.hbm [resolvable:$true] %s470_s25 }
  0x2e   : > { %2046 = dma.hbm_to_vmem [thread:$0]  (!%p2556_p13), %s403_s19, 1024, %s405_s21, [#allocation4], %s2403_s29, %s2403_s29, %s2404_s18  }
  0x2f   : > { %2052 = dma.hbm_to_vmem [thread:$0]  (!%p2556_p13), %s437_s17, 32768, %s439_s23, [#allocation9], %s2408_s14, %s2408_s14, %s2409_s15  }
  0x30   : > { %s2410_s0 = smov [#allocation13]   ;;  %504 = sbr.rel (%p2541_p10) target bundleno = 992 (0x3e0), region = 76 }
  0x31   : > { %s472_s4 = sshll.u32 %s2410_s0, 4  ;;  %s473_s4 = int_to_ptr.vmem [resolvable:$true] %s472_s4 }
  0x32   : > { %2058 = dma.hbm_to_vmem [thread:$0]  (!%p2556_p13), %s471_s25, 2048, %s473_s4, [#allocation12], %s2403_s29, %s2403_s29, %s2404_s18  }
  0x35   : > { %2356 = dma.done.wait (%p2545_p11), [#allocation6], 16  }
  0x36   : > { %2358 = vsyncadd (%p2545_p11), [#allocation6], 4294967280 }
  0x37   : > { %2360 = dma.done.wait (%p2545_p11), [#allocation4], 1024  }
  0x38   : > { %2362 = vsyncadd (%p2545_p11), [#allocation4], 4294966272 }
  0x39   : > { %2364 = dma.done.wait (%p2545_p11), [#allocation9], 49152  }
  0x3a   : > { %2366 = vsyncadd (%p2545_p11), [#allocation9], 4294918144 }
  0x3b   : > { %2368 = dma.done.wait (%p2545_p11), [#allocation12], 6144  }
  0x3c   : > { %2370 = vsyncadd (%p2545_p11), [#allocation12], 4294961152 }
  0x3d   : > { %536 = sfence }
  0x3e   : > { %v596_v0 = vld [vmem:[%s2739_s2] sm:$0x3f]  ;;  %vm608_vm0 = vcmask 1045504   ;;  %p581_p0 = scmp.lt.s32.totalorder %s2389_s16, 1  ;;  %v649_v1 = vld [vmem:[#allocation7 + $0x38] sm:$0xff]  ;;  %v648_v2 = vld [vmem:[#allocation7 + $0x30] sm:$0xff] }
  0x3f   : > { %2006 = vmatpush.msk.msra.mxu1 %vm608_vm0, %v596_v0  ;;  %v647_v3 = vld [vmem:[#allocation7 + $0x28] sm:$0xff]  ;;  %vm601_vm1 = vcmask 48128   ;;  %v646_v4 = vld [vmem:[#allocation7 + $0x20] sm:$0xff]  ;;  %v645_v6 = vld [vmem:[#allocation7 + $0x18] sm:$0xff]  ;;  %s2613_s19 = sld [smem:[#allocation3]]  ;;  %vm654_vm3 = vcmask 523264  }
  0x40   : > { %s582_s29 = scalar_select %p581_p0, %s2389_s16, 1  ;;  %v644_v8 = vld [vmem:[#allocation7 + $0x10] sm:$0xff]  ;;  %v643_v9 = vld [vmem:[#allocation7 + $0x8] sm:$0xff]  ;;  %v642_v10 = vld [vmem:[#allocation7] sm:$0xff]  ;;  %vm1098_vm7 = vcmask 1040384   ;;  %vm1100_vm8 = vcmask 1042434  }
  0x41   : > { %669 = vmatpush.msrb.mxu1 %v649_v1  ;;  %v816_v11 = vld [vmem:[#allocation8 + $0x3c0] sm:$0xff]  ;;  %v817_v12 = vld [vmem:[#allocation8 + $0x3c8] sm:$0xff]  ;;  %v818_v13 = vld [vmem:[#allocation8 + $0x3d0] sm:$0xff]  ;;  %s2621_s6 = sld [smem:[#allocation3 + $0x1]]  ;;  %vm1102_vm9 = vcmask 1041408   ;;  %vm1106_vm10 = vcmask 1046534  }
  0x42   : > { %s2013_s18 = sshll.u32 %s582_s29, 4  ;;  %842 = vmatpush.msra.mxu2 %v816_v11  ;;  %865 = vmatpush.msra.mxu3 %v817_v12  ;;  %v819_v14 = vld [vmem:[#allocation8 + $0x3d8] sm:$0xff]  ;;  %v808_v15 = vld [vmem:[#allocation8 + $0x380] sm:$0xff]  ;;  %v809_v16 = vld [vmem:[#allocation8 + $0x388] sm:$0xff]  ;;  %vm1104_vm11 = vcmask 1044484   ;;  %vm1108_vm12 = vcmask 1045508  }
  0x43   : > { %670 = vmatpush.msrb.mxu1 %v648_v2  ;;  %s588_s28 = scalar_lea.vmem %s2738_s1, %s2013_s18  ;;  %888 = vmatpush.msra.mxu0 %v818_v13  ;;  %v810_v17 = vld [vmem:[#allocation8 + $0x390] sm:$0xff]  ;;  %v811_v18 = vld [vmem:[#allocation8 + $0x398] sm:$0xff]  ;;  %v800_v19 = vld [vmem:[#allocation8 + $0x340] sm:$0xff]  ;;  %vm1110_vm13 = vcmask 1043456   ;;  %s2691_s22 = sld [smem:[#allocation3 + $0x2]] }
  0x44   : > { %v594_v5 = vld [vmem:[%s588_s28] sm:$0xff]  ;;  %v595_v7 = vld [vmem:[%s588_s28 + $0x8] sm:$0xff]  ;;  %843 = vmatpush.msra.mxu2 %v808_v15  ;;  %866 = vmatpush.msra.mxu3 %v809_v16  ;;  %v802_v21 = vld [vmem:[#allocation8 + $0x350] sm:$0xff]  ;;  %s2005_s25 = sld [smem:[#allocation3 + $0x3]]  ;;  %s578_s29 = sand.u32 1, %s2381_s30  }
  0x45   : > { %671 = vmatpush.msrb.mxu1 %v647_v3  ;;  %v801_v20 = vld [vmem:[#allocation8 + $0x348] sm:$0xff]  ;;  %v803_v22 = vld [vmem:[#allocation8 + $0x358] sm:$0xff]  ;;  %889 = vmatpush.msra.mxu0 %v810_v17  ;;  %v792_v23 = vld [vmem:[#allocation8 + $0x300] sm:$0xff]  ;;  %v637_v53 = vstv %s2613_s19  ;;  %s2783_s27 = sld [smem:[#allocation32_spill]]  ;;  %s579_s17 = scalar_lea.vmem [#allocation14], %s578_s29 }
  0x46   : > { %2007 = vmatmul.msk.f32.vlgmr.msra.gmra.mxu1 %vm601_vm1, %v594_v5  ;;  %v793_v24 = vld [vmem:[#allocation8 + $0x308] sm:$0xff]  ;;  %844 = vmatpush.msra.mxu2 %v800_v19  ;;  %v794_v25 = vld [vmem:[#allocation8 + $0x310] sm:$0xff]  ;;  %v795_v26 = vld [vmem:[#allocation8 + $0x318] sm:$0xff]  ;;  %s1851_s13 = sshll.u32 %s579_s17, 4  ;;  %s1841_s14 = scalar_lea.sflag [#allocation5], %s578_s29  ;;  %s1852_s13 = int_to_ptr.vmem [resolvable:$true] %s1851_s13 }
  0x47   : > { %672 = vmatpush.msrb.mxu1 %v646_v4  ;;  %867 = vmatpush.msra.mxu3 %v801_v20  ;;  %v784_v27 = vld [vmem:[#allocation8 + $0x2c0] sm:$0xff]  ;;  %v785_v28 = vld [vmem:[#allocation8 + $0x2c8] sm:$0xff]  ;;  %v786_v29 = vld [vmem:[#allocation8 + $0x2d0] sm:$0xff] }
  0x48   : > { %890 = vmatpush.msra.mxu0 %v802_v21  ;;  %845 = vmatpush.msra.mxu2 %v792_v23  ;;  %v787_v30 = vld [vmem:[#allocation8 + $0x2d8] sm:$0xff]  ;;  %v776_v31 = vld [vmem:[#allocation8 + $0x280] sm:$0xff]  ;;  %v777_v32 = vld [vmem:[#allocation8 + $0x288] sm:$0xff] }
  0x49   : > { %673 = vmatpush.msrb.mxu1 %v645_v6  ;;  %868 = vmatpush.msra.mxu3 %v793_v24  ;;  %v778_v33 = vld [vmem:[#allocation8 + $0x290] sm:$0xff]  ;;  %v779_v34 = vld [vmem:[#allocation8 + $0x298] sm:$0xff]  ;;  %v768_v35 = vld [vmem:[#allocation8 + $0x240] sm:$0xff] }
  0x4a   : > { %891 = vmatpush.msra.mxu0 %v794_v25  ;;  %846 = vmatpush.msra.mxu2 %v784_v27  ;;  %v769_v36 = vld [vmem:[#allocation8 + $0x248] sm:$0xff]  ;;  %v770_v37 = vld [vmem:[#allocation8 + $0x250] sm:$0xff]  ;;  %v771_v38 = vld [vmem:[#allocation8 + $0x258] sm:$0xff] }
  0x4b   : > { %674 = vmatpush.msrb.mxu1 %v644_v8  ;;  %869 = vmatpush.msra.mxu3 %v785_v28  ;;  %v760_v39 = vld [vmem:[#allocation8 + $0x200] sm:$0xff]  ;;  %v761_v40 = vld [vmem:[#allocation8 + $0x208] sm:$0xff]  ;;  %v762_v41 = vld [vmem:[#allocation8 + $0x210] sm:$0xff]  ;;  %s1849_s19 = scalar_lea.hbm %s2783_s27, %s2389_s16 }
  0x4c   : > { %892 = vmatpush.msra.mxu0 %v786_v29  ;;  %847 = vmatpush.msra.mxu2 %v776_v31  ;;  %v763_v42 = vld [vmem:[#allocation8 + $0x218] sm:$0xff]  ;;  %v752_v43 = vld [vmem:[#allocation8 + $0x1c0] sm:$0xff]  ;;  %v753_v44 = vld [vmem:[#allocation8 + $0x1c8] sm:$0xff]  ;;  %s1853_s23 = sshll.u32 %s1849_s19, 4  ;;  %s1854_s23 = int_to_ptr.hbm [resolvable:$true] %s1853_s23 }
  0x4d   : > { %675 = vmatpush.msrb.mxu1 %v643_v9  ;;  %870 = vmatpush.msra.mxu3 %v777_v32  ;;  %v2136_v45 = vld [vmem:[%s2740_s3] ss:$0 sm:$0xff]  ;;  %v754_v46 = vld [vmem:[#allocation8 + $0x1d0] sm:$0xff]  ;;  %v755_v47 = vld [vmem:[#allocation8 + $0x1d8] sm:$0xff]  ;;  %s2317_s15 = sshra.s32 %s1854_s23, 4  ;;  %s2318_s15 = int_to_ptr.hbm [resolvable:$true] %s2317_s15 }
  0x4e   : > { %2008 = vmatmul.msk.f32.gmra.mxu1 %vm601_vm1, %v595_v7  ;;  %893 = vmatpush.msra.mxu0 %v778_v33  ;;  %v744_v48 = vld [vmem:[#allocation8 + $0x180] sm:$0xff]  ;;  %v745_v49 = vld [vmem:[#allocation8 + $0x188] sm:$0xff]  ;;  %v746_v50 = vld [vmem:[#allocation8 + $0x190] sm:$0xff]  ;;  %s2319_s24 = scalar_lea.hbm %s2318_s15, 1  ;;  %p2324_p5 = scmp.lt.s32.totalorder %s2318_s15, %s2783_s27 }
  0x4f   : > { %676 = vmatpush.msrb.mxu1 %v642_v10  ;;  %848 = vmatpush.msra.mxu2 %v768_v35  ;;  %v747_v51 = vld [vmem:[#allocation8 + $0x198] sm:$0xff]  ;;  %v736_v54 = vld [vmem:[#allocation8 + $0x140] sm:$0xff]  ;;  %v737_v55 = vld [vmem:[#allocation8 + $0x148] sm:$0xff]  ;;  %p2320_p1 = scmp.ne.s32.totalorder %s2318_s15, %s2319_s24 }
  0x50   : > { %871 = vmatpush.msra.mxu3 %v769_v36  ;;  %894 = vmatpush.msra.mxu0 %v770_v37  ;;  %v738_v57 = vld [vmem:[#allocation8 + $0x150] sm:$0xff]  ;;  %v739_v58 = vld [vmem:[#allocation8 + $0x158] sm:$0xff]  ;;  %v728_v59 = vld [vmem:[#allocation8 + $0x100] sm:$0xff] }
  0x51   : > { %911 = vmatpush.msra.mxu1 %v819_v14  ;;  %849 = vmatpush.msra.mxu2 %v760_v39  ;;  %v729_v60 = vld [vmem:[#allocation8 + $0x108] sm:$0xff]  ;;  %v730_v62 = vld [vmem:[#allocation8 + $0x110] sm:$0xff]  ;;  %v731_v63 = vld [vmem:[#allocation8 + $0x118] sm:$0xff]  ;;  %p2321_p2 = pnand %p2320_p1, %p2526_p4 }
  0x52   : > { %872 = vmatpush.msra.mxu3 %v761_v40  ;;  %895 = vmatpush.msra.mxu0 %v762_v41  ;;  %v720_v0 = vld [vmem:[#allocation8 + $0xc0] sm:$0xff]  ;;  %v721_v2 = vld [vmem:[#allocation8 + $0xc8] sm:$0xff]  ;;  %v722_v3 = vld [vmem:[#allocation8 + $0xd0] sm:$0xff] }
  0x53   : > { %912 = vmatpush.msra.mxu1 %v811_v18  ;;  %850 = vmatpush.msra.mxu2 %v752_v43  ;;  %v723_v4 = vld [vmem:[#allocation8 + $0xd8] sm:$0xff]  ;;  %v712_v5 = vld [vmem:[#allocation8 + $0x80] sm:$0xff]  ;;  %v713_v6 = vld [vmem:[#allocation8 + $0x88] sm:$0xff]  ;;  %p2322_p3 = pneg %p2321_p2 }
  0x54   : > { %873 = vmatpush.msra.mxu3 %v753_v44  ;;  %896 = vmatpush.msra.mxu0 %v754_v46  ;;  %v714_v7 = vld [vmem:[#allocation8 + $0x90] sm:$0xff]  ;;  %v715_v9 = vld [vmem:[#allocation8 + $0x98] sm:$0xff]  ;;  %v704_v10 = vld [vmem:[#allocation8 + $0x40] sm:$0xff] }
  0x55   : > { %913 = vmatpush.msra.mxu1 %v803_v22  ;;  %851 = vmatpush.msra.mxu2 %v744_v48  ;;  %v705_v12 = vld [vmem:[#allocation8 + $0x48] sm:$0xff]  ;;  %v706_v13 = vld [vmem:[#allocation8 + $0x50] sm:$0xff]  ;;  %v707_v14 = vld [vmem:[#allocation8 + $0x58] sm:$0xff] }
  0x56   : > { %874 = vmatpush.msra.mxu3 %v745_v49  ;;  %897 = vmatpush.msra.mxu0 %v746_v50  ;;  %v696_v15 = vld [vmem:[#allocation8] sm:$0xff]  ;;  %v697_v17 = vld [vmem:[#allocation8 + $0x8] sm:$0xff]  ;;  %v698_v18 = vld [vmem:[#allocation8 + $0x10] sm:$0xff] }
  0x57   : > { %914 = vmatpush.msra.mxu1 %v795_v26  ;;  %852 = vmatpush.msra.mxu2 %v736_v54  ;;  %v699_v19 = vld [vmem:[#allocation8 + $0x18] sm:$0xff]  ;;  %v820_v21 = vld [vmem:[#allocation8 + $0x3e0] sm:$0xff]  ;;  %v821_v22 = vld [vmem:[#allocation8 + $0x3e8] sm:$0xff] }
  0x58   : > { %875 = vmatpush.msra.mxu3 %v737_v55  ;;  %898 = vmatpush.msra.mxu0 %v738_v57  ;;  %v822_v23 = vld [vmem:[#allocation8 + $0x3f0] sm:$0xff]  ;;  %v823_v24 = vld [vmem:[#allocation8 + $0x3f8] sm:$0xff]  ;;  %v812_v25 = vld [vmem:[#allocation8 + $0x3a0] sm:$0xff] }
  0x59   : > { %915 = vmatpush.msra.mxu1 %v787_v30  ;;  %853 = vmatpush.msra.mxu2 %v728_v59  ;;  %v813_v26 = vld [vmem:[#allocation8 + $0x3a8] sm:$0xff]  ;;  %v814_v27 = vld [vmem:[#allocation8 + $0x3b0] sm:$0xff]  ;;  %v815_v28 = vld [vmem:[#allocation8 + $0x3b8] sm:$0xff] }
  0x5a   : > { %876 = vmatpush.msra.mxu3 %v729_v60  ;;  %899 = vmatpush.msra.mxu0 %v730_v62  ;;  %v804_v29 = vld [vmem:[#allocation8 + $0x360] sm:$0xff]  ;;  %v805_v30 = vld [vmem:[#allocation8 + $0x368] sm:$0xff]  ;;  %v806_v31 = vld [vmem:[#allocation8 + $0x370] sm:$0xff] }
  0x5b   : > { %916 = vmatpush.msra.mxu1 %v779_v34  ;;  %854 = vmatpush.msra.mxu2 %v720_v0  ;;  %v807_v32 = vld [vmem:[#allocation8 + $0x378] sm:$0xff]  ;;  %v796_v33 = vld [vmem:[#allocation8 + $0x320] sm:$0xff]  ;;  %v797_v34 = vld [vmem:[#allocation8 + $0x328] sm:$0xff] }
  0x5c   : > { %877 = vmatpush.msra.mxu3 %v721_v2  ;;  %900 = vmatpush.msra.mxu0 %v722_v3  ;;  %v798_v35 = vld [vmem:[#allocation8 + $0x330] sm:$0xff]  ;;  %v799_v36 = vld [vmem:[#allocation8 + $0x338] sm:$0xff]  ;;  %v788_v37 = vld [vmem:[#allocation8 + $0x2e0] sm:$0xff] }
  0x5d   : > { %917 = vmatpush.msra.mxu1 %v771_v38  ;;  %855 = vmatpush.msra.mxu2 %v712_v5  ;;  %v789_v38 = vld [vmem:[#allocation8 + $0x2e8] sm:$0xff]  ;;  %v790_v39 = vld [vmem:[#allocation8 + $0x2f0] sm:$0xff]  ;;  %v791_v40 = vld [vmem:[#allocation8 + $0x2f8] sm:$0xff] }
  0x5e   : > { %878 = vmatpush.msra.mxu3 %v713_v6  ;;  %901 = vmatpush.msra.mxu0 %v714_v7  ;;  %v780_v41 = vld [vmem:[#allocation8 + $0x2a0] sm:$0xff]  ;;  %v782_v43 = vld [vmem:[#allocation8 + $0x2b0] sm:$0xff]  ;;  %v783_v44 = vld [vmem:[#allocation8 + $0x2b8] sm:$0xff] }
  0x5f   : > { %918 = vmatpush.msra.mxu1 %v763_v42  ;;  %856 = vmatpush.msra.mxu2 %v704_v10  ;;  %v781_v42 = vld [vmem:[#allocation8 + $0x2a8] sm:$0xff]  ;;  %v775_v48 = vld [vmem:[#allocation8 + $0x278] sm:$0xff]  ;;  %v764_v49 = vld [vmem:[#allocation8 + $0x220] sm:$0xff] }
  0x60   : > { %879 = vmatpush.msra.mxu3 %v705_v12  ;;  %902 = vmatpush.msra.mxu0 %v706_v13  ;;  %v773_v46 = vld [vmem:[#allocation8 + $0x268] sm:$0xff]  ;;  %v758_v55 = vld [vmem:[#allocation8 + $0x1f0] sm:$0xff]  ;;  %v748_v57 = vld [vmem:[#allocation8 + $0x1a0] sm:$0xff] }
  0x61   : > { %919 = vmatpush.msra.mxu1 %v755_v47  ;;  %857 = vmatpush.msra.mxu2 %v696_v15  ;;  %v774_v47 = vld [vmem:[#allocation8 + $0x270] sm:$0xff]  ;;  %v765_v50 = vld [vmem:[#allocation8 + $0x228] sm:$0xff]  ;;  %v751_v60 = vld [vmem:[#allocation8 + $0x1b8] sm:$0xff] }
  0x62   : > { %880 = vmatpush.msra.mxu3 %v697_v17  ;;  %903 = vmatpush.msra.mxu0 %v698_v18  ;;  %v757_v54 = vld [vmem:[#allocation8 + $0x1e8] sm:$0xff]  ;;  %v750_v59 = vld [vmem:[#allocation8 + $0x1b0] sm:$0xff]  ;;  %v743_v0 = vld [vmem:[#allocation8 + $0x178] sm:$0xff] }
  0x63   : > { %920 = vmatpush.msra.mxu1 %v747_v51  ;;  %934 = vmatpush.msrb.mxu2 %v820_v21  ;;  %v766_v51 = vld [vmem:[#allocation8 + $0x230] sm:$0xff]  ;;  %v741_v62 = vld [vmem:[#allocation8 + $0x168] sm:$0xff]  ;;  %v724_v5 = vld [vmem:[#allocation8 + $0xe0] sm:$0xff] }
  0x64   : > { %957 = vmatpush.msrb.mxu3 %v821_v22  ;;  %980 = vmatpush.msrb.mxu0 %v822_v23  ;;  %v733_v2 = vld [vmem:[#allocation8 + $0x128] sm:$0xff]  ;;  %v734_v3 = vld [vmem:[#allocation8 + $0x130] sm:$0xff]  ;;  %v719_v12 = vld [vmem:[#allocation8 + $0xb8] sm:$0xff]  ;;  %v686_v23 = vstv %s2621_s6  ;;  %s2785_s6 = sld [smem:[#allocation31_spill]] }
  0x65   : > { %921 = vmatpush.msra.mxu1 %v739_v58  ;;  %935 = vmatpush.msrb.mxu2 %v812_v25  ;;  %v749_v58 = vld [vmem:[#allocation8 + $0x1a8] sm:$0xff]  ;;  %v726_v7 = vld [vmem:[#allocation8 + $0xf0] sm:$0xff]  ;;  %v708_v13 = vld [vmem:[#allocation8 + $0x60] sm:$0xff] }
  0x66   : > { %958 = vmatpush.msrb.mxu3 %v813_v26  ;;  %981 = vmatpush.msrb.mxu0 %v814_v27  ;;  %v725_v6 = vld [vmem:[#allocation8 + $0xe8] sm:$0xff]  ;;  %v710_v15 = vld [vmem:[#allocation8 + $0x70] sm:$0xff]  ;;  %v700_v17 = vld [vmem:[#allocation8 + $0x20] sm:$0xff] }
  0x67   : > { %922 = vmatpush.msra.mxu1 %v731_v63  ;;  %936 = vmatpush.msrb.mxu2 %v804_v29  ;;  %v742_v63 = vld [vmem:[#allocation8 + $0x170] sm:$0xff]  ;;  %v717_v10 = vld [vmem:[#allocation8 + $0xa8] sm:$0xff]  ;;  %v2137_v21 = vld [vmem:[%s2742_s5] ss:$0 sm:$0xff] }
  0x68   : > { %959 = vmatpush.msrb.mxu3 %v805_v30  ;;  %982 = vmatpush.msrb.mxu0 %v806_v31  ;;  %v701_v18 = vld [vmem:[#allocation8 + $0x28] sm:$0xff]  ;;  %v1149_v27 = vld [vmem:[#allocation10 + $0xf0] sm:$0xff]  ;;  %v1147_v31 = vld [vmem:[#allocation10 + $0xe0] sm:$0xff] }
  0x69   : > { %923 = vmatpush.msra.mxu1 %v723_v4  ;;  %937 = vmatpush.msrb.mxu2 %v796_v33  ;;  %v735_v4 = vld [vmem:[#allocation8 + $0x138] sm:$0xff]  ;;  %v1213_v29 = vld [vmem:[#allocation10 + $0x2f0] sm:$0xff] }
  0x6a   : > { %960 = vmatpush.msrb.mxu3 %v797_v34  ;;  %983 = vmatpush.msrb.mxu0 %v798_v35  ;;  %v1245_v30 = vld [vmem:[#allocation10 + $0x3f0] sm:$0xff]  ;;  %v1211_v34 = vld [vmem:[#allocation10 + $0x2e0] sm:$0xff] }
  0x6b   : > { %924 = vmatpush.msra.mxu1 %v715_v9  ;;  %938 = vmatpush.msrb.mxu2 %v788_v37  ;;  %v716_v9 = vld [vmem:[#allocation8 + $0xa0] sm:$0xff]  ;;  %v1145_v37 = vld [vmem:[#allocation10 + $0xd0] sm:$0xff] }
  0x6c   : > { %961 = vmatpush.msrb.mxu3 %v789_v38  ;;  %984 = vmatpush.msrb.mxu0 %v790_v39  ;;  %v1243_v35 = vld [vmem:[#allocation10 + $0x3e0] sm:$0xff]  ;;  %v1177_v38 = vld [vmem:[#allocation10 + $0x1d0] sm:$0xff] }
  0x6d   : > { %925 = vmatpush.msra.mxu1 %v707_v14  ;;  %939 = vmatpush.msrb.mxu2 %v780_v41  ;;  %v709_v14 = vld [vmem:[#allocation8 + $0x68] sm:$0xff]  ;;  %v1209_v39 = vld [vmem:[#allocation10 + $0x2d0] sm:$0xff] }
  0x6e   : > { %962 = vmatpush.msrb.mxu3 %v781_v42  ;;  %985 = vmatpush.msrb.mxu0 %v782_v43  ;;  %v1143_v43 = vld [vmem:[#allocation10 + $0xc0] sm:$0xff] }
  0x6f   : > { %926 = vmatpush.msra.mxu1 %v699_v19  ;;  %v702_v19 = vld [vmem:[#allocation8 + $0x30] sm:$0xff] }
  0x70   : > { %963 = vmatpush.msrb.mxu3 %v773_v46  ;;  %986 = vmatpush.msrb.mxu0 %v774_v47  ;;  %v1239_v46 = vld [vmem:[#allocation10 + $0x3c0] sm:$0xff]  ;;  %v1141_v47 = vld [vmem:[#allocation10 + $0xb0] sm:$0xff] }
  0x72   : > { %964 = vmatpush.msrb.mxu3 %v765_v50  ;;  %987 = vmatpush.msrb.mxu0 %v766_v51  ;;  %v1237_v50 = vld [vmem:[#allocation10 + $0x3b0] sm:$0xff]  ;;  %v1139_v51 = vld [vmem:[#allocation10 + $0xa0] sm:$0xff] }
  0x74   : > { %965 = vmatpush.msrb.mxu3 %v757_v54  ;;  %988 = vmatpush.msrb.mxu0 %v758_v55  ;;  %v1235_v54 = vld [vmem:[#allocation10 + $0x3a0] sm:$0xff]  ;;  %v1137_v55 = vld [vmem:[#allocation10 + $0x90] sm:$0xff] }
  0x76   : > { %966 = vmatpush.msrb.mxu3 %v749_v58  ;;  %989 = vmatpush.msrb.mxu0 %v750_v59  ;;  %v1233_v58 = vld [vmem:[#allocation10 + $0x390] sm:$0xff]  ;;  %v1135_v59 = vld [vmem:[#allocation10 + $0x80] sm:$0xff] }
  0x78   : > { %967 = vmatpush.msrb.mxu3 %v741_v62  ;;  %990 = vmatpush.msrb.mxu0 %v742_v63  ;;  %v1231_v62 = vld [vmem:[#allocation10 + $0x380] sm:$0xff]  ;;  %v1133_v63 = vld [vmem:[#allocation10 + $0x70] sm:$0xff] }
  0x7a   : > { %968 = vmatpush.msrb.mxu3 %v733_v2  ;;  %991 = vmatpush.msrb.mxu0 %v734_v3  ;;  %v1229_v2 = vld [vmem:[#allocation10 + $0x370] sm:$0xff]  ;;  %v1131_v3 = vld [vmem:[#allocation10 + $0x60] sm:$0xff] }
  0x7c   : > { %969 = vmatpush.msrb.mxu3 %v725_v6  ;;  %992 = vmatpush.msrb.mxu0 %v726_v7  ;;  %v1227_v6 = vld [vmem:[#allocation10 + $0x360] sm:$0xff]  ;;  %v1129_v7 = vld [vmem:[#allocation10 + $0x50] sm:$0xff] }
  0x7e   : > { %970 = vmatpush.msrb.mxu3 %v717_v10  ;;  %v1225_v10 = vld [vmem:[#allocation10 + $0x350] sm:$0xff] }
  0x80   : > { %971 = vmatpush.msrb.mxu3 %v709_v14  ;;  %v1223_v14 = vld [vmem:[#allocation10 + $0x340] sm:$0xff] }
  0x82   : > { %972 = vmatpush.msrb.mxu3 %v701_v18  ;;  %v1221_v18 = vld [vmem:[#allocation10 + $0x330] sm:$0xff] }
  0xc3   : > { %v629_v52 = vpop.f32.mrf.mxu1 }
  0xc4   : > { %v630_v56 = vadd.f32 %v2136_v45, %v629_v52  ;;  %v767_v52 = vld [vmem:[#allocation8 + $0x238] sm:$0xff] }
  0xc6   : > { %vm635_vm2 = vcmp.gt.f32.partialorder %v630_v56, 0.0  ;;  %v638_v61 = vmul.f32 %v637_v53, %v630_v56 }
  0xc8   : > { %v640_v1 = vsel %vm635_vm2, %v630_v56, %v638_v61  ;;  %v759_v56 = vld [vmem:[#allocation8 + $0x1f8] sm:$0xff]  ;;  %v740_v61 = vld [vmem:[#allocation8 + $0x160] sm:$0xff] }
  0xc9   : > { %2009 = vmatmul.msk.f32.vlgmr.msrb.gmra.mxu1 %vm654_vm3, %v640_v1  ;;  %v732_v1 = vld [vmem:[#allocation8 + $0x120] sm:$0xff] }
  0xca   : > { %1003 = vmatpush.msrb.mxu1 %v823_v24 }
  0xcb   : > { %v632_v8 = vpop.f32.mrf.mxu1 }
  0xcc   : > { %v633_v11 = vadd.f32 %v2136_v45, %v632_v8  ;;  %1004 = vmatpush.msrb.mxu1 %v815_v28  ;;  %v772_v45 = vld [vmem:[#allocation8 + $0x260] sm:$0xff]  ;;  %v727_v8 = vld [vmem:[#allocation8 + $0xf8] sm:$0xff]  ;;  %v1181_v28 = vld [vmem:[#allocation10 + $0x1f0] sm:$0xff] }
  0xcd   : > { %940 = vmatpush.msrb.mxu2 %v772_v45  ;;  %v1207_v45 = vld [vmem:[#allocation10 + $0x2c0] sm:$0xff] }
  0xce   : > { %v639_v16 = vmul.f32 %v637_v53, %v633_v11  ;;  %vm636_vm4 = vcmp.gt.f32.partialorder %v633_v11, 0.0  ;;  %1005 = vmatpush.msrb.mxu1 %v807_v32  ;;  %v756_v53 = vld [vmem:[#allocation8 + $0x1e0] sm:$0xff] }
  0xcf   : > { %941 = vmatpush.msrb.mxu2 %v764_v49  ;;  %v1179_v32 = vld [vmem:[#allocation10 + $0x1e0] sm:$0xff]  ;;  %v1205_v49 = vld [vmem:[#allocation10 + $0x2b0] sm:$0xff] }
  0xd0   : > { %v641_v20 = vsel %vm636_vm4, %v633_v11, %v639_v16  ;;  %1006 = vmatpush.msrb.mxu1 %v799_v36  ;;  %v718_v11 = vld [vmem:[#allocation8 + $0xb0] sm:$0xff]  ;;  %v711_v16 = vld [vmem:[#allocation8 + $0x78] sm:$0xff] }
  0xd1   : > { %2010 = vmatmul.msk.f32.gmra.mxu1 %vm654_vm3, %v641_v20  ;;  %942 = vmatpush.msrb.mxu2 %v756_v53  ;;  %v703_v20 = vld [vmem:[#allocation8 + $0x38] sm:$0xff]  ;;  %v1203_v53 = vld [vmem:[#allocation10 + $0x2a0] sm:$0xff] }
  0xd2   : > { %1007 = vmatpush.msrb.mxu1 %v791_v40  ;;  %993 = vmatpush.msrb.mxu0 %v718_v11  ;;  %v1241_v40 = vld [vmem:[#allocation10 + $0x3d0] sm:$0xff]  ;;  %v1127_v11 = vld [vmem:[#allocation10 + $0x40] sm:$0xff] }
  0xd3   : > { %943 = vmatpush.msrb.mxu2 %v748_v57  ;;  %v1201_v57 = vld [vmem:[#allocation10 + $0x290] sm:$0xff] }
  0xd4   : > { %1008 = vmatpush.msrb.mxu1 %v783_v44  ;;  %994 = vmatpush.msrb.mxu0 %v710_v15  ;;  %v1175_v44 = vld [vmem:[#allocation10 + $0x1c0] sm:$0xff]  ;;  %v1125_v15 = vld [vmem:[#allocation10 + $0x30] sm:$0xff] }
  0xd5   : > { %944 = vmatpush.msrb.mxu2 %v740_v61  ;;  %v1199_v61 = vld [vmem:[#allocation10 + $0x280] sm:$0xff] }
  0xd6   : > { %1009 = vmatpush.msrb.mxu1 %v775_v48  ;;  %995 = vmatpush.msrb.mxu0 %v702_v19  ;;  %v1173_v48 = vld [vmem:[#allocation10 + $0x1b0] sm:$0xff]  ;;  %v1123_v19 = vld [vmem:[#allocation10 + $0x20] sm:$0xff] }
  0xd7   : > { %945 = vmatpush.msrb.mxu2 %v732_v1  ;;  %v1197_v1 = vld [vmem:[#allocation10 + $0x270] sm:$0xff] }
  0xd8   : > { %1010 = vmatpush.msrb.mxu1 %v767_v52  ;;  %v1171_v52 = vld [vmem:[#allocation10 + $0x1a0] sm:$0xff] }
  0xd9   : > { %946 = vmatpush.msrb.mxu2 %v724_v5  ;;  %v1195_v5 = vld [vmem:[#allocation10 + $0x260] sm:$0xff] }
  0xda   : > { %1011 = vmatpush.msrb.mxu1 %v759_v56  ;;  %v1169_v56 = vld [vmem:[#allocation10 + $0x190] sm:$0xff] }
  0xdb   : > { %947 = vmatpush.msrb.mxu2 %v716_v9  ;;  %v1193_v9 = vld [vmem:[#allocation10 + $0x250] sm:$0xff] }
  0xdc   : > { %1012 = vmatpush.msrb.mxu1 %v751_v60  ;;  %v1167_v60 = vld [vmem:[#allocation10 + $0x180] sm:$0xff] }
  0xdd   : > { %948 = vmatpush.msrb.mxu2 %v708_v13  ;;  %v1191_v13 = vld [vmem:[#allocation10 + $0x240] sm:$0xff] }
  0xde   : > { %1013 = vmatpush.msrb.mxu1 %v743_v0  ;;  %v1165_v0 = vld [vmem:[#allocation10 + $0x170] sm:$0xff] }
  0xdf   : > { %949 = vmatpush.msrb.mxu2 %v700_v17  ;;  %v1189_v17 = vld [vmem:[#allocation10 + $0x230] sm:$0xff] }
  0xe0   : > { %1014 = vmatpush.msrb.mxu1 %v735_v4  ;;  %v1163_v4 = vld [vmem:[#allocation10 + $0x160] sm:$0xff] }
  0xe2   : > { %1015 = vmatpush.msrb.mxu1 %v727_v8  ;;  %v1161_v8 = vld [vmem:[#allocation10 + $0x150] sm:$0xff] }
  0xe4   : > { %1016 = vmatpush.msrb.mxu1 %v719_v12  ;;  %v1159_v12 = vld [vmem:[#allocation10 + $0x140] sm:$0xff] }
  0xe6   : > { %1017 = vmatpush.msrb.mxu1 %v711_v16  ;;  %v1157_v16 = vld [vmem:[#allocation10 + $0x130] sm:$0xff] }
  0xe8   : > { %1018 = vmatpush.msrb.mxu1 %v703_v20  ;;  %v1155_v20 = vld [vmem:[#allocation10 + $0x120] sm:$0xff] }
 0x146   : > { %v678_v22 = vpop.f32.mrf.mxu1 }
 0x147   : > { %v679_v24 = vadd.f32 %v2137_v21, %v678_v22  ;;  %v1219_v22 = vld [vmem:[#allocation10 + $0x320] sm:$0xff] }
 0x149   : > { %vm684_vm5 = vcmp.gt.f32.partialorder %v679_v24, 0.0  ;;  %v687_v25 = vmul.f32 %v686_v23, %v679_v24 }
 0x14b   : > { %v689_v26 = vsel %vm684_vm5, %v679_v24, %v687_v25  ;;  %v1153_v24 = vld [vmem:[#allocation10 + $0x110] sm:$0xff] }
 0x14c   : > { %858 = vmatmul.f32.vlgmr.msra.gmra.mxu2 %v689_v26  ;;  %881 = vmatmul.f32.vlgmr.msra.gmra.mxu3 %v689_v26  ;;  %v1185_v25 = vld [vmem:[#allocation10 + $0x210] sm:$0xff] }
 0x14d   : > { %904 = vmatmul.f32.vlgmr.msra.gmra.mxu0 %v689_v26  ;;  %927 = vmatmul.f32.vlgmr.msra.gmra.mxu1 %v689_v26 }
 0x14e   : > { %v681_v33 = vpop.f32.mrf.mxu1  ;;  %1398 = vmatpush.msra.mxu2 %v1149_v27  ;;  %1418 = vmatpush.msra.mxu3 %v1181_v28  ;;  %v1119_v27 = vld [vmem:[#allocation10] sm:$0xff] }
 0x14f   : > { %v682_v36 = vadd.f32 %v2137_v21, %v681_v33  ;;  %1438 = vmatpush.msra.mxu0 %v1213_v29  ;;  %1458 = vmatpush.msra.mxu1 %v1245_v30  ;;  %v1187_v21 = vld [vmem:[#allocation10 + $0x220] sm:$0xff]  ;;  %v1341_v33 = vld [vmem:[#allocation10 + $0x6f0] sm:$0xff] }
 0x150   : > { %1399 = vmatpush.msra.mxu2 %v1147_v31  ;;  %1419 = vmatpush.msra.mxu3 %v1179_v32  ;;  %v1151_v28 = vld [vmem:[#allocation10 + $0x100] sm:$0xff]  ;;  %v1277_v31 = vld [vmem:[#allocation10 + $0x4f0] sm:$0xff] }
 0x151   : > { %vm685_vm6 = vcmp.gt.f32.partialorder %v682_v36, 0.0  ;;  %v688_v41 = vmul.f32 %v686_v23, %v682_v36  ;;  %1439 = vmatpush.msra.mxu0 %v1211_v34  ;;  %1459 = vmatpush.msra.mxu1 %v1243_v35  ;;  %v1121_v23 = vld [vmem:[#allocation10 + $0x10] sm:$0xff]  ;;  %v1183_v29 = vld [vmem:[#allocation10 + $0x200] sm:$0xff] }
 0x152   : > { %1400 = vmatpush.msra.mxu2 %v1145_v37  ;;  %1420 = vmatpush.msra.mxu3 %v1177_v38  ;;  %v1215_v30 = vld [vmem:[#allocation10 + $0x300] sm:$0xff]  ;;  %v1309_v32 = vld [vmem:[#allocation10 + $0x5f0] sm:$0xff] }
 0x153   : > { %v690_v42 = vsel %vm685_vm6, %v682_v36, %v688_v41  ;;  %1440 = vmatpush.msra.mxu0 %v1209_v39  ;;  %1460 = vmatpush.msra.mxu1 %v1241_v40  ;;  %v1373_v34 = vld [vmem:[#allocation10 + $0x7f0] sm:$0xff]  ;;  %v1275_v35 = vld [vmem:[#allocation10 + $0x4e0] sm:$0xff] }
 0x154   : > { %861 = vmatmul.f32.gmra.mxu2 %v690_v42  ;;  %884 = vmatmul.f32.gmra.mxu3 %v690_v42  ;;  %v1307_v36 = vld [vmem:[#allocation10 + $0x5e0] sm:$0xff]  ;;  %v1273_v39 = vld [vmem:[#allocation10 + $0x4d0] sm:$0xff] }
 0x155   : > { %907 = vmatmul.f32.gmra.mxu0 %v690_v42  ;;  %930 = vmatmul.f32.gmra.mxu1 %v690_v42  ;;  %v1339_v37 = vld [vmem:[#allocation10 + $0x6e0] sm:$0xff]  ;;  %v1305_v40 = vld [vmem:[#allocation10 + $0x5d0] sm:$0xff] }
 0x156   : > { %1401 = vmatpush.msra.mxu2 %v1143_v43  ;;  %1421 = vmatpush.msra.mxu3 %v1175_v44  ;;  %v1371_v38 = vld [vmem:[#allocation10 + $0x7e0] sm:$0xff]  ;;  %v1337_v41 = vld [vmem:[#allocation10 + $0x6d0] sm:$0xff] }
 0x157   : > { %1441 = vmatpush.msra.mxu0 %v1207_v45  ;;  %1461 = vmatpush.msra.mxu1 %v1239_v46  ;;  %v1271_v43 = vld [vmem:[#allocation10 + $0x4c0] sm:$0xff] }
 0x158   : > { %1402 = vmatpush.msra.mxu2 %v1141_v47  ;;  %1422 = vmatpush.msra.mxu3 %v1173_v48  ;;  %v1303_v44 = vld [vmem:[#allocation10 + $0x5c0] sm:$0xff]  ;;  %v1269_v47 = vld [vmem:[#allocation10 + $0x4b0] sm:$0xff] }
 0x159   : > { %1442 = vmatpush.msra.mxu0 %v1205_v49  ;;  %1462 = vmatpush.msra.mxu1 %v1237_v50  ;;  %v1335_v45 = vld [vmem:[#allocation10 + $0x6c0] sm:$0xff]  ;;  %v1301_v48 = vld [vmem:[#allocation10 + $0x5b0] sm:$0xff] }
 0x15a   : > { %1403 = vmatpush.msra.mxu2 %v1139_v51  ;;  %1423 = vmatpush.msra.mxu3 %v1171_v52  ;;  %v1367_v46 = vld [vmem:[#allocation10 + $0x7c0] sm:$0xff]  ;;  %v1333_v49 = vld [vmem:[#allocation10 + $0x6b0] sm:$0xff] }
 0x15b   : > { %1443 = vmatpush.msra.mxu0 %v1203_v53  ;;  %1463 = vmatpush.msra.mxu1 %v1235_v54  ;;  %v1365_v50 = vld [vmem:[#allocation10 + $0x7b0] sm:$0xff]  ;;  %v1267_v53 = vld [vmem:[#allocation10 + $0x4a0] sm:$0xff] }
 0x15c   : > { %950 = vmatmul.f32.vlgmr.msrb.gmra.mxu2 %v689_v26  ;;  %973 = vmatmul.f32.vlgmr.msrb.gmra.mxu3 %v689_v26  ;;  %v1299_v54 = vld [vmem:[#allocation10 + $0x5a0] sm:$0xff] }
 0x15d   : > { %996 = vmatmul.f32.vlgmr.msrb.gmra.mxu0 %v689_v26  ;;  %1019 = vmatmul.f32.vlgmr.msrb.gmra.mxu1 %v689_v26  ;;  %v1217_v26 = vld [vmem:[#allocation10 + $0x310] sm:$0xff] }
 0x15e   : > { %1404 = vmatpush.msra.mxu2 %v1137_v55  ;;  %1424 = vmatpush.msra.mxu3 %v1169_v56  ;;  %v1331_v55 = vld [vmem:[#allocation10 + $0x6a0] sm:$0xff] }
 0x15f   : > { %1444 = vmatpush.msra.mxu0 %v1201_v57  ;;  %1464 = vmatpush.msra.mxu1 %v1233_v58  ;;  %v1363_v56 = vld [vmem:[#allocation10 + $0x7a0] sm:$0xff]  ;;  %v1265_v57 = vld [vmem:[#allocation10 + $0x490] sm:$0xff] }
 0x160   : > { %1405 = vmatpush.msra.mxu2 %v1135_v59  ;;  %1425 = vmatpush.msra.mxu3 %v1167_v60  ;;  %v1297_v58 = vld [vmem:[#allocation10 + $0x590] sm:$0xff]  ;;  %v2632_v60 = vld [vmem:[%s2744_s7] sm:$0xff] }
 0x161   : > { %1445 = vmatpush.msra.mxu0 %v1199_v61  ;;  %1465 = vmatpush.msra.mxu1 %v1231_v62  ;;  %v1329_v59 = vld [vmem:[#allocation10 + $0x690] sm:$0xff]  ;;  %v1263_v62 = vld [vmem:[#allocation10 + $0x480] sm:$0xff] }
 0x162   : > { %1406 = vmatpush.msra.mxu2 %v1133_v63  ;;  %1426 = vmatpush.msra.mxu3 %v1165_v0  ;;  %v1361_v61 = vld [vmem:[#allocation10 + $0x790] sm:$0xff]  ;;  %v1295_v63 = vld [vmem:[#allocation10 + $0x580] sm:$0xff] }
 0x163   : > { %1446 = vmatpush.msra.mxu0 %v1197_v1  ;;  %1466 = vmatpush.msra.mxu1 %v1229_v2  ;;  %v1327_v0 = vld [vmem:[#allocation10 + $0x680] sm:$0xff] }
 0x164   : > { %953 = vmatmul.f32.gmra.mxu2 %v690_v42  ;;  %976 = vmatmul.f32.gmra.mxu3 %v690_v42 }
 0x165   : > { %999 = vmatmul.f32.gmra.mxu0 %v690_v42  ;;  %1022 = vmatmul.f32.gmra.mxu1 %v690_v42  ;;  %v1369_v42 = vld [vmem:[#allocation10 + $0x7d0] sm:$0xff] }
 0x166   : > { %1407 = vmatpush.msra.mxu2 %v1131_v3  ;;  %1427 = vmatpush.msra.mxu3 %v1163_v4  ;;  %v1359_v3 = vld [vmem:[#allocation10 + $0x780] sm:$0xff]  ;;  %v828_v4 = vperm.slane %v2632_v60, 2 }
 0x167   : > { %1447 = vmatpush.msra.mxu0 %v1195_v5  ;;  %1467 = vmatpush.msra.mxu1 %v1227_v6  ;;  %v1261_v5 = vld [vmem:[#allocation10 + $0x470] sm:$0xff] }
 0x168   : > { %1408 = vmatpush.msra.mxu2 %v1129_v7  ;;  %1428 = vmatpush.msra.mxu3 %v1161_v8  ;;  %v1293_v6 = vld [vmem:[#allocation10 + $0x570] sm:$0xff] }
 0x169   : > { %1448 = vmatpush.msra.mxu0 %v1193_v9  ;;  %1468 = vmatpush.msra.mxu1 %v1225_v10  ;;  %v1325_v7 = vld [vmem:[#allocation10 + $0x670] sm:$0xff] }
 0x16a   : > { %1409 = vmatpush.msra.mxu2 %v1127_v11  ;;  %1429 = vmatpush.msra.mxu3 %v1159_v12  ;;  %v1357_v8 = vld [vmem:[#allocation10 + $0x770] sm:$0xff]  ;;  %v1259_v11 = vld [vmem:[#allocation10 + $0x460] sm:$0xff] }
 0x16b   : > { %1449 = vmatpush.msra.mxu0 %v1191_v13  ;;  %1469 = vmatpush.msra.mxu1 %v1223_v14  ;;  %v1291_v12 = vld [vmem:[#allocation10 + $0x560] sm:$0xff]  ;;  %v829_v14 = vperm.slane %v2632_v60, 3 }
 0x16c   : > { %1410 = vmatpush.msra.mxu2 %v1125_v15  ;;  %1430 = vmatpush.msra.mxu3 %v1157_v16  ;;  %v1323_v13 = vld [vmem:[#allocation10 + $0x660] sm:$0xff] }
 0x16d   : > { %1450 = vmatpush.msra.mxu0 %v1189_v17  ;;  %1470 = vmatpush.msra.mxu1 %v1221_v18  ;;  %v1355_v16 = vld [vmem:[#allocation10 + $0x760] sm:$0xff]  ;;  %v827_v18 = vperm.slane %v2632_v60, 1 }
 0x16e   : > { %1411 = vmatpush.msra.mxu2 %v1123_v19  ;;  %1431 = vmatpush.msra.mxu3 %v1155_v20  ;;  %v1257_v19 = vld [vmem:[#allocation10 + $0x450] sm:$0xff] }
 0x16f   : > { %1451 = vmatpush.msra.mxu0 %v1187_v21  ;;  %1471 = vmatpush.msra.mxu1 %v1219_v22  ;;  %v1289_v20 = vld [vmem:[#allocation10 + $0x550] sm:$0xff] }
 0x170   : > { %1412 = vmatpush.msra.mxu2 %v1121_v23  ;;  %1432 = vmatpush.msra.mxu3 %v1153_v24  ;;  %v1321_v21 = vld [vmem:[#allocation10 + $0x650] sm:$0xff] }
 0x171   : > { %1452 = vmatpush.msra.mxu0 %v1185_v25  ;;  %1472 = vmatpush.msra.mxu1 %v1217_v26  ;;  %v1353_v23 = vld [vmem:[#allocation10 + $0x750] sm:$0xff]  ;;  %v1255_v25 = vld [vmem:[#allocation10 + $0x440] sm:$0xff] }
 0x172   : > { %1413 = vmatpush.msra.mxu2 %v1119_v27  ;;  %1433 = vmatpush.msra.mxu3 %v1151_v28  ;;  %v1287_v26 = vld [vmem:[#allocation10 + $0x540] sm:$0xff] }
 0x173   : > { %1453 = vmatpush.msra.mxu0 %v1183_v29  ;;  %1473 = vmatpush.msra.mxu1 %v1215_v30  ;;  %v1319_v27 = vld [vmem:[#allocation10 + $0x640] sm:$0xff]  ;;  %v826_v29 = vperm.slane %v2632_v60, 0 }
 0x174   : > { %1478 = vmatpush.msrb.mxu2 %v1277_v31  ;;  %1498 = vmatpush.msrb.mxu3 %v1309_v32  ;;  %v1351_v32 = vld [vmem:[#allocation10 + $0x740] sm:$0xff] }
 0x175   : > { %1518 = vmatpush.msrb.mxu0 %v1341_v33  ;;  %1538 = vmatpush.msrb.mxu1 %v1373_v34 }
 0x176   : > { %1479 = vmatpush.msrb.mxu2 %v1275_v35  ;;  %1499 = vmatpush.msrb.mxu3 %v1307_v36  ;;  %v1253_v35 = vld [vmem:[#allocation10 + $0x430] sm:$0xff] }
 0x177   : > { %1519 = vmatpush.msrb.mxu0 %v1339_v37  ;;  %1539 = vmatpush.msrb.mxu1 %v1371_v38  ;;  %v1285_v36 = vld [vmem:[#allocation10 + $0x530] sm:$0xff] }
 0x178   : > { %1480 = vmatpush.msrb.mxu2 %v1273_v39  ;;  %1500 = vmatpush.msrb.mxu3 %v1305_v40  ;;  %v1317_v37 = vld [vmem:[#allocation10 + $0x630] sm:$0xff] }
 0x179   : > { %1520 = vmatpush.msrb.mxu0 %v1337_v41  ;;  %1540 = vmatpush.msrb.mxu1 %v1369_v42  ;;  %v1349_v40 = vld [vmem:[#allocation10 + $0x730] sm:$0xff] }
 0x17a   : > { %1481 = vmatpush.msrb.mxu2 %v1271_v43  ;;  %1501 = vmatpush.msrb.mxu3 %v1303_v44 }
 0x17b   : > { %1521 = vmatpush.msrb.mxu0 %v1335_v45  ;;  %1541 = vmatpush.msrb.mxu1 %v1367_v46  ;;  %v1251_v45 = vld [vmem:[#allocation10 + $0x420] sm:$0xff] }
 0x17c   : > { %1482 = vmatpush.msrb.mxu2 %v1269_v47  ;;  %1502 = vmatpush.msrb.mxu3 %v1301_v48  ;;  %v1283_v46 = vld [vmem:[#allocation10 + $0x520] sm:$0xff] }
 0x17d   : > { %1522 = vmatpush.msrb.mxu0 %v1333_v49  ;;  %1542 = vmatpush.msrb.mxu1 %v1365_v50  ;;  %v1315_v47 = vld [vmem:[#allocation10 + $0x620] sm:$0xff] }
 0x17e   : > { %1483 = vmatpush.msrb.mxu2 %v1267_v53  ;;  %1503 = vmatpush.msrb.mxu3 %v1299_v54  ;;  %v1347_v49 = vld [vmem:[#allocation10 + $0x720] sm:$0xff]  ;;  %v1313_v53 = vld [vmem:[#allocation10 + $0x610] sm:$0xff] }
 0x17f   : > { %1523 = vmatpush.msrb.mxu0 %v1331_v55  ;;  %1543 = vmatpush.msrb.mxu1 %v1363_v56  ;;  %v1345_v56 = vld [vmem:[#allocation10 + $0x710] sm:$0xff] }
 0x180   : > { %1484 = vmatpush.msrb.mxu2 %v1265_v57  ;;  %1504 = vmatpush.msrb.mxu3 %v1297_v58  ;;  %v1247_v57 = vld [vmem:[#allocation10 + $0x400] sm:$0xff] }
 0x181   : > { %1524 = vmatpush.msrb.mxu0 %v1329_v59  ;;  %1544 = vmatpush.msrb.mxu1 %v1361_v61  ;;  %v1279_v58 = vld [vmem:[#allocation10 + $0x500] sm:$0xff] }
 0x182   : > { %1485 = vmatpush.msrb.mxu2 %v1263_v62  ;;  %1505 = vmatpush.msrb.mxu3 %v1295_v63  ;;  %v1311_v61 = vld [vmem:[#allocation10 + $0x600] sm:$0xff]  ;;  %v832_v63 = vperm.slane %v2632_v60, 6 }
 0x183   : > { %1525 = vmatpush.msrb.mxu0 %v1327_v0  ;;  %1545 = vmatpush.msrb.mxu1 %v1359_v3  ;;  %v1343_v62 = vld [vmem:[#allocation10 + $0x700] sm:$0xff]  ;;  %v833_v0 = vperm.slane %v2632_v60, 7 }
 0x184   : > { %1486 = vmatpush.msrb.mxu2 %v1261_v5  ;;  %1506 = vmatpush.msrb.mxu3 %v1293_v6 }
 0x185   : > { %1526 = vmatpush.msrb.mxu0 %v1325_v7  ;;  %1546 = vmatpush.msrb.mxu1 %v1357_v8  ;;  %v830_v7 = vperm.slane %v2632_v60, 4 }
 0x186   : > { %1487 = vmatpush.msrb.mxu2 %v1259_v11  ;;  %1507 = vmatpush.msrb.mxu3 %v1291_v12 }
 0x187   : > { %1527 = vmatpush.msrb.mxu0 %v1323_v13  ;;  %1547 = vmatpush.msrb.mxu1 %v1355_v16 }
 0x188   : > { %1488 = vmatpush.msrb.mxu2 %v1257_v19  ;;  %1508 = vmatpush.msrb.mxu3 %v1289_v20 }
 0x189   : > { %1528 = vmatpush.msrb.mxu0 %v1321_v21  ;;  %1548 = vmatpush.msrb.mxu1 %v1353_v23 }
 0x18a   : > { %1489 = vmatpush.msrb.mxu2 %v1255_v25  ;;  %1509 = vmatpush.msrb.mxu3 %v1287_v26 }
 0x18b   : > { %1529 = vmatpush.msrb.mxu0 %v1319_v27  ;;  %1549 = vmatpush.msrb.mxu1 %v1351_v32 }
 0x18c   : > { %1490 = vmatpush.msrb.mxu2 %v1253_v35  ;;  %1510 = vmatpush.msrb.mxu3 %v1285_v36 }
 0x18d   : > { %1530 = vmatpush.msrb.mxu0 %v1317_v37  ;;  %1550 = vmatpush.msrb.mxu1 %v1349_v40 }
 0x18e   : > { %1491 = vmatpush.msrb.mxu2 %v1251_v45  ;;  %1511 = vmatpush.msrb.mxu3 %v1283_v46 }
 0x18f   : > { %1531 = vmatpush.msrb.mxu0 %v1315_v47  ;;  %1551 = vmatpush.msrb.mxu1 %v1347_v49 }
 0x191   : > { %1532 = vmatpush.msrb.mxu0 %v1313_v53  ;;  %1552 = vmatpush.msrb.mxu1 %v1345_v56 }
 0x193   : > { %1533 = vmatpush.msrb.mxu0 %v1311_v61  ;;  %1553 = vmatpush.msrb.mxu1 %v1343_v62 }
 0x1ca   : > { %v905_v51 = vpop.f32.mrf.mxu0  ;;  %v2627_v52 = vpop.f32.mrf.mxu1 }
 0x1cb   : > { %v906_v17 = vadd.f32 %v905_v51, %v828_v4  ;;  %v929_v28 = vadd.f32 %v2627_v52, %v829_v14  ;;  %v1249_v51 = vld [vmem:[#allocation10 + $0x410] sm:$0xff] }
 0x1cc   : > { %v1281_v52 = vld [vmem:[#allocation10 + $0x510] sm:$0xff]  ;;  %1492 = vmatpush.msrb.mxu2 %v1249_v51 }
 0x1cd   : > { %1512 = vmatpush.msrb.mxu3 %v1281_v52 }
 0x1ce   : > { %1493 = vmatpush.msrb.mxu2 %v1247_v57 }
 0x1cf   : > { %v2634_v1 = vpop.f32.mrf.mxu2  ;;  %v882_v2 = vpop.f32.mrf.mxu3  ;;  %1513 = vmatpush.msrb.mxu3 %v1279_v58 }
 0x1d0   : > { %v883_v33 = vadd.f32 %v882_v2, %v827_v18  ;;  %v860_v48 = vadd.f32 %v2634_v1, %v826_v29 }
 0x1d2   : > { %v908_v9 = vpop.f32.mrf.mxu0  ;;  %v931_v10 = vpop.f32.mrf.mxu1 }
 0x1d3   : > { %v909_v15 = vadd.f32 %v908_v9, %v828_v4  ;;  %v932_v22 = vadd.f32 %v931_v10, %v829_v14 }
 0x1d5   : > { %v1041_v24 = vmax.f32 %v906_v17, %v909_v15  ;;  %v1048_v38 = vmax.f32 %v929_v28, %v932_v22  ;;  %v831_v15 = vperm.slane %v2632_v60, 5 }
 0x1d7   : > { %v862_v30 = vpop.f32.mrf.mxu2  ;;  %v885_v31 = vpop.f32.mrf.mxu3  ;;  %v1042_v41 = vrot.slane %v1041_v24, 4  ;;  %v1049_v54 = vrot.slane %v1048_v38, 4 }
 0x1d8   : > { %v886_v34 = vadd.f32 %v885_v31, %v827_v18  ;;  %v863_v39 = vadd.f32 %v862_v30, %v826_v29 }
 0x1d9   : > { %v1043_v59 = vmax.f32 %v1041_v24, %v1042_v41  ;;  %v1050_v4 = vmax.f32 %v1048_v38, %v1049_v54 }
 0x1da   : > { %v1034_v42 = vmax.f32 %v883_v33, %v886_v34  ;;  %v997_v43 = vpop.f32.mrf.mxu0  ;;  %v1020_v44 = vpop.f32.mrf.mxu1  ;;  %v1027_v55 = vmax.f32 %v860_v48, %v863_v39 }
 0x1db   : > { %v1044_v6 = vrot.slane %v1043_v59, 2  ;;  %v998_v10 = vadd.f32 %v997_v43, %v832_v63  ;;  %v1021_v11 = vadd.f32 %v1020_v44, %v833_v0  ;;  %v1051_v16 = vrot.slane %v1050_v4, 2 }
 0x1dc   : > { %v1035_v50 = vrot.slane %v1034_v42, 4  ;;  %v1028_v5 = vrot.slane %v1027_v55, 4 }
 0x1dd   : > { %v1045_v20 = vmax.f32 %v1043_v59, %v1044_v6  ;;  %v1052_v30 = vmax.f32 %v1050_v4, %v1051_v16 }
 0x1de   : > { %v1036_v3 = vmax.f32 %v1034_v42, %v1035_v50  ;;  %v1029_v17 = vmax.f32 %v1027_v55, %v1028_v5 }
 0x1df   : > { %v951_v1 = vpop.f32.mrf.mxu2  ;;  %v974_v2 = vpop.f32.mrf.mxu3  ;;  %v1046_v37 = vrot.slane %v1045_v20, 1  ;;  %v1053_v41 = vrot.slane %v1052_v30, 1 }
 0x1e0   : > { %v1037_v14 = vrot.slane %v1036_v3, 2  ;;  %v952_v21 = vadd.f32 %v951_v1, %v830_v7  ;;  %v975_v27 = vadd.f32 %v974_v2, %v831_v15  ;;  %v1030_v31 = vrot.slane %v1029_v17, 2 }
 0x1e1   : > { %v1047_v52 = vmax.f32 %v1045_v20, %v1046_v37  ;;  %v1054_v53 = vmax.f32 %v1052_v30, %v1053_v41  ;;  %v1182_v20 = vld [vmem:[#allocation10 + $0x1f8] sm:$0xff] }
 0x1e2   : > { %v1000_v8 = vpop.f32.mrf.mxu0  ;;  %v1023_v9 = vpop.f32.mrf.mxu1  ;;  %v1038_v26 = vmax.f32 %v1036_v3, %v1037_v14  ;;  %v1031_v42 = vmax.f32 %v1029_v17, %v1030_v31  ;;  %v1242_v30 = vld [vmem:[#allocation10 + $0x3d8] sm:$0xff]  ;;  %v1144_v31 = vld [vmem:[#allocation10 + $0xc8] sm:$0xff] }
 0x1e3   : > { %v1001_v12 = vadd.f32 %v1000_v8, %v832_v63  ;;  %v1024_v13 = vadd.f32 %v1023_v9, %v833_v0  ;;  %v1092_v63 = vrot.slane %v1047_v52, 6  ;;  %v1093_v0 = vrot.slane %v1054_v53, 5  ;;  %v1238_v41 = vld [vmem:[#allocation10 + $0x3b8] sm:$0xff]  ;;  %v1200_v52 = vld [vmem:[#allocation10 + $0x288] sm:$0xff] }
 0x1e4   : > { %v1039_v38 = vrot.slane %v1038_v26, 1  ;;  %v1032_v54 = vrot.slane %v1031_v42, 1  ;;  %v1232_v53 = vld [vmem:[#allocation10 + $0x388] sm:$0xff] }
 0x1e5   : > { %v1069_v18 = vmax.f32 %v998_v10, %v1001_v12  ;;  %v1076_v19 = vmax.f32 %v1021_v11, %v1024_v13  ;;  %v1101_v9 = vsel %vm1100_vm8, %v1092_v63, %v1093_v0  ;;  %v1130_v63 = vld [vmem:[#allocation10 + $0x58] sm:$0xff] }
 0x1e6   : > { %v1040_v49 = vmax.f32 %v1038_v26, %v1039_v38  ;;  %v1033_v1 = vmax.f32 %v1031_v42, %v1032_v54  ;;  %v1244_v26 = vld [vmem:[#allocation10 + $0x3e8] sm:$0xff]  ;;  %v1142_v38 = vld [vmem:[#allocation10 + $0xb8] sm:$0xff] }
 0x1e7   : > { %v1070_v22 = vrot.slane %v1069_v18, 4  ;;  %v1077_v23 = vrot.slane %v1076_v19, 4  ;;  %v954_v24 = vpop.f32.mrf.mxu2  ;;  %v977_v25 = vpop.f32.mrf.mxu3  ;;  %v1140_v42 = vld [vmem:[#allocation10 + $0xa8] sm:$0xff]  ;;  %v1134_v54 = vld [vmem:[#allocation10 + $0x78] sm:$0xff] }
 0x1e8   : > { %v955_v28 = vadd.f32 %v954_v24, %v830_v7  ;;  %v978_v29 = vadd.f32 %v977_v25, %v831_v15  ;;  %v1091_v59 = vrot.slane %v1040_v49, 7  ;;  %v1180_v24 = vld [vmem:[#allocation10 + $0x1e8] sm:$0xff]  ;;  %v1234_v49 = vld [vmem:[#allocation10 + $0x398] sm:$0xff] }
 0x1e9   : > { %v1071_v32 = vmax.f32 %v1069_v18, %v1070_v22  ;;  %v1078_v33 = vmax.f32 %v1076_v19, %v1077_v23  ;;  %v1150_v19 = vld [vmem:[#allocation10 + $0xf8] sm:$0xff]  ;;  %v1148_v23 = vld [vmem:[#allocation10 + $0xe8] sm:$0xff] }
 0x1ea   : > { %v1055_v34 = vmax.f32 %v952_v21, %v955_v28  ;;  %v1062_v60 = vmax.f32 %v975_v27, %v978_v29  ;;  %v1099_v6 = vsel %vm1098_vm7, %v1033_v1, %v1091_v59  ;;  %v1214_v21 = vld [vmem:[#allocation10 + $0x2f8] sm:$0xff]  ;;  %v1212_v25 = vld [vmem:[#allocation10 + $0x2e8] sm:$0xff] }
 0x1eb   : > { %v1072_v35 = vrot.slane %v1071_v32, 2  ;;  %v1079_v36 = vrot.slane %v1078_v33, 2  ;;  %v1103_v12 = vsel %vm1102_vm9, %v1099_v6, %v1101_v9  ;;  %v1246_v22 = vld [vmem:[#allocation10 + $0x3f8] sm:$0xff]  ;;  %v1164_v59 = vld [vmem:[#allocation10 + $0x168] sm:$0xff] }
 0x1ec   : > { %v1056_v39 = vrot.slane %v1055_v34, 4  ;;  %v1063_v40 = vrot.slane %v1062_v60, 4  ;;  %v1146_v27 = vld [vmem:[#allocation10 + $0xd8] sm:$0xff]  ;;  %v1224_v6 = vld [vmem:[#allocation10 + $0x348] sm:$0xff] }
 0x1ed   : > { %v1073_v43 = vmax.f32 %v1071_v32, %v1072_v35  ;;  %v1080_v44 = vmax.f32 %v1078_v33, %v1079_v36  ;;  %v1178_v28 = vld [vmem:[#allocation10 + $0x1d8] sm:$0xff]  ;;  %v1176_v32 = vld [vmem:[#allocation10 + $0x1c8] sm:$0xff] }
 0x1ee   : > { %v1057_v45 = vmax.f32 %v1055_v34, %v1056_v39  ;;  %v1064_v46 = vmax.f32 %v1062_v60, %v1063_v40  ;;  %v1210_v29 = vld [vmem:[#allocation10 + $0x2d8] sm:$0xff]  ;;  %v1208_v33 = vld [vmem:[#allocation10 + $0x2c8] sm:$0xff] }
 0x1ef   : > { %v1074_v47 = vrot.slane %v1073_v43, 1  ;;  %v1081_v48 = vrot.slane %v1080_v44, 1  ;;  %v1240_v34 = vld [vmem:[#allocation10 + $0x3c8] sm:$0xff]  ;;  %v1174_v39 = vld [vmem:[#allocation10 + $0x1b8] sm:$0xff] }
 0x1f0   : > { %v1058_v50 = vrot.slane %v1057_v45, 2  ;;  %v1065_v51 = vrot.slane %v1064_v46, 2  ;;  %v1206_v40 = vld [vmem:[#allocation10 + $0x2b8] sm:$0xff] }
 0x1f1   : > { %v1075_v55 = vmax.f32 %v1073_v43, %v1074_v47  ;;  %v1082_v56 = vmax.f32 %v1080_v44, %v1081_v48  ;;  %v1172_v43 = vld [vmem:[#allocation10 + $0x1a8] sm:$0xff]  ;;  %v1170_v47 = vld [vmem:[#allocation10 + $0x198] sm:$0xff] }
 0x1f2   : > { %v1059_v57 = vmax.f32 %v1057_v45, %v1058_v50  ;;  %v1066_v58 = vmax.f32 %v1064_v46, %v1065_v51  ;;  %v1204_v44 = vld [vmem:[#allocation10 + $0x2a8] sm:$0xff]  ;;  %v1138_v46 = vld [vmem:[#allocation10 + $0x98] sm:$0xff] }
 0x1f3   : > { %v1096_v2 = vrot.slane %v1075_v55, 2  ;;  %v1097_v3 = vrot.slane %v1082_v56, 1  ;;  %v1236_v45 = vld [vmem:[#allocation10 + $0x3a8] sm:$0xff]  ;;  %v1202_v48 = vld [vmem:[#allocation10 + $0x298] sm:$0xff] }
 0x1f4   : > { %v1060_v61 = vrot.slane %v1059_v57, 1  ;;  %v1067_v62 = vrot.slane %v1066_v58, 1  ;;  %v1136_v50 = vld [vmem:[#allocation10 + $0x88] sm:$0xff]  ;;  %v1166_v55 = vld [vmem:[#allocation10 + $0x178] sm:$0xff] }
 0x1f5   : > { %v1107_v10 = vsel %vm1106_vm10, %v1096_v2, %v1097_v3  ;;  %v1168_v51 = vld [vmem:[#allocation10 + $0x188] sm:$0xff]  ;;  %v1198_v56 = vld [vmem:[#allocation10 + $0x278] sm:$0xff] }
 0x1f6   : > { %v1061_v4 = vmax.f32 %v1059_v57, %v1060_v61  ;;  %v1068_v5 = vmax.f32 %v1066_v58, %v1067_v62  ;;  %v1230_v57 = vld [vmem:[#allocation10 + $0x378] sm:$0xff]  ;;  %v1132_v58 = vld [vmem:[#allocation10 + $0x68] sm:$0xff] }
 0x1f7   : > { %v1196_v61 = vld [vmem:[#allocation10 + $0x268] sm:$0xff]  ;;  %v1162_v0 = vld [vmem:[#allocation10 + $0x158] sm:$0xff] }
 0x1f8   : > { %v1094_v7 = vrot.slane %v1061_v4, 4  ;;  %v1095_v8 = vrot.slane %v1068_v5, 3  ;;  %v1228_v62 = vld [vmem:[#allocation10 + $0x368] sm:$0xff]  ;;  %v1194_v1 = vld [vmem:[#allocation10 + $0x258] sm:$0xff] }
 0x1f9   : > { %v1226_v2 = vld [vmem:[#allocation10 + $0x358] sm:$0xff]  ;;  %v1128_v3 = vld [vmem:[#allocation10 + $0x48] sm:$0xff] }
 0x1fa   : > { %v1105_v11 = vsel %vm1104_vm11, %v1094_v7, %v1095_v8  ;;  %v1160_v4 = vld [vmem:[#allocation10 + $0x148] sm:$0xff]  ;;  %v1126_v7 = vld [vmem:[#allocation10 + $0x38] sm:$0xff] }
 0x1fb   : > { %v1109_v13 = vsel %vm1108_vm12, %v1105_v11, %v1107_v10  ;;  %v1192_v5 = vld [vmem:[#allocation10 + $0x248] sm:$0xff]  ;;  %v1158_v8 = vld [vmem:[#allocation10 + $0x138] sm:$0xff] }
 0x1fc   : > { %v2646_v14 = vsel %vm1110_vm13, %v1103_v12, %v1109_v13  ;;  %v1190_v9 = vld [vmem:[#allocation10 + $0x238] sm:$0xff]  ;;  %v1124_v11 = vld [vmem:[#allocation10 + $0x28] sm:$0xff] }
 0x1fd   : > { %v1377_v15 = vperm.slane %v2646_v14, 0  ;;  %v1378_v16 = vperm.slane %v2646_v14, 1  ;;  %v1379_v17 = vperm.slane %v2646_v14, 2  ;;  %v1380_v18 = vperm.slane %v2646_v14, 3  ;;  %v1222_v10 = vld [vmem:[#allocation10 + $0x338] sm:$0xff]  ;;  %v1156_v12 = vld [vmem:[#allocation10 + $0x128] sm:$0xff] }
 0x1fe   : > { %v1381_v60 = vperm.slane %v2646_v14, 4  ;;  %v1382_v35 = vperm.slane %v2646_v14, 5  ;;  %v1383_v36 = vperm.slane %v2646_v14, 6  ;;  %v1384_v37 = vperm.slane %v2646_v14, 7  ;;  %v1188_v13 = vld [vmem:[#allocation10 + $0x228] sm:$0xff] }
 0x1ff   : > { %1414 = vmatmul.f32.vlgmr.msra.gmra.mxu2 %v1377_v15  ;;  %1434 = vmatmul.f32.vlgmr.msra.gmra.mxu3 %v1378_v16  ;;  %v1730_v14 = vld [vmem:[#allocation11 + $0x28] sm:$0xff] }
 0x200   : > { %1454 = vmatmul.f32.vlgmr.msra.gmra.mxu0 %v1379_v17  ;;  %1474 = vmatmul.f32.vlgmr.msra.gmra.mxu1 %v1380_v18 }
 0x201   : > { %1558 = vmatpush.msra.mxu2 %v1150_v19  ;;  %1578 = vmatpush.msra.mxu3 %v1182_v20  ;;  %v1220_v19 = vld [vmem:[#allocation10 + $0x328] sm:$0xff]  ;;  %v1122_v20 = vld [vmem:[#allocation10 + $0x18] sm:$0xff] }
 0x202   : > { %1598 = vmatpush.msra.mxu0 %v1214_v21  ;;  %1618 = vmatpush.msra.mxu1 %v1246_v22  ;;  %v1154_v21 = vld [vmem:[#allocation10 + $0x118] sm:$0xff] }
 0x203   : > { %1559 = vmatpush.msra.mxu2 %v1148_v23  ;;  %1579 = vmatpush.msra.mxu3 %v1180_v24  ;;  %v1186_v22 = vld [vmem:[#allocation10 + $0x218] sm:$0xff]  ;;  %v1120_v24 = vld [vmem:[#allocation10 + $0x8] sm:$0xff] }
 0x204   : > { %1599 = vmatpush.msra.mxu0 %v1212_v25  ;;  %1619 = vmatpush.msra.mxu1 %v1244_v26  ;;  %v1218_v23 = vld [vmem:[#allocation10 + $0x318] sm:$0xff]  ;;  %v1152_v25 = vld [vmem:[#allocation10 + $0x108] sm:$0xff] }
 0x205   : > { %1560 = vmatpush.msra.mxu2 %v1146_v27  ;;  %1580 = vmatpush.msra.mxu3 %v1178_v28  ;;  %v1184_v26 = vld [vmem:[#allocation10 + $0x208] sm:$0xff]  ;;  %v1278_v28 = vld [vmem:[#allocation10 + $0x4f8] sm:$0xff] }
 0x206   : > { %1600 = vmatpush.msra.mxu0 %v1210_v29  ;;  %1620 = vmatpush.msra.mxu1 %v1242_v30  ;;  %v1216_v27 = vld [vmem:[#allocation10 + $0x308] sm:$0xff]  ;;  %v1310_v29 = vld [vmem:[#allocation10 + $0x5f8] sm:$0xff] }
 0x207   : > { %1561 = vmatpush.msra.mxu2 %v1144_v31  ;;  %1581 = vmatpush.msra.mxu3 %v1176_v32  ;;  %v1342_v30 = vld [vmem:[#allocation10 + $0x6f8] sm:$0xff]  ;;  %v1276_v32 = vld [vmem:[#allocation10 + $0x4e8] sm:$0xff] }
 0x208   : > { %1601 = vmatpush.msra.mxu0 %v1208_v33  ;;  %1621 = vmatpush.msra.mxu1 %v1240_v34  ;;  %v1374_v31 = vld [vmem:[#allocation10 + $0x7f8] sm:$0xff]  ;;  %v1308_v33 = vld [vmem:[#allocation10 + $0x5e8] sm:$0xff] }
 0x209   : > { %1494 = vmatmul.f32.vlgmr.msrb.gmra.mxu2 %v1381_v60  ;;  %1514 = vmatmul.f32.vlgmr.msrb.gmra.mxu3 %v1382_v35  ;;  %v1340_v34 = vld [vmem:[#allocation10 + $0x6e8] sm:$0xff] }
 0x20a   : > { %1534 = vmatmul.f32.vlgmr.msrb.gmra.mxu0 %v1383_v36  ;;  %1554 = vmatmul.f32.vlgmr.msrb.gmra.mxu1 %v1384_v37 }
 0x20b   : > { %1562 = vmatpush.msra.mxu2 %v1142_v38  ;;  %1582 = vmatpush.msra.mxu3 %v1174_v39  ;;  %v1372_v38 = vld [vmem:[#allocation10 + $0x7e8] sm:$0xff]  ;;  %v1306_v39 = vld [vmem:[#allocation10 + $0x5d8] sm:$0xff] }
 0x20c   : > { %1602 = vmatpush.msra.mxu0 %v1206_v40  ;;  %1622 = vmatpush.msra.mxu1 %v1238_v41  ;;  %v1370_v40 = vld [vmem:[#allocation10 + $0x7d8] sm:$0xff]  ;;  %v1304_v41 = vld [vmem:[#allocation10 + $0x5c8] sm:$0xff] }
 0x20d   : > { %1563 = vmatpush.msra.mxu2 %v1140_v42  ;;  %1583 = vmatpush.msra.mxu3 %v1172_v43  ;;  %v1368_v42 = vld [vmem:[#allocation10 + $0x7c8] sm:$0xff]  ;;  %v1270_v43 = vld [vmem:[#allocation10 + $0x4b8] sm:$0xff] }
 0x20e   : > { %1603 = vmatpush.msra.mxu0 %v1204_v44  ;;  %1623 = vmatpush.msra.mxu1 %v1236_v45  ;;  %v1302_v44 = vld [vmem:[#allocation10 + $0x5b8] sm:$0xff] }
 0x20f   : > { %1564 = vmatpush.msra.mxu2 %v1138_v46  ;;  %1584 = vmatpush.msra.mxu3 %v1170_v47  ;;  %v1334_v45 = vld [vmem:[#allocation10 + $0x6b8] sm:$0xff]  ;;  %v1268_v47 = vld [vmem:[#allocation10 + $0x4a8] sm:$0xff] }
 0x210   : > { %1604 = vmatpush.msra.mxu0 %v1202_v48  ;;  %1624 = vmatpush.msra.mxu1 %v1234_v49  ;;  %v1366_v46 = vld [vmem:[#allocation10 + $0x7b8] sm:$0xff]  ;;  %v1300_v48 = vld [vmem:[#allocation10 + $0x5a8] sm:$0xff] }
 0x211   : > { %1565 = vmatpush.msra.mxu2 %v1136_v50  ;;  %1585 = vmatpush.msra.mxu3 %v1168_v51  ;;  %v1332_v49 = vld [vmem:[#allocation10 + $0x6a8] sm:$0xff]  ;;  %v1266_v51 = vld [vmem:[#allocation10 + $0x498] sm:$0xff] }
 0x212   : > { %1605 = vmatpush.msra.mxu0 %v1200_v52  ;;  %1625 = vmatpush.msra.mxu1 %v1232_v53  ;;  %v1364_v50 = vld [vmem:[#allocation10 + $0x7a8] sm:$0xff]  ;;  %v1298_v52 = vld [vmem:[#allocation10 + $0x598] sm:$0xff] }
 0x213   : > { %1566 = vmatpush.msra.mxu2 %v1134_v54  ;;  %1586 = vmatpush.msra.mxu3 %v1166_v55  ;;  %v1330_v53 = vld [vmem:[#allocation10 + $0x698] sm:$0xff]  ;;  %v1264_v55 = vld [vmem:[#allocation10 + $0x488] sm:$0xff] }
 0x214   : > { %1606 = vmatpush.msra.mxu0 %v1198_v56  ;;  %1626 = vmatpush.msra.mxu1 %v1230_v57  ;;  %v1362_v54 = vld [vmem:[#allocation10 + $0x798] sm:$0xff]  ;;  %v1296_v56 = vld [vmem:[#allocation10 + $0x588] sm:$0xff] }
 0x215   : > { %1567 = vmatpush.msra.mxu2 %v1132_v58  ;;  %1587 = vmatpush.msra.mxu3 %v1164_v59  ;;  %v1328_v57 = vld [vmem:[#allocation10 + $0x688] sm:$0xff]  ;;  %v1262_v59 = vld [vmem:[#allocation10 + $0x478] sm:$0xff] }
 0x216   : > { %1607 = vmatpush.msra.mxu0 %v1196_v61  ;;  %1627 = vmatpush.msra.mxu1 %v1228_v62  ;;  %v1360_v58 = vld [vmem:[#allocation10 + $0x788] sm:$0xff]  ;;  %v1294_v61 = vld [vmem:[#allocation10 + $0x578] sm:$0xff] }
 0x217   : > { %1568 = vmatpush.msra.mxu2 %v1130_v63  ;;  %1588 = vmatpush.msra.mxu3 %v1162_v0  ;;  %v1326_v62 = vld [vmem:[#allocation10 + $0x678] sm:$0xff]  ;;  %v1260_v0 = vld [vmem:[#allocation10 + $0x468] sm:$0xff] }
 0x218   : > { %1608 = vmatpush.msra.mxu0 %v1194_v1  ;;  %1628 = vmatpush.msra.mxu1 %v1226_v2  ;;  %v1358_v63 = vld [vmem:[#allocation10 + $0x778] sm:$0xff]  ;;  %v1292_v1 = vld [vmem:[#allocation10 + $0x568] sm:$0xff] }
 0x219   : > { %1569 = vmatpush.msra.mxu2 %v1128_v3  ;;  %1589 = vmatpush.msra.mxu3 %v1160_v4  ;;  %v1324_v2 = vld [vmem:[#allocation10 + $0x668] sm:$0xff]  ;;  %v1258_v4 = vld [vmem:[#allocation10 + $0x458] sm:$0xff] }
 0x21a   : > { %1609 = vmatpush.msra.mxu0 %v1192_v5  ;;  %1629 = vmatpush.msra.mxu1 %v1224_v6  ;;  %v1356_v3 = vld [vmem:[#allocation10 + $0x768] sm:$0xff]  ;;  %v1290_v5 = vld [vmem:[#allocation10 + $0x558] sm:$0xff] }
 0x21b   : > { %1570 = vmatpush.msra.mxu2 %v1126_v7  ;;  %1590 = vmatpush.msra.mxu3 %v1158_v8  ;;  %v1322_v6 = vld [vmem:[#allocation10 + $0x658] sm:$0xff]  ;;  %v1256_v8 = vld [vmem:[#allocation10 + $0x448] sm:$0xff] }
 0x21c   : > { %1610 = vmatpush.msra.mxu0 %v1190_v9  ;;  %1630 = vmatpush.msra.mxu1 %v1222_v10  ;;  %v1354_v7 = vld [vmem:[#allocation10 + $0x758] sm:$0xff]  ;;  %v1288_v9 = vld [vmem:[#allocation10 + $0x548] sm:$0xff] }
 0x21d   : > { %1571 = vmatpush.msra.mxu2 %v1124_v11  ;;  %1591 = vmatpush.msra.mxu3 %v1156_v12  ;;  %v1320_v10 = vld [vmem:[#allocation10 + $0x648] sm:$0xff]  ;;  %v1254_v12 = vld [vmem:[#allocation10 + $0x438] sm:$0xff] }
 0x21e   : > { %1611 = vmatpush.msra.mxu0 %v1188_v13  ;;  %1631 = vmatpush.msra.mxu1 %v1220_v19  ;;  %v1352_v11 = vld [vmem:[#allocation10 + $0x748] sm:$0xff]  ;;  %v1286_v13 = vld [vmem:[#allocation10 + $0x538] sm:$0xff] }
 0x21f   : > { %1572 = vmatpush.msra.mxu2 %v1122_v20  ;;  %1592 = vmatpush.msra.mxu3 %v1154_v21  ;;  %v1318_v19 = vld [vmem:[#allocation10 + $0x638] sm:$0xff]  ;;  %v1252_v21 = vld [vmem:[#allocation10 + $0x428] sm:$0xff] }
 0x220   : > { %1612 = vmatpush.msra.mxu0 %v1186_v22  ;;  %1632 = vmatpush.msra.mxu1 %v1218_v23  ;;  %v1350_v20 = vld [vmem:[#allocation10 + $0x738] sm:$0xff]  ;;  %v1284_v22 = vld [vmem:[#allocation10 + $0x528] sm:$0xff] }
 0x221   : > { %1573 = vmatpush.msra.mxu2 %v1120_v24  ;;  %1593 = vmatpush.msra.mxu3 %v1152_v25  ;;  %v1316_v23 = vld [vmem:[#allocation10 + $0x628] sm:$0xff]  ;;  %v1250_v25 = vld [vmem:[#allocation10 + $0x418] sm:$0xff] }
 0x222   : > { %1613 = vmatpush.msra.mxu0 %v1184_v26  ;;  %1633 = vmatpush.msra.mxu1 %v1216_v27  ;;  %v1348_v24 = vld [vmem:[#allocation10 + $0x728] sm:$0xff]  ;;  %v1282_v26 = vld [vmem:[#allocation10 + $0x518] sm:$0xff] }
 0x223   : > { %1574 = vmatmul.f32.vlgmr.msra.gmra.mxu2 %v1377_v15  ;;  %1594 = vmatmul.f32.vlgmr.msra.gmra.mxu3 %v1378_v16  ;;  %v1274_v15 = vld [vmem:[#allocation10 + $0x4d8] sm:$0xff] }
 0x224   : > { %1614 = vmatmul.f32.vlgmr.msra.gmra.mxu0 %v1379_v17  ;;  %1634 = vmatmul.f32.vlgmr.msra.gmra.mxu1 %v1380_v18  ;;  %v1338_v16 = vld [vmem:[#allocation10 + $0x6d8] sm:$0xff]  ;;  %v1272_v17 = vld [vmem:[#allocation10 + $0x4c8] sm:$0xff] }
 0x225   : > { %1638 = vmatpush.msrb.mxu2 %v1278_v28  ;;  %1658 = vmatpush.msrb.mxu3 %v1310_v29  ;;  %v1336_v18 = vld [vmem:[#allocation10 + $0x6c8] sm:$0xff]  ;;  %v1314_v27 = vld [vmem:[#allocation10 + $0x618] sm:$0xff] }
 0x226   : > { %1678 = vmatpush.msrb.mxu0 %v1342_v30  ;;  %1698 = vmatpush.msrb.mxu1 %v1374_v31  ;;  %v1346_v28 = vld [vmem:[#allocation10 + $0x718] sm:$0xff]  ;;  %v1248_v29 = vld [vmem:[#allocation10 + $0x408] sm:$0xff] }
 0x227   : > { %1639 = vmatpush.msrb.mxu2 %v1276_v32  ;;  %1659 = vmatpush.msrb.mxu3 %v1308_v33  ;;  %v1280_v30 = vld [vmem:[#allocation10 + $0x508] sm:$0xff]  ;;  %v1740_v33 = vld [vmem:[#allocation11 + $0x78] sm:$0xff] }
 0x228   : > { %1679 = vmatpush.msrb.mxu0 %v1340_v34  ;;  %1699 = vmatpush.msrb.mxu1 %v1372_v38  ;;  %v1312_v31 = vld [vmem:[#allocation10 + $0x608] sm:$0xff]  ;;  %v1739_v34 = vld [vmem:[#allocation11 + $0x70] sm:$0xff] }
 0x229   : > { %1640 = vmatpush.msrb.mxu2 %v1274_v15  ;;  %1660 = vmatpush.msrb.mxu3 %v1306_v39  ;;  %v1344_v32 = vld [vmem:[#allocation10 + $0x708] sm:$0xff]  ;;  %v1737_v15 = vld [vmem:[#allocation11 + $0x60] sm:$0xff]  ;;  %v1736_v39 = vld [vmem:[#allocation11 + $0x58] sm:$0xff] }
 0x22a   : > { %1680 = vmatpush.msrb.mxu0 %v1338_v16  ;;  %1700 = vmatpush.msrb.mxu1 %v1370_v40  ;;  %v1738_v38 = vld [vmem:[#allocation11 + $0x68] sm:$0xff]  ;;  %v1735_v16 = vld [vmem:[#allocation11 + $0x50] sm:$0xff]  ;;  %v1733_v40 = vld [vmem:[#allocation11 + $0x40] sm:$0xff] }
 0x22b   : > { %1641 = vmatpush.msrb.mxu2 %v1272_v17  ;;  %1661 = vmatpush.msrb.mxu3 %v1304_v41  ;;  %v1728_v17 = vld [vmem:[#allocation11 + $0x18] sm:$0xff]  ;;  %v1727_v41 = vld [vmem:[#allocation11 + $0x10] sm:$0xff] }
 0x22c   : > { %1681 = vmatpush.msrb.mxu0 %v1336_v18  ;;  %1701 = vmatpush.msrb.mxu1 %v1368_v42  ;;  %v1726_v18 = vld [vmem:[#allocation11 + $0x8] sm:$0xff]  ;;  %v1725_v42 = vld [vmem:[#allocation11] sm:$0xff] }
 0x22d   : > { %1642 = vmatpush.msrb.mxu2 %v1270_v43  ;;  %1662 = vmatpush.msrb.mxu3 %v1302_v44  ;;  %v1375_v43 = vld [vmem:[%s2746_s9] sm:$0x3] }
 0x22e   : > { %1682 = vmatpush.msrb.mxu0 %v1334_v45  ;;  %1702 = vmatpush.msrb.mxu1 %v1366_v46  ;;  %v1394_v44 = vperm.slane %v1375_v43, 0 }
 0x22f   : > { %1643 = vmatpush.msrb.mxu2 %v1268_v47  ;;  %1663 = vmatpush.msrb.mxu3 %v1300_v48 }
 0x230   : > { %1683 = vmatpush.msrb.mxu0 %v1332_v49  ;;  %1703 = vmatpush.msrb.mxu1 %v1364_v50 }
 0x231   : > { %1644 = vmatpush.msrb.mxu2 %v1266_v51  ;;  %1664 = vmatpush.msrb.mxu3 %v1298_v52 }
 0x232   : > { %1684 = vmatpush.msrb.mxu0 %v1330_v53  ;;  %1704 = vmatpush.msrb.mxu1 %v1362_v54  ;;  %v1756_v53 = vld [vmem:[#allocation11 + $0xf8] sm:$0xff]  ;;  %v1755_v54 = vld [vmem:[#allocation11 + $0xf0] sm:$0xff] }
 0x233   : > { %1645 = vmatpush.msrb.mxu2 %v1264_v55  ;;  %1665 = vmatpush.msrb.mxu3 %v1296_v56 }
 0x234   : > { %1685 = vmatpush.msrb.mxu0 %v1328_v57  ;;  %1705 = vmatpush.msrb.mxu1 %v1360_v58  ;;  %v1754_v57 = vld [vmem:[#allocation11 + $0xe8] sm:$0xff] }
 0x235   : > { %1646 = vmatpush.msrb.mxu2 %v1262_v59  ;;  %1666 = vmatpush.msrb.mxu3 %v1294_v61  ;;  %v1753_v61 = vld [vmem:[#allocation11 + $0xe0] sm:$0xff] }
 0x236   : > { %1686 = vmatpush.msrb.mxu0 %v1326_v62  ;;  %1706 = vmatpush.msrb.mxu1 %v1358_v63 }
 0x237   : > { %1647 = vmatpush.msrb.mxu2 %v1260_v0  ;;  %1667 = vmatpush.msrb.mxu3 %v1292_v1  ;;  %v1752_v0 = vld [vmem:[#allocation11 + $0xd8] sm:$0xff] }
 0x238   : > { %1687 = vmatpush.msrb.mxu0 %v1324_v2  ;;  %1707 = vmatpush.msrb.mxu1 %v1356_v3  ;;  %v1720_v2 = vstv %s2691_s22 }
 0x239   : > { %1648 = vmatpush.msrb.mxu2 %v1258_v4  ;;  %1668 = vmatpush.msrb.mxu3 %v1290_v5  ;;  %v1751_v4 = vld [vmem:[#allocation11 + $0xd0] sm:$0xff] }
 0x23a   : > { %1688 = vmatpush.msrb.mxu0 %v1322_v6  ;;  %1708 = vmatpush.msrb.mxu1 %v1354_v7  ;;  %v1750_v6 = vld [vmem:[#allocation11 + $0xc8] sm:$0xff] }
 0x23b   : > { %1649 = vmatpush.msrb.mxu2 %v1256_v8  ;;  %1669 = vmatpush.msrb.mxu3 %v1288_v9  ;;  %v1749_v8 = vld [vmem:[#allocation11 + $0xc0] sm:$0xff]  ;;  %v1748_v9 = vld [vmem:[#allocation11 + $0xb8] sm:$0xff] }
 0x23c   : > { %1689 = vmatpush.msrb.mxu0 %v1320_v10  ;;  %1709 = vmatpush.msrb.mxu1 %v1352_v11  ;;  %v1747_v10 = vld [vmem:[#allocation11 + $0xb0] sm:$0xff]  ;;  %v1746_v11 = vld [vmem:[#allocation11 + $0xa8] sm:$0xff] }
 0x23d   : > { %1650 = vmatpush.msrb.mxu2 %v1254_v12  ;;  %1670 = vmatpush.msrb.mxu3 %v1286_v13  ;;  %v1745_v12 = vld [vmem:[#allocation11 + $0xa0] sm:$0xff]  ;;  %v1744_v13 = vld [vmem:[#allocation11 + $0x98] sm:$0xff] }
 0x23e   : > { %1690 = vmatpush.msrb.mxu0 %v1318_v19  ;;  %1710 = vmatpush.msrb.mxu1 %v1350_v20  ;;  %v1743_v19 = vld [vmem:[#allocation11 + $0x90] sm:$0xff]  ;;  %v1742_v20 = vld [vmem:[#allocation11 + $0x88] sm:$0xff] }
 0x23f   : > { %1651 = vmatpush.msrb.mxu2 %v1252_v21  ;;  %1671 = vmatpush.msrb.mxu3 %v1284_v22  ;;  %v1741_v21 = vld [vmem:[#allocation11 + $0x80] sm:$0xff]  ;;  %v1395_v22 = vperm.slane %v1375_v43, 1  ;;  %v1809_v43 = vld [vmem:[#allocation13 + $0x38] sm:$0xff] }
 0x240   : > { %1691 = vmatpush.msrb.mxu0 %v1316_v23  ;;  %1711 = vmatpush.msrb.mxu1 %v1348_v24 }
 0x241   : > { %1652 = vmatpush.msrb.mxu2 %v1250_v25  ;;  %1672 = vmatpush.msrb.mxu3 %v1282_v26 }
 0x242   : > { %1692 = vmatpush.msrb.mxu0 %v1314_v27  ;;  %1712 = vmatpush.msrb.mxu1 %v1346_v28 }
 0x243   : > { %1653 = vmatpush.msrb.mxu2 %v1248_v29  ;;  %1673 = vmatpush.msrb.mxu3 %v1280_v30 }
 0x244   : > { %1693 = vmatpush.msrb.mxu0 %v1312_v31  ;;  %1713 = vmatpush.msrb.mxu1 %v1344_v32 }
 0x245   : > { %1654 = vmatmul.f32.vlgmr.msrb.gmra.mxu2 %v1381_v60  ;;  %1674 = vmatmul.f32.vlgmr.msrb.gmra.mxu3 %v1382_v35  ;;  %v1734_v60 = vld [vmem:[#allocation11 + $0x48] sm:$0xff]  ;;  %v1732_v35 = vld [vmem:[#allocation11 + $0x38] sm:$0xff] }
 0x246   : > { %1694 = vmatmul.f32.vlgmr.msrb.gmra.mxu0 %v1383_v36  ;;  %1714 = vmatmul.f32.vlgmr.msrb.gmra.mxu1 %v1384_v37  ;;  %v1731_v36 = vld [vmem:[#allocation11 + $0x30] sm:$0xff]  ;;  %v1729_v37 = vld [vmem:[#allocation11 + $0x20] sm:$0xff] }
 0x247   : > { %1758 = vmatpush.msra.mxu2 %v1740_v33  ;;  %1778 = vmatpush.msra.mxu3 %v1756_v53 }
 0x249   : > { %1759 = vmatpush.msra.mxu2 %v1739_v34  ;;  %1779 = vmatpush.msra.mxu3 %v1755_v54 }
 0x24b   : > { %1760 = vmatpush.msra.mxu2 %v1738_v38  ;;  %1780 = vmatpush.msra.mxu3 %v1754_v57 }
 0x24d   : > { %1761 = vmatpush.msra.mxu2 %v1737_v15  ;;  %1781 = vmatpush.msra.mxu3 %v1753_v61 }
 0x24f   : > { %1762 = vmatpush.msra.mxu2 %v1736_v39  ;;  %1782 = vmatpush.msra.mxu3 %v1752_v0 }
 0x251   : > { %1763 = vmatpush.msra.mxu2 %v1735_v16  ;;  %1783 = vmatpush.msra.mxu3 %v1751_v4 }
 0x253   : > { %1764 = vmatpush.msra.mxu2 %v1734_v60  ;;  %1784 = vmatpush.msra.mxu3 %v1750_v6 }
 0x255   : > { %1765 = vmatpush.msra.mxu2 %v1733_v40  ;;  %1785 = vmatpush.msra.mxu3 %v1749_v8 }
 0x257   : > { %1766 = vmatpush.msra.mxu2 %v1732_v35  ;;  %1786 = vmatpush.msra.mxu3 %v1748_v9  ;;  %v1817_v35 = vld [vmem:[#allocation13 + $0x78] sm:$0xff] }
 0x258   : > { %1819 = vmatpush.msra.mxu0 %v1817_v35 }
 0x259   : > { %1767 = vmatpush.msra.mxu2 %v1731_v36  ;;  %1787 = vmatpush.msra.mxu3 %v1747_v10  ;;  %v1816_v36 = vld [vmem:[#allocation13 + $0x70] sm:$0xff] }
 0x25a   : > { %1820 = vmatpush.msra.mxu0 %v1816_v36 }
 0x25b   : > { %1768 = vmatpush.msra.mxu2 %v1730_v14  ;;  %1788 = vmatpush.msra.mxu3 %v1746_v11  ;;  %v1815_v14 = vld [vmem:[#allocation13 + $0x68] sm:$0xff] }
 0x25c   : > { %1821 = vmatpush.msra.mxu0 %v1815_v14 }
 0x25d   : > { %1769 = vmatpush.msra.mxu2 %v1729_v37  ;;  %1789 = vmatpush.msra.mxu3 %v1745_v12  ;;  %v1814_v37 = vld [vmem:[#allocation13 + $0x60] sm:$0xff] }
 0x25e   : > { %1822 = vmatpush.msra.mxu0 %v1814_v37 }
 0x25f   : > { %1770 = vmatpush.msra.mxu2 %v1728_v17  ;;  %1790 = vmatpush.msra.mxu3 %v1744_v13  ;;  %v1813_v17 = vld [vmem:[#allocation13 + $0x58] sm:$0xff] }
 0x260   : > { %1823 = vmatpush.msra.mxu0 %v1813_v17 }
 0x261   : > { %1771 = vmatpush.msra.mxu2 %v1727_v41  ;;  %1791 = vmatpush.msra.mxu3 %v1743_v19  ;;  %v1812_v41 = vld [vmem:[#allocation13 + $0x50] sm:$0xff] }
 0x262   : > { %1824 = vmatpush.msra.mxu0 %v1812_v41 }
 0x263   : > { %1772 = vmatpush.msra.mxu2 %v1726_v18  ;;  %1792 = vmatpush.msra.mxu3 %v1742_v20  ;;  %v1811_v18 = vld [vmem:[#allocation13 + $0x48] sm:$0xff] }
 0x264   : > { %1825 = vmatpush.msra.mxu0 %v1811_v18 }
 0x265   : > { %1773 = vmatpush.msra.mxu2 %v1725_v42  ;;  %1793 = vmatpush.msra.mxu3 %v1741_v21  ;;  %v1810_v42 = vld [vmem:[#allocation13 + $0x40] sm:$0xff] }
 0x266   : > { %1826 = vmatpush.msra.mxu0 %v1810_v42 }
 0x268   : > { %1827 = vmatpush.msra.mxu0 %v1809_v43 }
 0x27d   : > { %v1455_v49 = vpop.f32.mrf.mxu0  ;;  %v1475_v51 = vpop.f32.mrf.mxu1 }
 0x282   : > { %v1415_v45 = vpop.f32.mrf.mxu2  ;;  %v1435_v47 = vpop.f32.mrf.mxu3 }
 0x283   : > { %v1416_v46 = vadd.f32 %v1415_v45, %v1394_v44  ;;  %v1808_v44 = vld [vmem:[#allocation13 + $0x30] sm:$0xff]  ;;  %v1807_v45 = vld [vmem:[#allocation13 + $0x28] sm:$0xff] }
 0x284   : > { %1828 = vmatpush.msra.mxu0 %v1808_v44 }
 0x285   : > { %v1436_v48 = vadd.f32 %v1435_v47, %v1416_v46  ;;  %v1806_v46 = vld [vmem:[#allocation13 + $0x20] sm:$0xff]  ;;  %v1805_v47 = vld [vmem:[#allocation13 + $0x18] sm:$0xff] }
 0x286   : > { %1829 = vmatpush.msra.mxu0 %v1807_v45 }
 0x287   : > { %v1456_v50 = vadd.f32 %v1455_v49, %v1436_v48  ;;  %v1535_v62 = vpop.f32.mrf.mxu0  ;;  %v1555_v1 = vpop.f32.mrf.mxu1  ;;  %v1804_v48 = vld [vmem:[#allocation13 + $0x10] sm:$0xff]  ;;  %v1803_v49 = vld [vmem:[#allocation13 + $0x8] sm:$0xff] }
 0x288   : > { %1830 = vmatpush.msra.mxu0 %v1806_v46 }
 0x289   : > { %v1476_v52 = vadd.f32 %v1475_v51, %v1456_v50  ;;  %v1802_v50 = vld [vmem:[#allocation13] sm:$0xff] }
 0x28a   : > { %1831 = vmatpush.msra.mxu0 %v1805_v47  ;;  %v1757_v51 = vld [vmem:[%s2748_s11] sm:$0x1] }
 0x28c   : > { %v1495_v55 = vpop.f32.mrf.mxu2  ;;  %v1515_v58 = vpop.f32.mrf.mxu3  ;;  %1832 = vmatpush.msra.mxu0 %v1804_v48 }
 0x28d   : > { %v1496_v56 = vadd.f32 %v1495_v55, %v1476_v52  ;;  %v1799_v55 = vstv %s2005_s25  ;;  %s2323_s25 = scalar_lea.hbm %s2783_s27, 2 }
 0x28e   : > { %1833 = vmatpush.msra.mxu0 %v1803_v49  ;;  %p2325_p6 = scmp.lt.s32.totalorder %s2323_s25, %s2319_s24 }
 0x28f   : > { %v1516_v59 = vadd.f32 %v1515_v58, %v1496_v56 }
 0x290   : > { %1834 = vmatpush.msra.mxu0 %v1802_v50  ;;  %p2326_p7 = por %p2325_p6, %p2324_p5 }
 0x291   : > { %v1536_v63 = vadd.f32 %v1535_v62, %v1516_v59  ;;  %v1818_v59 = vld [vmem:[%s2785_s6] sm:$0x1] }
 0x292   : > { %p2327_p9 = pnand %p2326_p7, %p2322_p3 }
 0x293   : > { %v1556_v3 = vadd.f32 %v1555_v1, %v1536_v63 }
 0x295   : > { %vm1718_vm14 = vcmp.gt.f32.partialorder %v1556_v3, 0.0  ;;  %v1721_v5 = vmul.f32 %v1720_v2, %v1556_v3 }
 0x297   : > { %v1723_v7 = vsel %vm1718_vm14, %v1556_v3, %v1721_v5 }
 0x298   : > { %1774 = vmatmul.f32.vlgmr.msra.gmra.mxu2 %v1723_v7 }
 0x2a1   : > { %v1615_v27 = vpop.f32.mrf.mxu0  ;;  %v1635_v29 = vpop.f32.mrf.mxu1 }
 0x2a6   : > { %v1575_v23 = vpop.f32.mrf.mxu2  ;;  %v1595_v25 = vpop.f32.mrf.mxu3 }
 0x2a7   : > { %v1576_v24 = vadd.f32 %v1575_v23, %v1395_v22 }
 0x2a9   : > { %v1596_v26 = vadd.f32 %v1595_v25, %v1576_v24 }
 0x2ab   : > { %v1616_v28 = vadd.f32 %v1615_v27, %v1596_v26 }
 0x2ad   : > { %v1636_v30 = vadd.f32 %v1635_v29, %v1616_v28 }
 0x2c3   : > { %v1695_v38 = vpop.f32.mrf.mxu0  ;;  %v1715_v39 = vpop.f32.mrf.mxu1 }
 0x2c8   : > { %v1655_v31 = vpop.f32.mrf.mxu2  ;;  %v1675_v33 = vpop.f32.mrf.mxu3 }
 0x2c9   : > { %v1656_v32 = vadd.f32 %v1655_v31, %v1636_v30 }
 0x2cb   : > { %v1676_v34 = vadd.f32 %v1675_v33, %v1656_v32 }
 0x2cd   : > { %v1696_v15 = vadd.f32 %v1695_v38, %v1676_v34 }
 0x2cf   : > { %v1716_v16 = vadd.f32 %v1715_v39, %v1696_v15 }
 0x2d1   : > { %vm1719_vm15 = vcmp.gt.f32.partialorder %v1716_v16, 0.0  ;;  %v1722_v60 = vmul.f32 %v1720_v2, %v1716_v16 }
 0x2d3   : > { %v1724_v40 = vsel %vm1719_vm15, %v1716_v16, %v1722_v60 }
 0x2d4   : > { %1794 = vmatmul.f32.vlgmr.msra.gmra.mxu3 %v1724_v40 }
 0x31b   : > { %v1775_v52 = vpop.f32.mrf.mxu2 }
 0x31c   : > { %v1776_v53 = vadd.f32 %v1775_v52, %v1757_v51 }
 0x357   : > { %v1795_v54 = vpop.f32.mrf.mxu3 }
 0x358   : > { %v1796_v56 = vadd.f32 %v1795_v54, %v1776_v53 }
 0x35a   : > { %vm1798_vm0 = vcmp.gt.f32.partialorder %v1796_v56, 0.0  ;;  %v1800_v57 = vmul.f32 %v1799_v55, %v1796_v56 }
 0x35c   : > { %v1801_v58 = vsel %vm1798_vm0, %v1796_v56, %v1800_v57 }
 0x35d   : > { %1835 = vmatmul.f32.vlgmr.msra.gmra.mxu0 %v1801_v58 }
 0x3da   : > { %v1836_v61 = vpop.f32.mrf.mxu0 }
 0x3db   : > { %v1837_v62 = vadd.f32 %v1836_v61, %v1818_v59 }
 0x3dd   : > { %1839 = vst [vmem:[%s579_s17] sm:$0x1] %v1837_v62 }
 0x3de   : > { %2330 = shalt.err (!%p2327_p9)
}
 0x3df   : > { %2038 = dma.vmem_to_hbm [thread:$0]  (%p2526_p4), %s1852_s13, 16, %s1854_s23, %s1841_s14  }
 0x3e0 PF: > { %s2786_s29 = sld [smem:[#allocation23_spill]] }
 0x3e1   : > { %s2787_s18 = sld [smem:[#allocation20_spill]] }
 0x3e6   : > { %p2075_p10 = scmp.ge.s32.totalorder %s2786_s29, 2 }
 0x3e7   : > { %s1865_s19 = sand.u32 1, %s2787_s18  }
 0x3e8   : > { %p2060_p11 = pnand %p2075_p10, %p2533_p8  ;;  %s1866_s21 = scalar_lea.sflag [#allocation5], %s1865_s19 }
 0x3ea   : > { %p2061_p12 = pneg %p2060_p11 }
 0x3ec   : > { %2372 = dma.done.wait (%p2061_p12), %s1866_s21, 16  }
 0x3ed   : > { %2374 = vsyncadd (%p2061_p12), %s1866_s21, 4294967280  ;;  %s31_s18 = sadd.s32 1, %s2786_s29   ;;  %s2789_s20 = sld [smem:[#allocation21_spill]] }
 0x3ee   : > { %p28_p13 = scmp.ge.s32.totalorder %s31_s18, 4   ;;  %s2790_s15 = sld [smem:[#allocation27_spill]] }
 0x3ef   : > { %s2791_s16 = sld [smem:[#allocation22_spill]]  ;;  %s2793_s29 = smov %s2381_s30 }
 0x3f0   : > { %s2792_s17 = sld [smem:[#allocation24_spill]]  ;;  %30 = sbr.rel (!%p28_p13) target bundleno = 14 (0xe), region = 145 }
 0x3f3   : > { %s2794_s30 = smov %s2789_s20 }
 0x3f5   :  { %1871 = vsyncpa [#allocation4], 1 }
 0x3f6   :  { %1873 = vsyncpa [#allocation4 + $0x1], 1 }
 0x3f7   :  { %1874 = vsyncpa [#allocation9], 1 }
 0x3f8   :  { %1875 = vsyncpa [#allocation12], 1 }
 0x3f9   :  { %1876 = vsyncpa [#allocation5], 1 }
 0x3fa   :  { %1878 = vsyncpa [#allocation5 + $0x1], 1 }
 0x3fb   :  { %1879 = vsyncpa [#allocation6], 1 }
 0x3fc   :  { %1881 = vsyncpa [#allocation6 + $0x1], 1 }

// kernel: tpu_custom_call.1
= control target key start
LH: loop header
LB: loop body
LE: loop exit
PB: predicated region body
PF: predicated region fallthrough
CT: control target
= control target key end

     0   :  { %s2737_s0 = inlined_call_operand.vmem [shape: f32[4], index: 0, kind: input, shape index: {}]   ;;  %s2738_s1 = inlined_call_operand.vmem [shape: f32[2,16,6], index: 1, kind: input, shape index: {}]   ;;  %s2739_s2 = inlined_call_operand.vmem [shape: f32[6,64], index: 2, kind: input, shape index: {}]   ;;  %s2740_s3 = inlined_call_operand.vmem [shape: f32[1,64], index: 3, kind: input, shape index: {}]   ;;  %s2741_s4 = inlined_call_operand.hbm [shape: f32[64,128], index: 4, kind: input, shape index: {}]   ;;  %s2742_s5 = inlined_call_operand.vmem [shape: f32[1,128], index: 5, kind: input, shape index: {}]   ;;  %s2743_s6 = inlined_call_operand.hbm [shape: f32[128,1024], index: 6, kind: input, shape index: {}]   ;;  %s2744_s7 = inlined_call_operand.vmem [shape: f32[1,1024], index: 7, kind: input, shape index: {}]   ;;  %s2745_s8 = inlined_call_operand.hbm [shape: f32[1024,256], index: 8, kind: input, shape index: {}]   ;;  %s2746_s9 = inlined_call_operand.vmem [shape: f32[1,256], index: 9, kind: input, shape index: {}]   ;;  %s2747_s10 = inlined_call_operand.hbm [shape: f32[256,128], index: 10, kind: input, shape index: {}]   ;;  %s2748_s11 = inlined_call_operand.vmem [shape: f32[1,128], index: 11, kind: input, shape index: {}]   ;;  %s2749_s12 = inlined_call_operand.hbm [shape: f32[128,128], index: 12, kind: input, shape index: {}]   ;;  %s2750_s13 = inlined_call_operand.vmem [shape: f32[1,128], index: 13, kind: input, shape index: {}]   ;;  %s2751_s14 = inlined_call_operand.hbm [shape: f32[2,1,128], index: 14, kind: output, shape index: {}]  }
   0x1   :  { %2762 = sst [smem:[#allocation28_spill]] %s2737_s0 }
   0x2   :  { %2763 = sst [smem:[#allocation29_spill]] %s2741_s4 }
   0x3   :  { %2764 = sst [smem:[#allocation30_spill]] %s2743_s6 }
   0x4   :  { %2765 = sst [smem:[#allocation31_spill]] %s2750_s13 }
   0x5   :  { %2766 = sst [smem:[#allocation32_spill]] %s2751_s14 }
   0x6   :  { %19 = vsyncpa [#allocation6], 0 }
   0x7   :  { %20 = vsyncpa [#allocation4], 0 }
   0x8   :  { %21 = vsyncpa [#allocation9], 0 }
   0x9   :  { %22 = vsyncpa [#allocation12], 0 }
   0xa   :  { %23 = vsyncpa [#allocation5], 0 }
   0xb   :  { %25 = vsyncpa [#allocation5 + $0x1], 0  ;;  %s2486_s29 = smov 0   ;;  %s2488_s30 = smov 0  }
   0xc   :  { %s2490_s15 = smov 0   ;;  %s2492_s16 = smov 0  }
   0xd   :  { %s2494_s17 = smov 0   ;;  %s2496_s18 = smov 0  }
   0xe LB: > { %2767 = sst [smem:[#allocation20_spill]] %s2377_s29  ;;  %s1984_s19 = sadd.s32 4294967295, %s2397_s18   ;;  %s2397_s18 = sphi %s2496_s18, %s31_s18   ;;  %s2393_s17 = sphi %s2494_s17, %s2792_s17   ;;  %s2389_s16 = sphi %s2492_s16, %s2791_s16   ;;  %s2385_s15 = sphi %s2490_s15, %s2790_s15   ;;  %s2381_s30 = sphi %s2488_s30, %s2794_s30   ;;  %s2377_s29 = sphi %s2486_s29, %s2793_s29  }
   0xf   : > { %2768 = sst [smem:[#allocation21_spill]] %s2385_s15  ;;  %s1985_s20 = sadd.s32 4294967294, %s2397_s18  }
  0x10   : > { %2769 = sst [smem:[#allocation22_spill]] %s2393_s17  ;;  %s43_s21 = sadd.s32 1, %s2393_s17 }
  0x11   : > { %2770 = sst [smem:[#allocation23_spill]] %s2397_s18  ;;  %s351_s22 = sadd.s32 1, %s2385_s15 }
  0x12   : > { %p45_p0 = scmp.ge.s32.totalorder %s43_s21, 2  ;;  %p361_p1 = scmp.ne.s32.totalorder %s2385_s15, %s2381_s30 }
  0x13   : > { %p362_p2 = scmp.eq.s32.totalorder %s1984_s19, 1  ;;  %p367_p3 = scmp.ne.s32.totalorder %s2381_s30, %s2377_s29 }
  0x14   : > { %s2796_s21 = smov (%p45_p0, %s43_s21), 0  ;;  %p368_p5 = scmp.eq.s32.totalorder %s1985_s20, 1 }
  0x15   : > { %2771 = sst [smem:[#allocation24_spill]] %s2796_s21  ;;  %p2526_p4 = por %p362_p2, %p361_p1 }
  0x16   : > { %s348_s24 = ssub.s32 %s2393_s17, %s2796_s21  ;;  %p1986_p6 = scmp.ge.s32.totalorder %s2397_s18, 1 }
  0x17   : > { %s2772_s23 = scalar_select %p2526_p4, 1, 0 }
  0x18   : > { %p349_p7 = scmp.eq.s32.totalorder %s348_s24, 0  ;;  %p2533_p8 = por %p368_p5, %p367_p3 }
  0x19   : > { %2773 = sst [smem:[#allocation25_spill]] %s2772_s23  ;;  %p375_p9 = scmp.lt.s32.totalorder %s2397_s18, 3 }
  0x1a   : > { %s2774_s25 = scalar_select %p2533_p8, 1, 0 }
  0x1b   : > { %s2539_s26 = scalar_select %p349_p7, %s2385_s15, %s351_s22  }
  0x1c   : > { %2775 = sst [smem:[#allocation26_spill]] %s2774_s25  ;;  %p2541_p10 = pnand %p1986_p6, %p375_p9 }
  0x1d   : > { %2776 = sst [smem:[#allocation27_spill]] %s2539_s26  ;;  %p2545_p11 = scmp.eq.s32.totalorder %s1984_s19, 0 }
  0x1e   : > { %s2779_s6 = sld [smem:[#allocation30_spill]]  ;;  %p2040_p12 = pneg %p2541_p10 }
  0x1f   : > { %s2399_s17 = smov [#allocation8]   ;;  %s2400_s19 = smov 1024  }
  0x20   : > { %s421_s22 = sshll.u32 %s2399_s17, 4  ;;  %p2556_p13 = pnand %p2545_p11, %p2040_p12  ;;  %s422_s22 = int_to_ptr.vmem [resolvable:$true] %s421_s22 }
  0x21   : > { %s2401_s15 = smov 64   ;;  %s2402_s25 = smov [#allocation11]  }
  0x22   : > { %s455_s17 = sshll.u32 %s2402_s25, 4  ;;  %s2403_s29 = smov 128   ;;  %s456_s17 = int_to_ptr.vmem [resolvable:$true] %s455_s17 }
  0x23   : > { %s2404_s18 = smov 8   ;;  %s2781_s0 = sld [smem:[#allocation28_spill]] }
  0x24   : > { %s419_s24 = sshll.u32 %s2779_s6, 4  ;;  %s453_s6 = sshll.u32 %s2747_s10, 4  ;;  %s420_s24 = int_to_ptr.hbm [resolvable:$true] %s419_s24  ;;  %s454_s6 = int_to_ptr.hbm [resolvable:$true] %s453_s6 }
  0x25   : > { %2049 = dma.hbm_to_vmem [thread:$0]  (!%p2556_p13), %s420_s24, 16384, %s422_s22, [#allocation9], %s2400_s19, %s2400_s19, %s2401_s15  }
  0x26   : > { %2055 = dma.hbm_to_vmem [thread:$0]  (!%p2556_p13), %s454_s6, 4096, %s456_s17, [#allocation12], %s2403_s29, %s2403_s29, %s2404_s18  }
  0x27   : > { %s2405_s15 = smov [#allocation3]   ;;  %s2782_s4 = sld [smem:[#allocation29_spill]] }
  0x28   : > { %s2406_s25 = smov [#allocation7]   ;;  %s436_s17 = sshll.u32 %s2745_s8, 4  ;;  %s437_s17 = int_to_ptr.hbm [resolvable:$true] %s436_s17 }
  0x29   : > { %s387_s14 = sshll.u32 %s2781_s0, 4  ;;  %s404_s21 = sshll.u32 %s2406_s25, 4  ;;  %s388_s14 = int_to_ptr.vmem [resolvable:$true] %s387_s14  ;;  %s405_s21 = int_to_ptr.vmem [resolvable:$true] %s404_s21 }
  0x2a   : > { %2043 = dma.vmem_to_smem (!%p2556_p13), %s388_s14, 16, %s2405_s15, [#allocation6]  }
  0x2b   : > { %s2407_s13 = smov [#allocation10]   ;;  %s2408_s14 = smov 256  }
  0x2c   : > { %s438_s23 = sshll.u32 %s2407_s13, 4  ;;  %s2409_s15 = smov 16   ;;  %s439_s23 = int_to_ptr.vmem [resolvable:$true] %s438_s23 }
  0x2d   : > { %s402_s19 = sshll.u32 %s2782_s4, 4  ;;  %s470_s25 = sshll.u32 %s2749_s12, 4  ;;  %s403_s19 = int_to_ptr.hbm [resolvable:$true] %s402_s19  ;;  %s471_s25 = int_to_ptr.hbm [resolvable:$true] %s470_s25 }
  0x2e   : > { %2046 = dma.hbm_to_vmem [thread:$0]  (!%p2556_p13), %s403_s19, 1024, %s405_s21, [#allocation4], %s2403_s29, %s2403_s29, %s2404_s18  }
  0x2f   : > { %2052 = dma.hbm_to_vmem [thread:$0]  (!%p2556_p13), %s437_s17, 32768, %s439_s23, [#allocation9], %s2408_s14, %s2408_s14, %s2409_s15  }
  0x30   : > { %s2410_s0 = smov [#allocation13]   ;;  %504 = sbr.rel (%p2541_p10) target bundleno = 992 (0x3e0), region = 76 }
  0x31   : > { %s472_s4 = sshll.u32 %s2410_s0, 4  ;;  %s473_s4 = int_to_ptr.vmem [resolvable:$true] %s472_s4 }
  0x32   : > { %2058 = dma.hbm_to_vmem [thread:$0]  (!%p2556_p13), %s471_s25, 2048, %s473_s4, [#allocation12], %s2403_s29, %s2403_s29, %s2404_s18  }
  0x35   : > { %2356 = dma.done.wait (%p2545_p11), [#allocation6], 16  }
  0x36   : > { %2358 = vsyncadd (%p2545_p11), [#allocation6], 4294967280 }
  0x37   : > { %2360 = dma.done.wait (%p2545_p11), [#allocation4], 1024  }
  0x38   : > { %2362 = vsyncadd (%p2545_p11), [#allocation4], 4294966272 }
  0x39   : > { %2364 = dma.done.wait (%p2545_p11), [#allocation9], 49152  }
  0x3a   : > { %2366 = vsyncadd (%p2545_p11), [#allocation9], 4294918144 }
  0x3b   : > { %2368 = dma.done.wait (%p2545_p11), [#allocation12], 6144  }
  0x3c   : > { %2370 = vsyncadd (%p2545_p11), [#allocation12], 4294961152 }
  0x3d   : > { %536 = sfence }
  0x3e   : > { %v596_v0 = vld [vmem:[%s2739_s2] sm:$0x3f]  ;;  %vm608_vm0 = vcmask 1045504   ;;  %p581_p0 = scmp.lt.s32.totalorder %s2389_s16, 1  ;;  %v649_v1 = vld [vmem:[#allocation7 + $0x38] sm:$0xff]  ;;  %v648_v2 = vld [vmem:[#allocation7 + $0x30] sm:$0xff] }
  0x3f   : > { %2006 = vmatpush.msk.msra.mxu1 %vm608_vm0, %v596_v0  ;;  %v647_v3 = vld [vmem:[#allocation7 + $0x28] sm:$0xff]  ;;  %vm601_vm1 = vcmask 48128   ;;  %v646_v4 = vld [vmem:[#allocation7 + $0x20] sm:$0xff]  ;;  %v645_v6 = vld [vmem:[#allocation7 + $0x18] sm:$0xff]  ;;  %s2613_s19 = sld [smem:[#allocation3]]  ;;  %vm654_vm3 = vcmask 523264  }
  0x40   : > { %s582_s29 = scalar_select %p581_p0, %s2389_s16, 1  ;;  %v644_v8 = vld [vmem:[#allocation7 + $0x10] sm:$0xff]  ;;  %v643_v9 = vld [vmem:[#allocation7 + $0x8] sm:$0xff]  ;;  %v642_v10 = vld [vmem:[#allocation7] sm:$0xff]  ;;  %vm1098_vm7 = vcmask 1040384   ;;  %vm1100_vm8 = vcmask 1042434  }
  0x41   : > { %669 = vmatpush.msrb.mxu1 %v649_v1  ;;  %v816_v11 = vld [vmem:[#allocation8 + $0x3c0] sm:$0xff]  ;;  %v817_v12 = vld [vmem:[#allocation8 + $0x3c8] sm:$0xff]  ;;  %v818_v13 = vld [vmem:[#allocation8 + $0x3d0] sm:$0xff]  ;;  %s2621_s6 = sld [smem:[#allocation3 + $0x1]]  ;;  %vm1102_vm9 = vcmask 1041408   ;;  %vm1106_vm10 = vcmask 1046534  }
  0x42   : > { %s2013_s18 = sshll.u32 %s582_s29, 4  ;;  %842 = vmatpush.msra.mxu2 %v816_v11  ;;  %865 = vmatpush.msra.mxu3 %v817_v12  ;;  %v819_v14 = vld [vmem:[#allocation8 + $0x3d8] sm:$0xff]  ;;  %v808_v15 = vld [vmem:[#allocation8 + $0x380] sm:$0xff]  ;;  %v809_v16 = vld [vmem:[#allocation8 + $0x388] sm:$0xff]  ;;  %vm1104_vm11 = vcmask 1044484   ;;  %vm1108_vm12 = vcmask 1045508  }
  0x43   : > { %670 = vmatpush.msrb.mxu1 %v648_v2  ;;  %s588_s28 = scalar_lea.vmem %s2738_s1, %s2013_s18  ;;  %888 = vmatpush.msra.mxu0 %v818_v13  ;;  %v810_v17 = vld [vmem:[#allocation8 + $0x390] sm:$0xff]  ;;  %v811_v18 = vld [vmem:[#allocation8 + $0x398] sm:$0xff]  ;;  %v800_v19 = vld [vmem:[#allocation8 + $0x340] sm:$0xff]  ;;  %vm1110_vm13 = vcmask 1043456   ;;  %s2691_s22 = sld [smem:[#allocation3 + $0x2]] }
  0x44   : > { %v594_v5 = vld [vmem:[%s588_s28] sm:$0xff]  ;;  %v595_v7 = vld [vmem:[%s588_s28 + $0x8] sm:$0xff]  ;;  %843 = vmatpush.msra.mxu2 %v808_v15  ;;  %866 = vmatpush.msra.mxu3 %v809_v16  ;;  %v802_v21 = vld [vmem:[#allocation8 + $0x350] sm:$0xff]  ;;  %s2005_s25 = sld [smem:[#allocation3 + $0x3]]  ;;  %s578_s29 = sand.u32 1, %s2381_s30  }
  0x45   : > { %671 = vmatpush.msrb.mxu1 %v647_v3  ;;  %v801_v20 = vld [vmem:[#allocation8 + $0x348] sm:$0xff]  ;;  %v803_v22 = vld [vmem:[#allocation8 + $0x358] sm:$0xff]  ;;  %889 = vmatpush.msra.mxu0 %v810_v17  ;;  %v792_v23 = vld [vmem:[#allocation8 + $0x300] sm:$0xff]  ;;  %v637_v53 = vstv %s2613_s19  ;;  %s2783_s27 = sld [smem:[#allocation32_spill]]  ;;  %s579_s17 = scalar_lea.vmem [#allocation14], %s578_s29 }
  0x46   : > { %2007 = vmatmul.msk.f32.vlgmr.msra.gmra.mxu1 %vm601_vm1, %v594_v5  ;;  %v793_v24 = vld [vmem:[#allocation8 + $0x308] sm:$0xff]  ;;  %844 = vmatpush.msra.mxu2 %v800_v19  ;;  %v794_v25 = vld [vmem:[#allocation8 + $0x310] sm:$0xff]  ;;  %v795_v26 = vld [vmem:[#allocation8 + $0x318] sm:$0xff]  ;;  %s1851_s13 = sshll.u32 %s579_s17, 4  ;;  %s1841_s14 = scalar_lea.sflag [#allocation5], %s578_s29  ;;  %s1852_s13 = int_to_ptr.vmem [resolvable:$true] %s1851_s13 }
  0x47   : > { %672 = vmatpush.msrb.mxu1 %v646_v4  ;;  %867 = vmatpush.msra.mxu3 %v801_v20  ;;  %v784_v27 = vld [vmem:[#allocation8 + $0x2c0] sm:$0xff]  ;;  %v785_v28 = vld [vmem:[#allocation8 + $0x2c8] sm:$0xff]  ;;  %v786_v29 = vld [vmem:[#allocation8 + $0x2d0] sm:$0xff] }
  0x48   : > { %890 = vmatpush.msra.mxu0 %v802_v21  ;;  %845 = vmatpush.msra.mxu2 %v792_v23  ;;  %v787_v30 = vld [vmem:[#allocation8 + $0x2d8] sm:$0xff]  ;;  %v776_v31 = vld [vmem:[#allocation8 + $0x280] sm:$0xff]  ;;  %v777_v32 = vld [vmem:[#allocation8 + $0x288] sm:$0xff] }
  0x49   : > { %673 = vmatpush.msrb.mxu1 %v645_v6  ;;  %868 = vmatpush.msra.mxu3 %v793_v24  ;;  %v778_v33 = vld [vmem:[#allocation8 + $0x290] sm:$0xff]  ;;  %v779_v34 = vld [vmem:[#allocation8 + $0x298] sm:$0xff]  ;;  %v768_v35 = vld [vmem:[#allocation8 + $0x240] sm:$0xff] }
  0x4a   : > { %891 = vmatpush.msra.mxu0 %v794_v25  ;;  %846 = vmatpush.msra.mxu2 %v784_v27  ;;  %v769_v36 = vld [vmem:[#allocation8 + $0x248] sm:$0xff]  ;;  %v770_v37 = vld [vmem:[#allocation8 + $0x250] sm:$0xff]  ;;  %v771_v38 = vld [vmem:[#allocation8 + $0x258] sm:$0xff] }
  0x4b   : > { %674 = vmatpush.msrb.mxu1 %v644_v8  ;;  %869 = vmatpush.msra.mxu3 %v785_v28  ;;  %v760_v39 = vld [vmem:[#allocation8 + $0x200] sm:$0xff]  ;;  %v761_v40 = vld [vmem:[#allocation8 + $0x208] sm:$0xff]  ;;  %v762_v41 = vld [vmem:[#allocation8 + $0x210] sm:$0xff]  ;;  %s1849_s19 = scalar_lea.hbm %s2783_s27, %s2389_s16 }
  0x4c   : > { %892 = vmatpush.msra.mxu0 %v786_v29  ;;  %847 = vmatpush.msra.mxu2 %v776_v31  ;;  %v763_v42 = vld [vmem:[#allocation8 + $0x218] sm:$0xff]  ;;  %v752_v43 = vld [vmem:[#allocation8 + $0x1c0] sm:$0xff]  ;;  %v753_v44 = vld [vmem:[#allocation8 + $0x1c8] sm:$0xff]  ;;  %s1853_s23 = sshll.u32 %s1849_s19, 4  ;;  %s1854_s23 = int_to_ptr.hbm [resolvable:$true] %s1853_s23 }
  0x4d   : > { %675 = vmatpush.msrb.mxu1 %v643_v9  ;;  %870 = vmatpush.msra.mxu3 %v777_v32  ;;  %v2136_v45 = vld [vmem:[%s2740_s3] ss:$0 sm:$0xff]  ;;  %v754_v46 = vld [vmem:[#allocation8 + $0x1d0] sm:$0xff]  ;;  %v755_v47 = vld [vmem:[#allocation8 + $0x1d8] sm:$0xff]  ;;  %s2317_s15 = sshra.s32 %s1854_s23, 4  ;;  %s2318_s15 = int_to_ptr.hbm [resolvable:$true] %s2317_s15 }
  0x4e   : > { %2008 = vmatmul.msk.f32.gmra.mxu1 %vm601_vm1, %v595_v7  ;;  %893 = vmatpush.msra.mxu0 %v778_v33  ;;  %v744_v48 = vld [vmem:[#allocation8 + $0x180] sm:$0xff]  ;;  %v745_v49 = vld [vmem:[#allocation8 + $0x188] sm:$0xff]  ;;  %v746_v50 = vld [vmem:[#allocation8 + $0x190] sm:$0xff]  ;;  %s2319_s24 = scalar_lea.hbm %s2318_s15, 1  ;;  %p2324_p5 = scmp.lt.s32.totalorder %s2318_s15, %s2783_s27 }
  0x4f   : > { %676 = vmatpush.msrb.mxu1 %v642_v10  ;;  %848 = vmatpush.msra.mxu2 %v768_v35  ;;  %v747_v51 = vld [vmem:[#allocation8 + $0x198] sm:$0xff]  ;;  %v736_v54 = vld [vmem:[#allocation8 + $0x140] sm:$0xff]  ;;  %v737_v55 = vld [vmem:[#allocation8 + $0x148] sm:$0xff]  ;;  %p2320_p1 = scmp.ne.s32.totalorder %s2318_s15, %s2319_s24 }
  0x50   : > { %871 = vmatpush.msra.mxu3 %v769_v36  ;;  %894 = vmatpush.msra.mxu0 %v770_v37  ;;  %v738_v57 = vld [vmem:[#allocation8 + $0x150] sm:$0xff]  ;;  %v739_v58 = vld [vmem:[#allocation8 + $0x158] sm:$0xff]  ;;  %v728_v59 = vld [vmem:[#allocation8 + $0x100] sm:$0xff] }
  0x51   : > { %911 = vmatpush.msra.mxu1 %v819_v14  ;;  %849 = vmatpush.msra.mxu2 %v760_v39  ;;  %v729_v60 = vld [vmem:[#allocation8 + $0x108] sm:$0xff]  ;;  %v730_v62 = vld [vmem:[#allocation8 + $0x110] sm:$0xff]  ;;  %v731_v63 = vld [vmem:[#allocation8 + $0x118] sm:$0xff]  ;;  %p2321_p2 = pnand %p2320_p1, %p2526_p4 }
  0x52   : > { %872 = vmatpush.msra.mxu3 %v761_v40  ;;  %895 = vmatpush.msra.mxu0 %v762_v41  ;;  %v720_v0 = vld [vmem:[#allocation8 + $0xc0] sm:$0xff]  ;;  %v721_v2 = vld [vmem:[#allocation8 + $0xc8] sm:$0xff]  ;;  %v722_v3 = vld [vmem:[#allocation8 + $0xd0] sm:$0xff] }
  0x53   : > { %912 = vmatpush.msra.mxu1 %v811_v18  ;;  %850 = vmatpush.msra.mxu2 %v752_v43  ;;  %v723_v4 = vld [vmem:[#allocation8 + $0xd8] sm:$0xff]  ;;  %v712_v5 = vld [vmem:[#allocation8 + $0x80] sm:$0xff]  ;;  %v713_v6 = vld [vmem:[#allocation8 + $0x88] sm:$0xff]  ;;  %p2322_p3 = pneg %p2321_p2 }
  0x54   : > { %873 = vmatpush.msra.mxu3 %v753_v44  ;;  %896 = vmatpush.msra.mxu0 %v754_v46  ;;  %v714_v7 = vld [vmem:[#allocation8 + $0x90] sm:$0xff]  ;;  %v715_v9 = vld [vmem:[#allocation8 + $0x98] sm:$0xff]  ;;  %v704_v10 = vld [vmem:[#allocation8 + $0x40] sm:$0xff] }
  0x55   : > { %913 = vmatpush.msra.mxu1 %v803_v22  ;;  %851 = vmatpush.msra.mxu2 %v744_v48  ;;  %v705_v12 = vld [vmem:[#allocation8 + $0x48] sm:$0xff]  ;;  %v706_v13 = vld [vmem:[#allocation8 + $0x50] sm:$0xff]  ;;  %v707_v14 = vld [vmem:[#allocation8 + $0x58] sm:$0xff] }
  0x56   : > { %874 = vmatpush.msra.mxu3 %v745_v49  ;;  %897 = vmatpush.msra.mxu0 %v746_v50  ;;  %v696_v15 = vld [vmem:[#allocation8] sm:$0xff]  ;;  %v697_v17 = vld [vmem:[#allocation8 + $0x8] sm:$0xff]  ;;  %v698_v18 = vld [vmem:[#allocation8 + $0x10] sm:$0xff] }
  0x57   : > { %914 = vmatpush.msra.mxu1 %v795_v26  ;;  %852 = vmatpush.msra.mxu2 %v736_v54  ;;  %v699_v19 = vld [vmem:[#allocation8 + $0x18] sm:$0xff]  ;;  %v820_v21 = vld [vmem:[#allocation8 + $0x3e0] sm:$0xff]  ;;  %v821_v22 = vld [vmem:[#allocation8 + $0x3e8] sm:$0xff] }
  0x58   : > { %875 = vmatpush.msra.mxu3 %v737_v55  ;;  %898 = vmatpush.msra.mxu0 %v738_v57  ;;  %v822_v23 = vld [vmem:[#allocation8 + $0x3f0] sm:$0xff]  ;;  %v823_v24 = vld [vmem:[#allocation8 + $0x3f8] sm:$0xff]  ;;  %v812_v25 = vld [vmem:[#allocation8 + $0x3a0] sm:$0xff] }
  0x59   : > { %915 = vmatpush.msra.mxu1 %v787_v30  ;;  %853 = vmatpush.msra.mxu2 %v728_v59  ;;  %v813_v26 = vld [vmem:[#allocation8 + $0x3a8] sm:$0xff]  ;;  %v814_v27 = vld [vmem:[#allocation8 + $0x3b0] sm:$0xff]  ;;  %v815_v28 = vld [vmem:[#allocation8 + $0x3b8] sm:$0xff] }
  0x5a   : > { %876 = vmatpush.msra.mxu3 %v729_v60  ;;  %899 = vmatpush.msra.mxu0 %v730_v62  ;;  %v804_v29 = vld [vmem:[#allocation8 + $0x360] sm:$0xff]  ;;  %v805_v30 = vld [vmem:[#allocation8 + $0x368] sm:$0xff]  ;;  %v806_v31 = vld [vmem:[#allocation8 + $0x370] sm:$0xff] }
  0x5b   : > { %916 = vmatpush.msra.mxu1 %v779_v34  ;;  %854 = vmatpush.msra.mxu2 %v720_v0  ;;  %v807_v32 = vld [vmem:[#allocation8 + $0x378] sm:$0xff]  ;;  %v796_v33 = vld [vmem:[#allocation8 + $0x320] sm:$0xff]  ;;  %v797_v34 = vld [vmem:[#allocation8 + $0x328] sm:$0xff] }
  0x5c   : > { %877 = vmatpush.msra.mxu3 %v721_v2  ;;  %900 = vmatpush.msra.mxu0 %v722_v3  ;;  %v798_v35 = vld [vmem:[#allocation8 + $0x330] sm:$0xff]  ;;  %v799_v36 = vld [vmem:[#allocation8 + $0x338] sm:$0xff]  ;;  %v788_v37 = vld [vmem:[#allocation8 + $0x2e0] sm:$0xff] }
  0x5d   : > { %917 = vmatpush.msra.mxu1 %v771_v38  ;;  %855 = vmatpush.msra.mxu2 %v712_v5  ;;  %v789_v38 = vld [vmem:[#allocation8 + $0x2e8] sm:$0xff]  ;;  %v790_v39 = vld [vmem:[#allocation8 + $0x2f0] sm:$0xff]  ;;  %v791_v40 = vld [vmem:[#allocation8 + $0x2f8] sm:$0xff] }
  0x5e   : > { %878 = vmatpush.msra.mxu3 %v713_v6  ;;  %901 = vmatpush.msra.mxu0 %v714_v7  ;;  %v780_v41 = vld [vmem:[#allocation8 + $0x2a0] sm:$0xff]  ;;  %v782_v43 = vld [vmem:[#allocation8 + $0x2b0] sm:$0xff]  ;;  %v783_v44 = vld [vmem:[#allocation8 + $0x2b8] sm:$0xff] }
  0x5f   : > { %918 = vmatpush.msra.mxu1 %v763_v42  ;;  %856 = vmatpush.msra.mxu2 %v704_v10  ;;  %v781_v42 = vld [vmem:[#allocation8 + $0x2a8] sm:$0xff]  ;;  %v775_v48 = vld [vmem:[#allocation8 + $0x278] sm:$0xff]  ;;  %v764_v49 = vld [vmem:[#allocation8 + $0x220] sm:$0xff] }
  0x60   : > { %879 = vmatpush.msra.mxu3 %v705_v12  ;;  %902 = vmatpush.msra.mxu0 %v706_v13  ;;  %v773_v46 = vld [vmem:[#allocation8 + $0x268] sm:$0xff]  ;;  %v758_v55 = vld [vmem:[#allocation8 + $0x1f0] sm:$0xff]  ;;  %v748_v57 = vld [vmem:[#allocation8 + $0x1a0] sm:$0xff] }
  0x61   : > { %919 = vmatpush.msra.mxu1 %v755_v47  ;;  %857 = vmatpush.msra.mxu2 %v696_v15  ;;  %v774_v47 = vld [vmem:[#allocation8 + $0x270] sm:$0xff]  ;;  %v765_v50 = vld [vmem:[#allocation8 + $0x228] sm:$0xff]  ;;  %v751_v60 = vld [vmem:[#allocation8 + $0x1b8] sm:$0xff] }
  0x62   : > { %880 = vmatpush.msra.mxu3 %v697_v17  ;;  %903 = vmatpush.msra.mxu0 %v698_v18  ;;  %v757_v54 = vld [vmem:[#allocation8 + $0x1e8] sm:$0xff]  ;;  %v750_v59 = vld [vmem:[#allocation8 + $0x1b0] sm:$0xff]  ;;  %v743_v0 = vld [vmem:[#allocation8 + $0x178] sm:$0xff] }
  0x63   : > { %920 = vmatpush.msra.mxu1 %v747_v51  ;;  %934 = vmatpush.msrb.mxu2 %v820_v21  ;;  %v766_v51 = vld [vmem:[#allocation8 + $0x230] sm:$0xff]  ;;  %v741_v62 = vld [vmem:[#allocation8 + $0x168] sm:$0xff]  ;;  %v724_v5 = vld [vmem:[#allocation8 + $0xe0] sm:$0xff] }
  0x64   : > { %957 = vmatpush.msrb.mxu3 %v821_v22  ;;  %980 = vmatpush.msrb.mxu0 %v822_v23  ;;  %v733_v2 = vld [vmem:[#allocation8 + $0x128] sm:$0xff]  ;;  %v734_v3 = vld [vmem:[#allocation8 + $0x130] sm:$0xff]  ;;  %v719_v12 = vld [vmem:[#allocation8 + $0xb8] sm:$0xff]  ;;  %v686_v23 = vstv %s2621_s6  ;;  %s2785_s6 = sld [smem:[#allocation31_spill]] }
  0x65   : > { %921 = vmatpush.msra.mxu1 %v739_v58  ;;  %935 = vmatpush.msrb.mxu2 %v812_v25  ;;  %v749_v58 = vld [vmem:[#allocation8 + $0x1a8] sm:$0xff]  ;;  %v726_v7 = vld [vmem:[#allocation8 + $0xf0] sm:$0xff]  ;;  %v708_v13 = vld [vmem:[#allocation8 + $0x60] sm:$0xff] }
  0x66   : > { %958 = vmatpush.msrb.mxu3 %v813_v26  ;;  %981 = vmatpush.msrb.mxu0 %v814_v27  ;;  %v725_v6 = vld [vmem:[#allocation8 + $0xe8] sm:$0xff]  ;;  %v710_v15 = vld [vmem:[#allocation8 + $0x70] sm:$0xff]  ;;  %v700_v17 = vld [vmem:[#allocation8 + $0x20] sm:$0xff] }
  0x67   : > { %922 = vmatpush.msra.mxu1 %v731_v63  ;;  %936 = vmatpush.msrb.mxu2 %v804_v29  ;;  %v742_v63 = vld [vmem:[#allocation8 + $0x170] sm:$0xff]  ;;  %v717_v10 = vld [vmem:[#allocation8 + $0xa8] sm:$0xff]  ;;  %v2137_v21 = vld [vmem:[%s2742_s5] ss:$0 sm:$0xff] }
  0x68   : > { %959 = vmatpush.msrb.mxu3 %v805_v30  ;;  %982 = vmatpush.msrb.mxu0 %v806_v31  ;;  %v701_v18 = vld [vmem:[#allocation8 + $0x28] sm:$0xff]  ;;  %v1149_v27 = vld [vmem:[#allocation10 + $0xf0] sm:$0xff]  ;;  %v1147_v31 = vld [vmem:[#allocation10 + $0xe0] sm:$0xff] }
  0x69   : > { %923 = vmatpush.msra.mxu1 %v723_v4  ;;  %937 = vmatpush.msrb.mxu2 %v796_v33  ;;  %v735_v4 = vld [vmem:[#allocation8 + $0x138] sm:$0xff]  ;;  %v1213_v29 = vld [vmem:[#allocation10 + $0x2f0] sm:$0xff] }
  0x6a   : > { %960 = vmatpush.msrb.mxu3 %v797_v34  ;;  %983 = vmatpush.msrb.mxu0 %v798_v35  ;;  %v1245_v30 = vld [vmem:[#allocation10 + $0x3f0] sm:$0xff]  ;;  %v1211_v34 = vld [vmem:[#allocation10 + $0x2e0] sm:$0xff] }
  0x6b   : > { %924 = vmatpush.msra.mxu1 %v715_v9  ;;  %938 = vmatpush.msrb.mxu2 %v788_v37  ;;  %v716_v9 = vld [vmem:[#allocation8 + $0xa0] sm:$0xff]  ;;  %v1145_v37 = vld [vmem:[#allocation10 + $0xd0] sm:$0xff] }
  0x6c   : > { %961 = vmatpush.msrb.mxu3 %v789_v38  ;;  %984 = vmatpush.msrb.mxu0 %v790_v39  ;;  %v1243_v35 = vld [vmem:[#allocation10 + $0x3e0] sm:$0xff]  ;;  %v1177_v38 = vld [vmem:[#allocation10 + $0x1d0] sm:$0xff] }
  0x6d   : > { %925 = vmatpush.msra.mxu1 %v707_v14  ;;  %939 = vmatpush.msrb.mxu2 %v780_v41  ;;  %v709_v14 = vld [vmem:[#allocation8 + $0x68] sm:$0xff]  ;;  %v1209_v39 = vld [vmem:[#allocation10 + $0x2d0] sm:$0xff] }
  0x6e   : > { %962 = vmatpush.msrb.mxu3 %v781_v42  ;;  %985 = vmatpush.msrb.mxu0 %v782_v43  ;;  %v1143_v43 = vld [vmem:[#allocation10 + $0xc0] sm:$0xff] }
  0x6f   : > { %926 = vmatpush.msra.mxu1 %v699_v19  ;;  %v702_v19 = vld [vmem:[#allocation8 + $0x30] sm:$0xff] }
  0x70   : > { %963 = vmatpush.msrb.mxu3 %v773_v46  ;;  %986 = vmatpush.msrb.mxu0 %v774_v47  ;;  %v1239_v46 = vld [vmem:[#allocation10 + $0x3c0] sm:$0xff]  ;;  %v1141_v47 = vld [vmem:[#allocation10 + $0xb0] sm:$0xff] }
  0x72   : > { %964 = vmatpush.msrb.mxu3 %v765_v50  ;;  %987 = vmatpush.msrb.mxu0 %v766_v51  ;;  %v1237_v50 = vld [vmem:[#allocation10 + $0x3b0] sm:$0xff]  ;;  %v1139_v51 = vld [vmem:[#allocation10 + $0xa0] sm:$0xff] }
  0x74   : > { %965 = vmatpush.msrb.mxu3 %v757_v54  ;;  %988 = vmatpush.msrb.mxu0 %v758_v55  ;;  %v1235_v54 = vld [vmem:[#allocation10 + $0x3a0] sm:$0xff]  ;;  %v1137_v55 = vld [vmem:[#allocation10 + $0x90] sm:$0xff] }
  0x76   : > { %966 = vmatpush.msrb.mxu3 %v749_v58  ;;  %989 = vmatpush.msrb.mxu0 %v750_v59  ;;  %v1233_v58 = vld [vmem:[#allocation10 + $0x390] sm:$0xff]  ;;  %v1135_v59 = vld [vmem:[#allocation10 + $0x80] sm:$0xff] }
  0x78   : > { %967 = vmatpush.msrb.mxu3 %v741_v62  ;;  %990 = vmatpush.msrb.mxu0 %v742_v63  ;;  %v1231_v62 = vld [vmem:[#allocation10 + $0x380] sm:$0xff]  ;;  %v1133_v63 = vld [vmem:[#allocation10 + $0x70] sm:$0xff] }
  0x7a   : > { %968 = vmatpush.msrb.mxu3 %v733_v2  ;;  %991 = vmatpush.msrb.mxu0 %v734_v3  ;;  %v1229_v2 = vld [vmem:[#allocation10 + $0x370] sm:$0xff]  ;;  %v1131_v3 = vld [vmem:[#allocation10 + $0x60] sm:$0xff] }
  0x7c   : > { %969 = vmatpush.msrb.mxu3 %v725_v6  ;;  %992 = vmatpush.msrb.mxu0 %v726_v7  ;;  %v1227_v6 = vld [vmem:[#allocation10 + $0x360] sm:$0xff]  ;;  %v1129_v7 = vld [vmem:[#allocation10 + $0x50] sm:$0xff] }
  0x7e   : > { %970 = vmatpush.msrb.mxu3 %v717_v10  ;;  %v1225_v10 = vld [vmem:[#allocation10 + $0x350] sm:$0xff] }
  0x80   : > { %971 = vmatpush.msrb.mxu3 %v709_v14  ;;  %v1223_v14 = vld [vmem:[#allocation10 + $0x340] sm:$0xff] }
  0x82   : > { %972 = vmatpush.msrb.mxu3 %v701_v18  ;;  %v1221_v18 = vld [vmem:[#allocation10 + $0x330] sm:$0xff] }
  0xc3   : > { %v629_v52 = vpop.f32.mrf.mxu1 }
  0xc4   : > { %v630_v56 = vadd.f32 %v2136_v45, %v629_v52  ;;  %v767_v52 = vld [vmem:[#allocation8 + $0x238] sm:$0xff] }
  0xc6   : > { %vm635_vm2 = vcmp.gt.f32.partialorder %v630_v56, 0.0  ;;  %v638_v61 = vmul.f32 %v637_v53, %v630_v56 }
  0xc8   : > { %v640_v1 = vsel %vm635_vm2, %v630_v56, %v638_v61  ;;  %v759_v56 = vld [vmem:[#allocation8 + $0x1f8] sm:$0xff]  ;;  %v740_v61 = vld [vmem:[#allocation8 + $0x160] sm:$0xff] }
  0xc9   : > { %2009 = vmatmul.msk.f32.vlgmr.msrb.gmra.mxu1 %vm654_vm3, %v640_v1  ;;  %v732_v1 = vld [vmem:[#allocation8 + $0x120] sm:$0xff] }
  0xca   : > { %1003 = vmatpush.msrb.mxu1 %v823_v24 }
  0xcb   : > { %v632_v8 = vpop.f32.mrf.mxu1 }
  0xcc   : > { %v633_v11 = vadd.f32 %v2136_v45, %v632_v8  ;;  %1004 = vmatpush.msrb.mxu1 %v815_v28  ;;  %v772_v45 = vld [vmem:[#allocation8 + $0x260] sm:$0xff]  ;;  %v727_v8 = vld [vmem:[#allocation8 + $0xf8] sm:$0xff]  ;;  %v1181_v28 = vld [vmem:[#allocation10 + $0x1f0] sm:$0xff] }
  0xcd   : > { %940 = vmatpush.msrb.mxu2 %v772_v45  ;;  %v1207_v45 = vld [vmem:[#allocation10 + $0x2c0] sm:$0xff] }
  0xce   : > { %v639_v16 = vmul.f32 %v637_v53, %v633_v11  ;;  %vm636_vm4 = vcmp.gt.f32.partialorder %v633_v11, 0.0  ;;  %1005 = vmatpush.msrb.mxu1 %v807_v32  ;;  %v756_v53 = vld [vmem:[#allocation8 + $0x1e0] sm:$0xff] }
  0xcf   : > { %941 = vmatpush.msrb.mxu2 %v764_v49  ;;  %v1179_v32 = vld [vmem:[#allocation10 + $0x1e0] sm:$0xff]  ;;  %v1205_v49 = vld [vmem:[#allocation10 + $0x2b0] sm:$0xff] }
  0xd0   : > { %v641_v20 = vsel %vm636_vm4, %v633_v11, %v639_v16  ;;  %1006 = vmatpush.msrb.mxu1 %v799_v36  ;;  %v718_v11 = vld [vmem:[#allocation8 + $0xb0] sm:$0xff]  ;;  %v711_v16 = vld [vmem:[#allocation8 + $0x78] sm:$0xff] }
  0xd1   : > { %2010 = vmatmul.msk.f32.gmra.mxu1 %vm654_vm3, %v641_v20  ;;  %942 = vmatpush.msrb.mxu2 %v756_v53  ;;  %v703_v20 = vld [vmem:[#allocation8 + $0x38] sm:$0xff]  ;;  %v1203_v53 = vld [vmem:[#allocation10 + $0x2a0] sm:$0xff] }
  0xd2   : > { %1007 = vmatpush.msrb.mxu1 %v791_v40  ;;  %993 = vmatpush.msrb.mxu0 %v718_v11  ;;  %v1241_v40 = vld [vmem:[#allocation10 + $0x3d0] sm:$0xff]  ;;  %v1127_v11 = vld [vmem:[#allocation10 + $0x40] sm:$0xff] }
  0xd3   : > { %943 = vmatpush.msrb.mxu2 %v748_v57  ;;  %v1201_v57 = vld [vmem:[#allocation10 + $0x290] sm:$0xff] }
  0xd4   : > { %1008 = vmatpush.msrb.mxu1 %v783_v44  ;;  %994 = vmatpush.msrb.mxu0 %v710_v15  ;;  %v1175_v44 = vld [vmem:[#allocation10 + $0x1c0] sm:$0xff]  ;;  %v1125_v15 = vld [vmem:[#allocation10 + $0x30] sm:$0xff] }
  0xd5   : > { %944 = vmatpush.msrb.mxu2 %v740_v61  ;;  %v1199_v61 = vld [vmem:[#allocation10 + $0x280] sm:$0xff] }
  0xd6   : > { %1009 = vmatpush.msrb.mxu1 %v775_v48  ;;  %995 = vmatpush.msrb.mxu0 %v702_v19  ;;  %v1173_v48 = vld [vmem:[#allocation10 + $0x1b0] sm:$0xff]  ;;  %v1123_v19 = vld [vmem:[#allocation10 + $0x20] sm:$0xff] }
  0xd7   : > { %945 = vmatpush.msrb.mxu2 %v732_v1  ;;  %v1197_v1 = vld [vmem:[#allocation10 + $0x270] sm:$0xff] }
  0xd8   : > { %1010 = vmatpush.msrb.mxu1 %v767_v52  ;;  %v1171_v52 = vld [vmem:[#allocation10 + $0x1a0] sm:$0xff] }
  0xd9   : > { %946 = vmatpush.msrb.mxu2 %v724_v5  ;;  %v1195_v5 = vld [vmem:[#allocation10 + $0x260] sm:$0xff] }
  0xda   : > { %1011 = vmatpush.msrb.mxu1 %v759_v56  ;;  %v1169_v56 = vld [vmem:[#allocation10 + $0x190] sm:$0xff] }
  0xdb   : > { %947 = vmatpush.msrb.mxu2 %v716_v9  ;;  %v1193_v9 = vld [vmem:[#allocation10 + $0x250] sm:$0xff] }
  0xdc   : > { %1012 = vmatpush.msrb.mxu1 %v751_v60  ;;  %v1167_v60 = vld [vmem:[#allocation10 + $0x180] sm:$0xff] }
  0xdd   : > { %948 = vmatpush.msrb.mxu2 %v708_v13  ;;  %v1191_v13 = vld [vmem:[#allocation10 + $0x240] sm:$0xff] }
  0xde   : > { %1013 = vmatpush.msrb.mxu1 %v743_v0  ;;  %v1165_v0 = vld [vmem:[#allocation10 + $0x170] sm:$0xff] }
  0xdf   : > { %949 = vmatpush.msrb.mxu2 %v700_v17  ;;  %v1189_v17 = vld [vmem:[#allocation10 + $0x230] sm:$0xff] }
  0xe0   : > { %1014 = vmatpush.msrb.mxu1 %v735_v4  ;;  %v1163_v4 = vld [vmem:[#allocation10 + $0x160] sm:$0xff] }
  0xe2   : > { %1015 = vmatpush.msrb.mxu1 %v727_v8  ;;  %v1161_v8 = vld [vmem:[#allocation10 + $0x150] sm:$0xff] }
  0xe4   : > { %1016 = vmatpush.msrb.mxu1 %v719_v12  ;;  %v1159_v12 = vld [vmem:[#allocation10 + $0x140] sm:$0xff] }
  0xe6   : > { %1017 = vmatpush.msrb.mxu1 %v711_v16  ;;  %v1157_v16 = vld [vmem:[#allocation10 + $0x130] sm:$0xff] }
  0xe8   : > { %1018 = vmatpush.msrb.mxu1 %v703_v20  ;;  %v1155_v20 = vld [vmem:[#allocation10 + $0x120] sm:$0xff] }
 0x146   : > { %v678_v22 = vpop.f32.mrf.mxu1 }
 0x147   : > { %v679_v24 = vadd.f32 %v2137_v21, %v678_v22  ;;  %v1219_v22 = vld [vmem:[#allocation10 + $0x320] sm:$0xff] }
 0x149   : > { %vm684_vm5 = vcmp.gt.f32.partialorder %v679_v24, 0.0  ;;  %v687_v25 = vmul.f32 %v686_v23, %v679_v24 }
 0x14b   : > { %v689_v26 = vsel %vm684_vm5, %v679_v24, %v687_v25  ;;  %v1153_v24 = vld [vmem:[#allocation10 + $0x110] sm:$0xff] }
 0x14c   : > { %858 = vmatmul.f32.vlgmr.msra.gmra.mxu2 %v689_v26  ;;  %881 = vmatmul.f32.vlgmr.msra.gmra.mxu3 %v689_v26  ;;  %v1185_v25 = vld [vmem:[#allocation10 + $0x210] sm:$0xff] }
 0x14d   : > { %904 = vmatmul.f32.vlgmr.msra.gmra.mxu0 %v689_v26  ;;  %927 = vmatmul.f32.vlgmr.msra.gmra.mxu1 %v689_v26 }
 0x14e   : > { %v681_v33 = vpop.f32.mrf.mxu1  ;;  %1398 = vmatpush.msra.mxu2 %v1149_v27  ;;  %1418 = vmatpush.msra.mxu3 %v1181_v28  ;;  %v1119_v27 = vld [vmem:[#allocation10] sm:$0xff] }
 0x14f   : > { %v682_v36 = vadd.f32 %v2137_v21, %v681_v33  ;;  %1438 = vmatpush.msra.mxu0 %v1213_v29  ;;  %1458 = vmatpush.msra.mxu1 %v1245_v30  ;;  %v1187_v21 = vld [vmem:[#allocation10 + $0x220] sm:$0xff]  ;;  %v1341_v33 = vld [vmem:[#allocation10 + $0x6f0] sm:$0xff] }
 0x150   : > { %1399 = vmatpush.msra.mxu2 %v1147_v31  ;;  %1419 = vmatpush.msra.mxu3 %v1179_v32  ;;  %v1151_v28 = vld [vmem:[#allocation10 + $0x100] sm:$0xff]  ;;  %v1277_v31 = vld [vmem:[#allocation10 + $0x4f0] sm:$0xff] }
 0x151   : > { %vm685_vm6 = vcmp.gt.f32.partialorder %v682_v36, 0.0  ;;  %v688_v41 = vmul.f32 %v686_v23, %v682_v36  ;;  %1439 = vmatpush.msra.mxu0 %v1211_v34  ;;  %1459 = vmatpush.msra.mxu1 %v1243_v35  ;;  %v1121_v23 = vld [vmem:[#allocation10 + $0x10] sm:$0xff]  ;;  %v1183_v29 = vld [vmem:[#allocation10 + $0x200] sm:$0xff] }
 0x152   : > { %1400 = vmatpush.msra.mxu2 %v1145_v37  ;;  %1420 = vmatpush.msra.mxu3 %v1177_v38  ;;  %v1215_v30 = vld [vmem:[#allocation10 + $0x300] sm:$0xff]  ;;  %v1309_v32 = vld [vmem:[#allocation10 + $0x5f0] sm:$0xff] }
 0x153   : > { %v690_v42 = vsel %vm685_vm6, %v682_v36, %v688_v41  ;;  %1440 = vmatpush.msra.mxu0 %v1209_v39  ;;  %1460 = vmatpush.msra.mxu1 %v1241_v40  ;;  %v1373_v34 = vld [vmem:[#allocation10 + $0x7f0] sm:$0xff]  ;;  %v1275_v35 = vld [vmem:[#allocation10 + $0x4e0] sm:$0xff] }
 0x154   : > { %861 = vmatmul.f32.gmra.mxu2 %v690_v42  ;;  %884 = vmatmul.f32.gmra.mxu3 %v690_v42  ;;  %v1307_v36 = vld [vmem:[#allocation10 + $0x5e0] sm:$0xff]  ;;  %v1273_v39 = vld [vmem:[#allocation10 + $0x4d0] sm:$0xff] }
 0x155   : > { %907 = vmatmul.f32.gmra.mxu0 %v690_v42  ;;  %930 = vmatmul.f32.gmra.mxu1 %v690_v42  ;;  %v1339_v37 = vld [vmem:[#allocation10 + $0x6e0] sm:$0xff]  ;;  %v1305_v40 = vld [vmem:[#allocation10 + $0x5d0] sm:$0xff] }
 0x156   : > { %1401 = vmatpush.msra.mxu2 %v1143_v43  ;;  %1421 = vmatpush.msra.mxu3 %v1175_v44  ;;  %v1371_v38 = vld [vmem:[#allocation10 + $0x7e0] sm:$0xff]  ;;  %v1337_v41 = vld [vmem:[#allocation10 + $0x6d0] sm:$0xff] }
 0x157   : > { %1441 = vmatpush.msra.mxu0 %v1207_v45  ;;  %1461 = vmatpush.msra.mxu1 %v1239_v46  ;;  %v1271_v43 = vld [vmem:[#allocation10 + $0x4c0] sm:$0xff] }
 0x158   : > { %1402 = vmatpush.msra.mxu2 %v1141_v47  ;;  %1422 = vmatpush.msra.mxu3 %v1173_v48  ;;  %v1303_v44 = vld [vmem:[#allocation10 + $0x5c0] sm:$0xff]  ;;  %v1269_v47 = vld [vmem:[#allocation10 + $0x4b0] sm:$0xff] }
 0x159   : > { %1442 = vmatpush.msra.mxu0 %v1205_v49  ;;  %1462 = vmatpush.msra.mxu1 %v1237_v50  ;;  %v1335_v45 = vld [vmem:[#allocation10 + $0x6c0] sm:$0xff]  ;;  %v1301_v48 = vld [vmem:[#allocation10 + $0x5b0] sm:$0xff] }
 0x15a   : > { %1403 = vmatpush.msra.mxu2 %v1139_v51  ;;  %1423 = vmatpush.msra.mxu3 %v1171_v52  ;;  %v1367_v46 = vld [vmem:[#allocation10 + $0x7c0] sm:$0xff]  ;;  %v1333_v49 = vld [vmem:[#allocation10 + $0x6b0] sm:$0xff] }
 0x15b   : > { %1443 = vmatpush.msra.mxu0 %v1203_v53  ;;  %1463 = vmatpush.msra.mxu1 %v1235_v54  ;;  %v1365_v50 = vld [vmem:[#allocation10 + $0x7b0] sm:$0xff]  ;;  %v1267_v53 = vld [vmem:[#allocation10 + $0x4a0] sm:$0xff] }
 0x15c   : > { %950 = vmatmul.f32.vlgmr.msrb.gmra.mxu2 %v689_v26  ;;  %973 = vmatmul.f32.vlgmr.msrb.gmra.mxu3 %v689_v26  ;;  %v1299_v54 = vld [vmem:[#allocation10 + $0x5a0] sm:$0xff] }
 0x15d   : > { %996 = vmatmul.f32.vlgmr.msrb.gmra.mxu0 %v689_v26  ;;  %1019 = vmatmul.f32.vlgmr.msrb.gmra.mxu1 %v689_v26  ;;  %v1217_v26 = vld [vmem:[#allocation10 + $0x310] sm:$0xff] }
 0x15e   : > { %1404 = vmatpush.msra.mxu2 %v1137_v55  ;;  %1424 = vmatpush.msra.mxu3 %v1169_v56  ;;  %v1331_v55 = vld [vmem:[#allocation10 + $0x6a0] sm:$0xff] }
 0x15f   : > { %1444 = vmatpush.msra.mxu0 %v1201_v57  ;;  %1464 = vmatpush.msra.mxu1 %v1233_v58  ;;  %v1363_v56 = vld [vmem:[#allocation10 + $0x7a0] sm:$0xff]  ;;  %v1265_v57 = vld [vmem:[#allocation10 + $0x490] sm:$0xff] }
 0x160   : > { %1405 = vmatpush.msra.mxu2 %v1135_v59  ;;  %1425 = vmatpush.msra.mxu3 %v1167_v60  ;;  %v1297_v58 = vld [vmem:[#allocation10 + $0x590] sm:$0xff]  ;;  %v2632_v60 = vld [vmem:[%s2744_s7] sm:$0xff] }
 0x161   : > { %1445 = vmatpush.msra.mxu0 %v1199_v61  ;;  %1465 = vmatpush.msra.mxu1 %v1231_v62  ;;  %v1329_v59 = vld [vmem:[#allocation10 + $0x690] sm:$0xff]  ;;  %v1263_v62 = vld [vmem:[#allocation10 + $0x480] sm:$0xff] }
 0x162   : > { %1406 = vmatpush.msra.mxu2 %v1133_v63  ;;  %1426 = vmatpush.msra.mxu3 %v1165_v0  ;;  %v1361_v61 = vld [vmem:[#allocation10 + $0x790] sm:$0xff]  ;;  %v1295_v63 = vld [vmem:[#allocation10 + $0x580] sm:$0xff] }
 0x163   : > { %1446 = vmatpush.msra.mxu0 %v1197_v1  ;;  %1466 = vmatpush.msra.mxu1 %v1229_v2  ;;  %v1327_v0 = vld [vmem:[#allocation10 + $0x680] sm:$0xff] }
 0x164   : > { %953 = vmatmul.f32.gmra.mxu2 %v690_v42  ;;  %976 = vmatmul.f32.gmra.mxu3 %v690_v42 }
 0x165   : > { %999 = vmatmul.f32.gmra.mxu0 %v690_v42  ;;  %1022 = vmatmul.f32.gmra.mxu1 %v690_v42  ;;  %v1369_v42 = vld [vmem:[#allocation10 + $0x7d0] sm:$0xff] }
 0x166   : > { %1407 = vmatpush.msra.mxu2 %v1131_v3  ;;  %1427 = vmatpush.msra.mxu3 %v1163_v4  ;;  %v1359_v3 = vld [vmem:[#allocation10 + $0x780] sm:$0xff]  ;;  %v828_v4 = vperm.slane %v2632_v60, 2 }
 0x167   : > { %1447 = vmatpush.msra.mxu0 %v1195_v5  ;;  %1467 = vmatpush.msra.mxu1 %v1227_v6  ;;  %v1261_v5 = vld [vmem:[#allocation10 + $0x470] sm:$0xff] }
 0x168   : > { %1408 = vmatpush.msra.mxu2 %v1129_v7  ;;  %1428 = vmatpush.msra.mxu3 %v1161_v8  ;;  %v1293_v6 = vld [vmem:[#allocation10 + $0x570] sm:$0xff] }
 0x169   : > { %1448 = vmatpush.msra.mxu0 %v1193_v9  ;;  %1468 = vmatpush.msra.mxu1 %v1225_v10  ;;  %v1325_v7 = vld [vmem:[#allocation10 + $0x670] sm:$0xff] }
 0x16a   : > { %1409 = vmatpush.msra.mxu2 %v1127_v11  ;;  %1429 = vmatpush.msra.mxu3 %v1159_v12  ;;  %v1357_v8 = vld [vmem:[#allocation10 + $0x770] sm:$0xff]  ;;  %v1259_v11 = vld [vmem:[#allocation10 + $0x460] sm:$0xff] }
 0x16b   : > { %1449 = vmatpush.msra.mxu0 %v1191_v13  ;;  %1469 = vmatpush.msra.mxu1 %v1223_v14  ;;  %v1291_v12 = vld [vmem:[#allocation10 + $0x560] sm:$0xff]  ;;  %v829_v14 = vperm.slane %v2632_v60, 3 }
 0x16c   : > { %1410 = vmatpush.msra.mxu2 %v1125_v15  ;;  %1430 = vmatpush.msra.mxu3 %v1157_v16  ;;  %v1323_v13 = vld [vmem:[#allocation10 + $0x660] sm:$0xff] }
 0x16d   : > { %1450 = vmatpush.msra.mxu0 %v1189_v17  ;;  %1470 = vmatpush.msra.mxu1 %v1221_v18  ;;  %v1355_v16 = vld [vmem:[#allocation10 + $0x760] sm:$0xff]  ;;  %v827_v18 = vperm.slane %v2632_v60, 1 }
 0x16e   : > { %1411 = vmatpush.msra.mxu2 %v1123_v19  ;;  %1431 = vmatpush.msra.mxu3 %v1155_v20  ;;  %v1257_v19 = vld [vmem:[#allocation10 + $0x450] sm:$0xff] }
 0x16f   : > { %1451 = vmatpush.msra.mxu0 %v1187_v21  ;;  %1471 = vmatpush.msra.mxu1 %v1219_v22  ;;  %v1289_v20 = vld [vmem:[#allocation10 + $0x550] sm:$0xff] }
 0x170   : > { %1412 = vmatpush.msra.mxu2 %v1121_v23  ;;  %1432 = vmatpush.msra.mxu3 %v1153_v24  ;;  %v1321_v21 = vld [vmem:[#allocation10 + $0x650] sm:$0xff] }
 0x171   : > { %1452 = vmatpush.msra.mxu0 %v1185_v25  ;;  %1472 = vmatpush.msra.mxu1 %v1217_v26  ;;  %v1353_v23 = vld [vmem:[#allocation10 + $0x750] sm:$0xff]  ;;  %v1255_v25 = vld [vmem:[#allocation10 + $0x440] sm:$0xff] }
 0x172   : > { %1413 = vmatpush.msra.mxu2 %v1119_v27  ;;  %1433 = vmatpush.msra.mxu3 %v1151_v28  ;;  %v1287_v26 = vld [vmem:[#allocation10 + $0x540] sm:$0xff] }
 0x173   : > { %1453 = vmatpush.msra.mxu0 %v1183_v29  ;;  %1473 = vmatpush.msra.mxu1 %v1215_v30  ;;  %v1319_v27 = vld [vmem:[#allocation10 + $0x640] sm:$0xff]  ;;  %v826_v29 = vperm.slane %v2632_v60, 0 }
 0x174   : > { %1478 = vmatpush.msrb.mxu2 %v1277_v31  ;;  %1498 = vmatpush.msrb.mxu3 %v1309_v32  ;;  %v1351_v32 = vld [vmem:[#allocation10 + $0x740] sm:$0xff] }
 0x175   : > { %1518 = vmatpush.msrb.mxu0 %v1341_v33  ;;  %1538 = vmatpush.msrb.mxu1 %v1373_v34 }
 0x176   : > { %1479 = vmatpush.msrb.mxu2 %v1275_v35  ;;  %1499 = vmatpush.msrb.mxu3 %v1307_v36  ;;  %v1253_v35 = vld [vmem:[#allocation10 + $0x430] sm:$0xff] }
 0x177   : > { %1519 = vmatpush.msrb.mxu0 %v1339_v37  ;;  %1539 = vmatpush.msrb.mxu1 %v1371_v38  ;;  %v1285_v36 = vld [vmem:[#allocation10 + $0x530] sm:$0xff] }
 0x178   : > { %1480 = vmatpush.msrb.mxu2 %v1273_v39  ;;  %1500 = vmatpush.msrb.mxu3 %v1305_v40  ;;  %v1317_v37 = vld [vmem:[#allocation10 + $0x630] sm:$0xff] }
 0x179   : > { %1520 = vmatpush.msrb.mxu0 %v1337_v41  ;;  %1540 = vmatpush.msrb.mxu1 %v1369_v42  ;;  %v1349_v40 = vld [vmem:[#allocation10 + $0x730] sm:$0xff] }
 0x17a   : > { %1481 = vmatpush.msrb.mxu2 %v1271_v43  ;;  %1501 = vmatpush.msrb.mxu3 %v1303_v44 }
 0x17b   : > { %1521 = vmatpush.msrb.mxu0 %v1335_v45  ;;  %1541 = vmatpush.msrb.mxu1 %v1367_v46  ;;  %v1251_v45 = vld [vmem:[#allocation10 + $0x420] sm:$0xff] }
 0x17c   : > { %1482 = vmatpush.msrb.mxu2 %v1269_v47  ;;  %1502 = vmatpush.msrb.mxu3 %v1301_v48  ;;  %v1283_v46 = vld [vmem:[#allocation10 + $0x520] sm:$0xff] }
 0x17d   : > { %1522 = vmatpush.msrb.mxu0 %v1333_v49  ;;  %1542 = vmatpush.msrb.mxu1 %v1365_v50  ;;  %v1315_v47 = vld [vmem:[#allocation10 + $0x620] sm:$0xff] }
 0x17e   : > { %1483 = vmatpush.msrb.mxu2 %v1267_v53  ;;  %1503 = vmatpush.msrb.mxu3 %v1299_v54  ;;  %v1347_v49 = vld [vmem:[#allocation10 + $0x720] sm:$0xff]  ;;  %v1313_v53 = vld [vmem:[#allocation10 + $0x610] sm:$0xff] }
 0x17f   : > { %1523 = vmatpush.msrb.mxu0 %v1331_v55  ;;  %1543 = vmatpush.msrb.mxu1 %v1363_v56  ;;  %v1345_v56 = vld [vmem:[#allocation10 + $0x710] sm:$0xff] }
 0x180   : > { %1484 = vmatpush.msrb.mxu2 %v1265_v57  ;;  %1504 = vmatpush.msrb.mxu3 %v1297_v58  ;;  %v1247_v57 = vld [vmem:[#allocation10 + $0x400] sm:$0xff] }
 0x181   : > { %1524 = vmatpush.msrb.mxu0 %v1329_v59  ;;  %1544 = vmatpush.msrb.mxu1 %v1361_v61  ;;  %v1279_v58 = vld [vmem:[#allocation10 + $0x500] sm:$0xff] }
 0x182   : > { %1485 = vmatpush.msrb.mxu2 %v1263_v62  ;;  %1505 = vmatpush.msrb.mxu3 %v1295_v63  ;;  %v1311_v61 = vld [vmem:[#allocation10 + $0x600] sm:$0xff]  ;;  %v832_v63 = vperm.slane %v2632_v60, 6 }
 0x183   : > { %1525 = vmatpush.msrb.mxu0 %v1327_v0  ;;  %1545 = vmatpush.msrb.mxu1 %v1359_v3  ;;  %v1343_v62 = vld [vmem:[#allocation10 + $0x700] sm:$0xff]  ;;  %v833_v0 = vperm.slane %v2632_v60, 7 }
 0x184   : > { %1486 = vmatpush.msrb.mxu2 %v1261_v5  ;;  %1506 = vmatpush.msrb.mxu3 %v1293_v6 }
 0x185   : > { %1526 = vmatpush.msrb.mxu0 %v1325_v7  ;;  %1546 = vmatpush.msrb.mxu1 %v1357_v8  ;;  %v830_v7 = vperm.slane %v2632_v60, 4 }
 0x186   : > { %1487 = vmatpush.msrb.mxu2 %v1259_v11  ;;  %1507 = vmatpush.msrb.mxu3 %v1291_v12 }
 0x187   : > { %1527 = vmatpush.msrb.mxu0 %v1323_v13  ;;  %1547 = vmatpush.msrb.mxu1 %v1355_v16 }
 0x188   : > { %1488 = vmatpush.msrb.mxu2 %v1257_v19  ;;  %1508 = vmatpush.msrb.mxu3 %v1289_v20 }
 0x189   : > { %1528 = vmatpush.msrb.mxu0 %v1321_v21  ;;  %1548 = vmatpush.msrb.mxu1 %v1353_v23 }
 0x18a   : > { %1489 = vmatpush.msrb.mxu2 %v1255_v25  ;;  %1509 = vmatpush.msrb.mxu3 %v1287_v26 }
 0x18b   : > { %1529 = vmatpush.msrb.mxu0 %v1319_v27  ;;  %1549 = vmatpush.msrb.mxu1 %v1351_v32 }
 0x18c   : > { %1490 = vmatpush.msrb.mxu2 %v1253_v35  ;;  %1510 = vmatpush.msrb.mxu3 %v1285_v36 }
 0x18d   : > { %1530 = vmatpush.msrb.mxu0 %v1317_v37  ;;  %1550 = vmatpush.msrb.mxu1 %v1349_v40 }
 0x18e   : > { %1491 = vmatpush.msrb.mxu2 %v1251_v45  ;;  %1511 = vmatpush.msrb.mxu3 %v1283_v46 }
 0x18f   : > { %1531 = vmatpush.msrb.mxu0 %v1315_v47  ;;  %1551 = vmatpush.msrb.mxu1 %v1347_v49 }
 0x191   : > { %1532 = vmatpush.msrb.mxu0 %v1313_v53  ;;  %1552 = vmatpush.msrb.mxu1 %v1345_v56 }
 0x193   : > { %1533 = vmatpush.msrb.mxu0 %v1311_v61  ;;  %1553 = vmatpush.msrb.mxu1 %v1343_v62 }
 0x1ca   : > { %v905_v51 = vpop.f32.mrf.mxu0  ;;  %v2627_v52 = vpop.f32.mrf.mxu1 }
 0x1cb   : > { %v906_v17 = vadd.f32 %v905_v51, %v828_v4  ;;  %v929_v28 = vadd.f32 %v2627_v52, %v829_v14  ;;  %v1249_v51 = vld [vmem:[#allocation10 + $0x410] sm:$0xff] }
 0x1cc   : > { %v1281_v52 = vld [vmem:[#allocation10 + $0x510] sm:$0xff]  ;;  %1492 = vmatpush.msrb.mxu2 %v1249_v51 }
 0x1cd   : > { %1512 = vmatpush.msrb.mxu3 %v1281_v52 }
 0x1ce   : > { %1493 = vmatpush.msrb.mxu2 %v1247_v57 }
 0x1cf   : > { %v2634_v1 = vpop.f32.mrf.mxu2  ;;  %v882_v2 = vpop.f32.mrf.mxu3  ;;  %1513 = vmatpush.msrb.mxu3 %v1279_v58 }
 0x1d0   : > { %v883_v33 = vadd.f32 %v882_v2, %v827_v18  ;;  %v860_v48 = vadd.f32 %v2634_v1, %v826_v29 }
 0x1d2   : > { %v908_v9 = vpop.f32.mrf.mxu0  ;;  %v931_v10 = vpop.f32.mrf.mxu1 }
 0x1d3   : > { %v909_v15 = vadd.f32 %v908_v9, %v828_v4  ;;  %v932_v22 = vadd.f32 %v931_v10, %v829_v14 }
 0x1d5   : > { %v1041_v24 = vmax.f32 %v906_v17, %v909_v15  ;;  %v1048_v38 = vmax.f32 %v929_v28, %v932_v22  ;;  %v831_v15 = vperm.slane %v2632_v60, 5 }
 0x1d7   : > { %v862_v30 = vpop.f32.mrf.mxu2  ;;  %v885_v31 = vpop.f32.mrf.mxu3  ;;  %v1042_v41 = vrot.slane %v1041_v24, 4  ;;  %v1049_v54 = vrot.slane %v1048_v38, 4 }
 0x1d8   : > { %v886_v34 = vadd.f32 %v885_v31, %v827_v18  ;;  %v863_v39 = vadd.f32 %v862_v30, %v826_v29 }
 0x1d9   : > { %v1043_v59 = vmax.f32 %v1041_v24, %v1042_v41  ;;  %v1050_v4 = vmax.f32 %v1048_v38, %v1049_v54 }
 0x1da   : > { %v1034_v42 = vmax.f32 %v883_v33, %v886_v34  ;;  %v997_v43 = vpop.f32.mrf.mxu0  ;;  %v1020_v44 = vpop.f32.mrf.mxu1  ;;  %v1027_v55 = vmax.f32 %v860_v48, %v863_v39 }
 0x1db   : > { %v1044_v6 = vrot.slane %v1043_v59, 2  ;;  %v998_v10 = vadd.f32 %v997_v43, %v832_v63  ;;  %v1021_v11 = vadd.f32 %v1020_v44, %v833_v0  ;;  %v1051_v16 = vrot.slane %v1050_v4, 2 }
 0x1dc   : > { %v1035_v50 = vrot.slane %v1034_v42, 4  ;;  %v1028_v5 = vrot.slane %v1027_v55, 4 }
 0x1dd   : > { %v1045_v20 = vmax.f32 %v1043_v59, %v1044_v6  ;;  %v1052_v30 = vmax.f32 %v1050_v4, %v1051_v16 }
 0x1de   : > { %v1036_v3 = vmax.f32 %v1034_v42, %v1035_v50  ;;  %v1029_v17 = vmax.f32 %v1027_v55, %v1028_v5 }
 0x1df   : > { %v951_v1 = vpop.f32.mrf.mxu2  ;;  %v974_v2 = vpop.f32.mrf.mxu3  ;;  %v1046_v37 = vrot.slane %v1045_v20, 1  ;;  %v1053_v41 = vrot.slane %v1052_v30, 1 }
 0x1e0   : > { %v1037_v14 = vrot.slane %v1036_v3, 2  ;;  %v952_v21 = vadd.f32 %v951_v1, %v830_v7  ;;  %v975_v27 = vadd.f32 %v974_v2, %v831_v15  ;;  %v1030_v31 = vrot.slane %v1029_v17, 2 }
 0x1e1   : > { %v1047_v52 = vmax.f32 %v1045_v20, %v1046_v37  ;;  %v1054_v53 = vmax.f32 %v1052_v30, %v1053_v41  ;;  %v1182_v20 = vld [vmem:[#allocation10 + $0x1f8] sm:$0xff] }
 0x1e2   : > { %v1000_v8 = vpop.f32.mrf.mxu0  ;;  %v1023_v9 = vpop.f32.mrf.mxu1  ;;  %v1038_v26 = vmax.f32 %v1036_v3, %v1037_v14  ;;  %v1031_v42 = vmax.f32 %v1029_v17, %v1030_v31  ;;  %v1242_v30 = vld [vmem:[#allocation10 + $0x3d8] sm:$0xff]  ;;  %v1144_v31 = vld [vmem:[#allocation10 + $0xc8] sm:$0xff] }
 0x1e3   : > { %v1001_v12 = vadd.f32 %v1000_v8, %v832_v63  ;;  %v1024_v13 = vadd.f32 %v1023_v9, %v833_v0  ;;  %v1092_v63 = vrot.slane %v1047_v52, 6  ;;  %v1093_v0 = vrot.slane %v1054_v53, 5  ;;  %v1238_v41 = vld [vmem:[#allocation10 + $0x3b8] sm:$0xff]  ;;  %v1200_v52 = vld [vmem:[#allocation10 + $0x288] sm:$0xff] }
 0x1e4   : > { %v1039_v38 = vrot.slane %v1038_v26, 1  ;;  %v1032_v54 = vrot.slane %v1031_v42, 1  ;;  %v1232_v53 = vld [vmem:[#allocation10 + $0x388] sm:$0xff] }
 0x1e5   : > { %v1069_v18 = vmax.f32 %v998_v10, %v1001_v12  ;;  %v1076_v19 = vmax.f32 %v1021_v11, %v1024_v13  ;;  %v1101_v9 = vsel %vm1100_vm8, %v1092_v63, %v1093_v0  ;;  %v1130_v63 = vld [vmem:[#allocation10 + $0x58] sm:$0xff] }
 0x1e6   : > { %v1040_v49 = vmax.f32 %v1038_v26, %v1039_v38  ;;  %v1033_v1 = vmax.f32 %v1031_v42, %v1032_v54  ;;  %v1244_v26 = vld [vmem:[#allocation10 + $0x3e8] sm:$0xff]  ;;  %v1142_v38 = vld [vmem:[#allocation10 + $0xb8] sm:$0xff] }
 0x1e7   : > { %v1070_v22 = vrot.slane %v1069_v18, 4  ;;  %v1077_v23 = vrot.slane %v1076_v19, 4  ;;  %v954_v24 = vpop.f32.mrf.mxu2  ;;  %v977_v25 = vpop.f32.mrf.mxu3  ;;  %v1140_v42 = vld [vmem:[#allocation10 + $0xa8] sm:$0xff]  ;;  %v1134_v54 = vld [vmem:[#allocation10 + $0x78] sm:$0xff] }
 0x1e8   : > { %v955_v28 = vadd.f32 %v954_v24, %v830_v7  ;;  %v978_v29 = vadd.f32 %v977_v25, %v831_v15  ;;  %v1091_v59 = vrot.slane %v1040_v49, 7  ;;  %v1180_v24 = vld [vmem:[#allocation10 + $0x1e8] sm:$0xff]  ;;  %v1234_v49 = vld [vmem:[#allocation10 + $0x398] sm:$0xff] }
 0x1e9   : > { %v1071_v32 = vmax.f32 %v1069_v18, %v1070_v22  ;;  %v1078_v33 = vmax.f32 %v1076_v19, %v1077_v23  ;;  %v1150_v19 = vld [vmem:[#allocation10 + $0xf8] sm:$0xff]  ;;  %v1148_v23 = vld [vmem:[#allocation10 + $0xe8] sm:$0xff] }
 0x1ea   : > { %v1055_v34 = vmax.f32 %v952_v21, %v955_v28  ;;  %v1062_v60 = vmax.f32 %v975_v27, %v978_v29  ;;  %v1099_v6 = vsel %vm1098_vm7, %v1033_v1, %v1091_v59  ;;  %v1214_v21 = vld [vmem:[#allocation10 + $0x2f8] sm:$0xff]  ;;  %v1212_v25 = vld [vmem:[#allocation10 + $0x2e8] sm:$0xff] }
 0x1eb   : > { %v1072_v35 = vrot.slane %v1071_v32, 2  ;;  %v1079_v36 = vrot.slane %v1078_v33, 2  ;;  %v1103_v12 = vsel %vm1102_vm9, %v1099_v6, %v1101_v9  ;;  %v1246_v22 = vld [vmem:[#allocation10 + $0x3f8] sm:$0xff]  ;;  %v1164_v59 = vld [vmem:[#allocation10 + $0x168] sm:$0xff] }
 0x1ec   : > { %v1056_v39 = vrot.slane %v1055_v34, 4  ;;  %v1063_v40 = vrot.slane %v1062_v60, 4  ;;  %v1146_v27 = vld [vmem:[#allocation10 + $0xd8] sm:$0xff]  ;;  %v1224_v6 = vld [vmem:[#allocation10 + $0x348] sm:$0xff] }
 0x1ed   : > { %v1073_v43 = vmax.f32 %v1071_v32, %v1072_v35  ;;  %v1080_v44 = vmax.f32 %v1078_v33, %v1079_v36  ;;  %v1178_v28 = vld [vmem:[#allocation10 + $0x1d8] sm:$0xff]  ;;  %v1176_v32 = vld [vmem:[#allocation10 + $0x1c8] sm:$0xff] }
 0x1ee   : > { %v1057_v45 = vmax.f32 %v1055_v34, %v1056_v39  ;;  %v1064_v46 = vmax.f32 %v1062_v60, %v1063_v40  ;;  %v1210_v29 = vld [vmem:[#allocation10 + $0x2d8] sm:$0xff]  ;;  %v1208_v33 = vld [vmem:[#allocation10 + $0x2c8] sm:$0xff] }
 0x1ef   : > { %v1074_v47 = vrot.slane %v1073_v43, 1  ;;  %v1081_v48 = vrot.slane %v1080_v44, 1  ;;  %v1240_v34 = vld [vmem:[#allocation10 + $0x3c8] sm:$0xff]  ;;  %v1174_v39 = vld [vmem:[#allocation10 + $0x1b8] sm:$0xff] }
 0x1f0   : > { %v1058_v50 = vrot.slane %v1057_v45, 2  ;;  %v1065_v51 = vrot.slane %v1064_v46, 2  ;;  %v1206_v40 = vld [vmem:[#allocation10 + $0x2b8] sm:$0xff] }
 0x1f1   : > { %v1075_v55 = vmax.f32 %v1073_v43, %v1074_v47  ;;  %v1082_v56 = vmax.f32 %v1080_v44, %v1081_v48  ;;  %v1172_v43 = vld [vmem:[#allocation10 + $0x1a8] sm:$0xff]  ;;  %v1170_v47 = vld [vmem:[#allocation10 + $0x198] sm:$0xff] }
 0x1f2   : > { %v1059_v57 = vmax.f32 %v1057_v45, %v1058_v50  ;;  %v1066_v58 = vmax.f32 %v1064_v46, %v1065_v51  ;;  %v1204_v44 = vld [vmem:[#allocation10 + $0x2a8] sm:$0xff]  ;;  %v1138_v46 = vld [vmem:[#allocation10 + $0x98] sm:$0xff] }
 0x1f3   : > { %v1096_v2 = vrot.slane %v1075_v55, 2  ;;  %v1097_v3 = vrot.slane %v1082_v56, 1  ;;  %v1236_v45 = vld [vmem:[#allocation10 + $0x3a8] sm:$0xff]  ;;  %v1202_v48 = vld [vmem:[#allocation10 + $0x298] sm:$0xff] }
 0x1f4   : > { %v1060_v61 = vrot.slane %v1059_v57, 1  ;;  %v1067_v62 = vrot.slane %v1066_v58, 1  ;;  %v1136_v50 = vld [vmem:[#allocation10 + $0x88] sm:$0xff]  ;;  %v1166_v55 = vld [vmem:[#allocation10 + $0x178] sm:$0xff] }
 0x1f5   : > { %v1107_v10 = vsel %vm1106_vm10, %v1096_v2, %v1097_v3  ;;  %v1168_v51 = vld [vmem:[#allocation10 + $0x188] sm:$0xff]  ;;  %v1198_v56 = vld [vmem:[#allocation10 + $0x278] sm:$0xff] }
 0x1f6   : > { %v1061_v4 = vmax.f32 %v1059_v57, %v1060_v61  ;;  %v1068_v5 = vmax.f32 %v1066_v58, %v1067_v62  ;;  %v1230_v57 = vld [vmem:[#allocation10 + $0x378] sm:$0xff]  ;;  %v1132_v58 = vld [vmem:[#allocation10 + $0x68] sm:$0xff] }
 0x1f7   : > { %v1196_v61 = vld [vmem:[#allocation10 + $0x268] sm:$0xff]  ;;  %v1162_v0 = vld [vmem:[#allocation10 + $0x158] sm:$0xff] }
 0x1f8   : > { %v1094_v7 = vrot.slane %v1061_v4, 4  ;;  %v1095_v8 = vrot.slane %v1068_v5, 3  ;;  %v1228_v62 = vld [vmem:[#allocation10 + $0x368] sm:$0xff]  ;;  %v1194_v1 = vld [vmem:[#allocation10 + $0x258] sm:$0xff] }
 0x1f9   : > { %v1226_v2 = vld [vmem:[#allocation10 + $0x358] sm:$0xff]  ;;  %v1128_v3 = vld [vmem:[#allocation10 + $0x48] sm:$0xff] }
 0x1fa   : > { %v1105_v11 = vsel %vm1104_vm11, %v1094_v7, %v1095_v8  ;;  %v1160_v4 = vld [vmem:[#allocation10 + $0x148] sm:$0xff]  ;;  %v1126_v7 = vld [vmem:[#allocation10 + $0x38] sm:$0xff] }
 0x1fb   : > { %v1109_v13 = vsel %vm1108_vm12, %v1105_v11, %v1107_v10  ;;  %v1192_v5 = vld [vmem:[#allocation10 + $0x248] sm:$0xff]  ;;  %v1158_v8 = vld [vmem:[#allocation10 + $0x138] sm:$0xff] }
 0x1fc   : > { %v2646_v14 = vsel %vm1110_vm13, %v1103_v12, %v1109_v13  ;;  %v1190_v9 = vld [vmem:[#allocation10 + $0x238] sm:$0xff]  ;;  %v1124_v11 = vld [vmem:[#allocation10 + $0x28] sm:$0xff] }
 0x1fd   : > { %v1377_v15 = vperm.slane %v2646_v14, 0  ;;  %v1378_v16 = vperm.slane %v2646_v14, 1  ;;  %v1379_v17 = vperm.slane %v2646_v14, 2  ;;  %v1380_v18 = vperm.slane %v2646_v14, 3  ;;  %v1222_v10 = vld [vmem:[#allocation10 + $0x338] sm:$0xff]  ;;  %v1156_v12 = vld [vmem:[#allocation10 + $0x128] sm:$0xff] }
 0x1fe   : > { %v1381_v60 = vperm.slane %v2646_v14, 4  ;;  %v1382_v35 = vperm.slane %v2646_v14, 5  ;;  %v1383_v36 = vperm.slane %v2646_v14, 6  ;;  %v1384_v37 = vperm.slane %v2646_v14, 7  ;;  %v1188_v13 = vld [vmem:[#allocation10 + $0x228] sm:$0xff] }
 0x1ff   : > { %1414 = vmatmul.f32.vlgmr.msra.gmra.mxu2 %v1377_v15  ;;  %1434 = vmatmul.f32.vlgmr.msra.gmra.mxu3 %v1378_v16  ;;  %v1730_v14 = vld [vmem:[#allocation11 + $0x28] sm:$0xff] }
 0x200   : > { %1454 = vmatmul.f32.vlgmr.msra.gmra.mxu0 %v1379_v17  ;;  %1474 = vmatmul.f32.vlgmr.msra.gmra.mxu1 %v1380_v18 }
 0x201   : > { %1558 = vmatpush.msra.mxu2 %v1150_v19  ;;  %1578 = vmatpush.msra.mxu3 %v1182_v20  ;;  %v1220_v19 = vld [vmem:[#allocation10 + $0x328] sm:$0xff]  ;;  %v1122_v20 = vld [vmem:[#allocation10 + $0x18] sm:$0xff] }
 0x202   : > { %1598 = vmatpush.msra.mxu0 %v1214_v21  ;;  %1618 = vmatpush.msra.mxu1 %v1246_v22  ;;  %v1154_v21 = vld [vmem:[#allocation10 + $0x118] sm:$0xff] }
 0x203   : > { %1559 = vmatpush.msra.mxu2 %v1148_v23  ;;  %1579 = vmatpush.msra.mxu3 %v1180_v24  ;;  %v1186_v22 = vld [vmem:[#allocation10 + $0x218] sm:$0xff]  ;;  %v1120_v24 = vld [vmem:[#allocation10 + $0x8] sm:$0xff] }
 0x204   : > { %1599 = vmatpush.msra.mxu0 %v1212_v25  ;;  %1619 = vmatpush.msra.mxu1 %v1244_v26  ;;  %v1218_v23 = vld [vmem:[#allocation10 + $0x318] sm:$0xff]  ;;  %v1152_v25 = vld [vmem:[#allocation10 + $0x108] sm:$0xff] }
 0x205   : > { %1560 = vmatpush.msra.mxu2 %v1146_v27  ;;  %1580 = vmatpush.msra.mxu3 %v1178_v28  ;;  %v1184_v26 = vld [vmem:[#allocation10 + $0x208] sm:$0xff]  ;;  %v1278_v28 = vld [vmem:[#allocation10 + $0x4f8] sm:$0xff] }
 0x206   : > { %1600 = vmatpush.msra.mxu0 %v1210_v29  ;;  %1620 = vmatpush.msra.mxu1 %v1242_v30  ;;  %v1216_v27 = vld [vmem:[#allocation10 + $0x308] sm:$0xff]  ;;  %v1310_v29 = vld [vmem:[#allocation10 + $0x5f8] sm:$0xff] }
 0x207   : > { %1561 = vmatpush.msra.mxu2 %v1144_v31  ;;  %1581 = vmatpush.msra.mxu3 %v1176_v32  ;;  %v1342_v30 = vld [vmem:[#allocation10 + $0x6f8] sm:$0xff]  ;;  %v1276_v32 = vld [vmem:[#allocation10 + $0x4e8] sm:$0xff] }
 0x208   : > { %1601 = vmatpush.msra.mxu0 %v1208_v33  ;;  %1621 = vmatpush.msra.mxu1 %v1240_v34  ;;  %v1374_v31 = vld [vmem:[#allocation10 + $0x7f8] sm:$0xff]  ;;  %v1308_v33 = vld [vmem:[#allocation10 + $0x5e8] sm:$0xff] }
 0x209   : > { %1494 = vmatmul.f32.vlgmr.msrb.gmra.mxu2 %v1381_v60  ;;  %1514 = vmatmul.f32.vlgmr.msrb.gmra.mxu3 %v1382_v35  ;;  %v1340_v34 = vld [vmem:[#allocation10 + $0x6e8] sm:$0xff] }
 0x20a   : > { %1534 = vmatmul.f32.vlgmr.msrb.gmra.mxu0 %v1383_v36  ;;  %1554 = vmatmul.f32.vlgmr.msrb.gmra.mxu1 %v1384_v37 }
 0x20b   : > { %1562 = vmatpush.msra.mxu2 %v1142_v38  ;;  %1582 = vmatpush.msra.mxu3 %v1174_v39  ;;  %v1372_v38 = vld [vmem:[#allocation10 + $0x7e8] sm:$0xff]  ;;  %v1306_v39 = vld [vmem:[#allocation10 + $0x5d8] sm:$0xff] }
 0x20c   : > { %1602 = vmatpush.msra.mxu0 %v1206_v40  ;;  %1622 = vmatpush.msra.mxu1 %v1238_v41  ;;  %v1370_v40 = vld [vmem:[#allocation10 + $0x7d8] sm:$0xff]  ;;  %v1304_v41 = vld [vmem:[#allocation10 + $0x5c8] sm:$0xff] }
 0x20d   : > { %1563 = vmatpush.msra.mxu2 %v1140_v42  ;;  %1583 = vmatpush.msra.mxu3 %v1172_v43  ;;  %v1368_v42 = vld [vmem:[#allocation10 + $0x7c8] sm:$0xff]  ;;  %v1270_v43 = vld [vmem:[#allocation10 + $0x4b8] sm:$0xff] }
 0x20e   : > { %1603 = vmatpush.msra.mxu0 %v1204_v44  ;;  %1623 = vmatpush.msra.mxu1 %v1236_v45  ;;  %v1302_v44 = vld [vmem:[#allocation10 + $0x5b8] sm:$0xff] }
 0x20f   : > { %1564 = vmatpush.msra.mxu2 %v1138_v46  ;;  %1584 = vmatpush.msra.mxu3 %v1170_v47  ;;  %v1334_v45 = vld [vmem:[#allocation10 + $0x6b8] sm:$0xff]  ;;  %v1268_v47 = vld [vmem:[#allocation10 + $0x4a8] sm:$0xff] }
 0x210   : > { %1604 = vmatpush.msra.mxu0 %v1202_v48  ;;  %1624 = vmatpush.msra.mxu1 %v1234_v49  ;;  %v1366_v46 = vld [vmem:[#allocation10 + $0x7b8] sm:$0xff]  ;;  %v1300_v48 = vld [vmem:[#allocation10 + $0x5a8] sm:$0xff] }
 0x211   : > { %1565 = vmatpush.msra.mxu2 %v1136_v50  ;;  %1585 = vmatpush.msra.mxu3 %v1168_v51  ;;  %v1332_v49 = vld [vmem:[#allocation10 + $0x6a8] sm:$0xff]  ;;  %v1266_v51 = vld [vmem:[#allocation10 + $0x498] sm:$0xff] }
 0x212   : > { %1605 = vmatpush.msra.mxu0 %v1200_v52  ;;  %1625 = vmatpush.msra.mxu1 %v1232_v53  ;;  %v1364_v50 = vld [vmem:[#allocation10 + $0x7a8] sm:$0xff]  ;;  %v1298_v52 = vld [vmem:[#allocation10 + $0x598] sm:$0xff] }
 0x213   : > { %1566 = vmatpush.msra.mxu2 %v1134_v54  ;;  %1586 = vmatpush.msra.mxu3 %v1166_v55  ;;  %v1330_v53 = vld [vmem:[#allocation10 + $0x698] sm:$0xff]  ;;  %v1264_v55 = vld [vmem:[#allocation10 + $0x488] sm:$0xff] }
 0x214   : > { %1606 = vmatpush.msra.mxu0 %v1198_v56  ;;  %1626 = vmatpush.msra.mxu1 %v1230_v57  ;;  %v1362_v54 = vld [vmem:[#allocation10 + $0x798] sm:$0xff]  ;;  %v1296_v56 = vld [vmem:[#allocation10 + $0x588] sm:$0xff] }
 0x215   : > { %1567 = vmatpush.msra.mxu2 %v1132_v58  ;;  %1587 = vmatpush.msra.mxu3 %v1164_v59  ;;  %v1328_v57 = vld [vmem:[#allocation10 + $0x688] sm:$0xff]  ;;  %v1262_v59 = vld [vmem:[#allocation10 + $0x478] sm:$0xff] }
 0x216   : > { %1607 = vmatpush.msra.mxu0 %v1196_v61  ;;  %1627 = vmatpush.msra.mxu1 %v1228_v62  ;;  %v1360_v58 = vld [vmem:[#allocation10 + $0x788] sm:$0xff]  ;;  %v1294_v61 = vld [vmem:[#allocation10 + $0x578] sm:$0xff] }
 0x217   : > { %1568 = vmatpush.msra.mxu2 %v1130_v63  ;;  %1588 = vmatpush.msra.mxu3 %v1162_v0  ;;  %v1326_v62 = vld [vmem:[#allocation10 + $0x678] sm:$0xff]  ;;  %v1260_v0 = vld [vmem:[#allocation10 + $0x468] sm:$0xff] }
 0x218   : > { %1608 = vmatpush.msra.mxu0 %v1194_v1  ;;  %1628 = vmatpush.msra.mxu1 %v1226_v2  ;;  %v1358_v63 = vld [vmem:[#allocation10 + $0x778] sm:$0xff]  ;;  %v1292_v1 = vld [vmem:[#allocation10 + $0x568] sm:$0xff] }
 0x219   : > { %1569 = vmatpush.msra.mxu2 %v1128_v3  ;;  %1589 = vmatpush.msra.mxu3 %v1160_v4  ;;  %v1324_v2 = vld [vmem:[#allocation10 + $0x668] sm:$0xff]  ;;  %v1258_v4 = vld [vmem:[#allocation10 + $0x458] sm:$0xff] }
 0x21a   : > { %1609 = vmatpush.msra.mxu0 %v1192_v5  ;;  %1629 = vmatpush.msra.mxu1 %v1224_v6  ;;  %v1356_v3 = vld [vmem:[#allocation10 + $0x768] sm:$0xff]  ;;  %v1290_v5 = vld [vmem:[#allocation10 + $0x558] sm:$0xff] }
 0x21b   : > { %1570 = vmatpush.msra.mxu2 %v1126_v7  ;;  %1590 = vmatpush.msra.mxu3 %v1158_v8  ;;  %v1322_v6 = vld [vmem:[#allocation10 + $0x658] sm:$0xff]  ;;  %v1256_v8 = vld [vmem:[#allocation10 + $0x448] sm:$0xff] }
 0x21c   : > { %1610 = vmatpush.msra.mxu0 %v1190_v9  ;;  %1630 = vmatpush.msra.mxu1 %v1222_v10  ;;  %v1354_v7 = vld [vmem:[#allocation10 + $0x758] sm:$0xff]  ;;  %v1288_v9 = vld [vmem:[#allocation10 + $0x548] sm:$0xff] }
 0x21d   : > { %1571 = vmatpush.msra.mxu2 %v1124_v11  ;;  %1591 = vmatpush.msra.mxu3 %v1156_v12  ;;  %v1320_v10 = vld [vmem:[#allocation10 + $0x648] sm:$0xff]  ;;  %v1254_v12 = vld [vmem:[#allocation10 + $0x438] sm:$0xff] }
 0x21e   : > { %1611 = vmatpush.msra.mxu0 %v1188_v13  ;;  %1631 = vmatpush.msra.mxu1 %v1220_v19  ;;  %v1352_v11 = vld [vmem:[#allocation10 + $0x748] sm:$0xff]  ;;  %v1286_v13 = vld [vmem:[#allocation10 + $0x538] sm:$0xff] }
 0x21f   : > { %1572 = vmatpush.msra.mxu2 %v1122_v20  ;;  %1592 = vmatpush.msra.mxu3 %v1154_v21  ;;  %v1318_v19 = vld [vmem:[#allocation10 + $0x638] sm:$0xff]  ;;  %v1252_v21 = vld [vmem:[#allocation10 + $0x428] sm:$0xff] }
 0x220   : > { %1612 = vmatpush.msra.mxu0 %v1186_v22  ;;  %1632 = vmatpush.msra.mxu1 %v1218_v23  ;;  %v1350_v20 = vld [vmem:[#allocation10 + $0x738] sm:$0xff]  ;;  %v1284_v22 = vld [vmem:[#allocation10 + $0x528] sm:$0xff] }
 0x221   : > { %1573 = vmatpush.msra.mxu2 %v1120_v24  ;;  %1593 = vmatpush.msra.mxu3 %v1152_v25  ;;  %v1316_v23 = vld [vmem:[#allocation10 + $0x628] sm:$0xff]  ;;  %v1250_v25 = vld [vmem:[#allocation10 + $0x418] sm:$0xff] }
 0x222   : > { %1613 = vmatpush.msra.mxu0 %v1184_v26  ;;  %1633 = vmatpush.msra.mxu1 %v1216_v27  ;;  %v1348_v24 = vld [vmem:[#allocation10 + $0x728] sm:$0xff]  ;;  %v1282_v26 = vld [vmem:[#allocation10 + $0x518] sm:$0xff] }
 0x223   : > { %1574 = vmatmul.f32.vlgmr.msra.gmra.mxu2 %v1377_v15  ;;  %1594 = vmatmul.f32.vlgmr.msra.gmra.mxu3 %v1378_v16  ;;  %v1274_v15 = vld [vmem:[#allocation10 + $0x4d8] sm:$0xff] }
 0x224   : > { %1614 = vmatmul.f32.vlgmr.msra.gmra.mxu0 %v1379_v17  ;;  %1634 = vmatmul.f32.vlgmr.msra.gmra.mxu1 %v1380_v18  ;;  %v1338_v16 = vld [vmem:[#allocation10 + $0x6d8] sm:$0xff]  ;;  %v1272_v17 = vld [vmem:[#allocation10 + $0x4c8] sm:$0xff] }
 0x225   : > { %1638 = vmatpush.msrb.mxu2 %v1278_v28  ;;  %1658 = vmatpush.msrb.mxu3 %v1310_v29  ;;  %v1336_v18 = vld [vmem:[#allocation10 + $0x6c8] sm:$0xff]  ;;  %v1314_v27 = vld [vmem:[#allocation10 + $0x618] sm:$0xff] }
 0x226   : > { %1678 = vmatpush.msrb.mxu0 %v1342_v30  ;;  %1698 = vmatpush.msrb.mxu1 %v1374_v31  ;;  %v1346_v28 = vld [vmem:[#allocation10 + $0x718] sm:$0xff]  ;;  %v1248_v29 = vld [vmem:[#allocation10 + $0x408] sm:$0xff] }
 0x227   : > { %1639 = vmatpush.msrb.mxu2 %v1276_v32  ;;  %1659 = vmatpush.msrb.mxu3 %v1308_v33  ;;  %v1280_v30 = vld [vmem:[#allocation10 + $0x508] sm:$0xff]  ;;  %v1740_v33 = vld [vmem:[#allocation11 + $0x78] sm:$0xff] }
 0x228   : > { %1679 = vmatpush.msrb.mxu0 %v1340_v34  ;;  %1699 = vmatpush.msrb.mxu1 %v1372_v38  ;;  %v1312_v31 = vld [vmem:[#allocation10 + $0x608] sm:$0xff]  ;;  %v1739_v34 = vld [vmem:[#allocation11 + $0x70] sm:$0xff] }
 0x229   : > { %1640 = vmatpush.msrb.mxu2 %v1274_v15  ;;  %1660 = vmatpush.msrb.mxu3 %v1306_v39  ;;  %v1344_v32 = vld [vmem:[#allocation10 + $0x708] sm:$0xff]  ;;  %v1737_v15 = vld [vmem:[#allocation11 + $0x60] sm:$0xff]  ;;  %v1736_v39 = vld [vmem:[#allocation11 + $0x58] sm:$0xff] }
 0x22a   : > { %1680 = vmatpush.msrb.mxu0 %v1338_v16  ;;  %1700 = vmatpush.msrb.mxu1 %v1370_v40  ;;  %v1738_v38 = vld [vmem:[#allocation11 + $0x68] sm:$0xff]  ;;  %v1735_v16 = vld [vmem:[#allocation11 + $0x50] sm:$0xff]  ;;  %v1733_v40 = vld [vmem:[#allocation11 + $0x40] sm:$0xff] }
 0x22b   : > { %1641 = vmatpush.msrb.mxu2 %v1272_v17  ;;  %1661 = vmatpush.msrb.mxu3 %v1304_v41  ;;  %v1728_v17 = vld [vmem:[#allocation11 + $0x18] sm:$0xff]  ;;  %v1727_v41 = vld [vmem:[#allocation11 + $0x10] sm:$0xff] }
 0x22c   : > { %1681 = vmatpush.msrb.mxu0 %v1336_v18  ;;  %1701 = vmatpush.msrb.mxu1 %v1368_v42  ;;  %v1726_v18 = vld [vmem:[#allocation11 + $0x8] sm:$0xff]  ;;  %v1725_v42 = vld [vmem:[#allocation11] sm:$0xff] }
 0x22d   : > { %1642 = vmatpush.msrb.mxu2 %v1270_v43  ;;  %1662 = vmatpush.msrb.mxu3 %v1302_v44  ;;  %v1375_v43 = vld [vmem:[%s2746_s9] sm:$0x3] }
 0x22e   : > { %1682 = vmatpush.msrb.mxu0 %v1334_v45  ;;  %1702 = vmatpush.msrb.mxu1 %v1366_v46  ;;  %v1394_v44 = vperm.slane %v1375_v43, 0 }
 0x22f   : > { %1643 = vmatpush.msrb.mxu2 %v1268_v47  ;;  %1663 = vmatpush.msrb.mxu3 %v1300_v48 }
 0x230   : > { %1683 = vmatpush.msrb.mxu0 %v1332_v49  ;;  %1703 = vmatpush.msrb.mxu1 %v1364_v50 }
 0x231   : > { %1644 = vmatpush.msrb.mxu2 %v1266_v51  ;;  %1664 = vmatpush.msrb.mxu3 %v1298_v52 }
 0x232   : > { %1684 = vmatpush.msrb.mxu0 %v1330_v53  ;;  %1704 = vmatpush.msrb.mxu1 %v1362_v54  ;;  %v1756_v53 = vld [vmem:[#allocation11 + $0xf8] sm:$0xff]  ;;  %v1755_v54 = vld [vmem:[#allocation11 + $0xf0] sm:$0xff] }
 0x233   : > { %1645 = vmatpush.msrb.mxu2 %v1264_v55  ;;  %1665 = vmatpush.msrb.mxu3 %v1296_v56 }
 0x234   : > { %1685 = vmatpush.msrb.mxu0 %v1328_v57  ;;  %1705 = vmatpush.msrb.mxu1 %v1360_v58  ;;  %v1754_v57 = vld [vmem:[#allocation11 + $0xe8] sm:$0xff] }
 0x235   : > { %1646 = vmatpush.msrb.mxu2 %v1262_v59  ;;  %1666 = vmatpush.msrb.mxu3 %v1294_v61  ;;  %v1753_v61 = vld [vmem:[#allocation11 + $0xe0] sm:$0xff] }
 0x236   : > { %1686 = vmatpush.msrb.mxu0 %v1326_v62  ;;  %1706 = vmatpush.msrb.mxu1 %v1358_v63 }
 0x237   : > { %1647 = vmatpush.msrb.mxu2 %v1260_v0  ;;  %1667 = vmatpush.msrb.mxu3 %v1292_v1  ;;  %v1752_v0 = vld [vmem:[#allocation11 + $0xd8] sm:$0xff] }
 0x238   : > { %1687 = vmatpush.msrb.mxu0 %v1324_v2  ;;  %1707 = vmatpush.msrb.mxu1 %v1356_v3  ;;  %v1720_v2 = vstv %s2691_s22 }
 0x239   : > { %1648 = vmatpush.msrb.mxu2 %v1258_v4  ;;  %1668 = vmatpush.msrb.mxu3 %v1290_v5  ;;  %v1751_v4 = vld [vmem:[#allocation11 + $0xd0] sm:$0xff] }
 0x23a   : > { %1688 = vmatpush.msrb.mxu0 %v1322_v6  ;;  %1708 = vmatpush.msrb.mxu1 %v1354_v7  ;;  %v1750_v6 = vld [vmem:[#allocation11 + $0xc8] sm:$0xff] }
 0x23b   : > { %1649 = vmatpush.msrb.mxu2 %v1256_v8  ;;  %1669 = vmatpush.msrb.mxu3 %v1288_v9  ;;  %v1749_v8 = vld [vmem:[#allocation11 + $0xc0] sm:$0xff]  ;;  %v1748_v9 = vld [vmem:[#allocation11 + $0xb8] sm:$0xff] }
 0x23c   : > { %1689 = vmatpush.msrb.mxu0 %v1320_v10  ;;  %1709 = vmatpush.msrb.mxu1 %v1352_v11  ;;  %v1747_v10 = vld [vmem:[#allocation11 + $0xb0] sm:$0xff]  ;;  %v1746_v11 = vld [vmem:[#allocation11 + $0xa8] sm:$0xff] }
 0x23d   : > { %1650 = vmatpush.msrb.mxu2 %v1254_v12  ;;  %1670 = vmatpush.msrb.mxu3 %v1286_v13  ;;  %v1745_v12 = vld [vmem:[#allocation11 + $0xa0] sm:$0xff]  ;;  %v1744_v13 = vld [vmem:[#allocation11 + $0x98] sm:$0xff] }
 0x23e   : > { %1690 = vmatpush.msrb.mxu0 %v1318_v19  ;;  %1710 = vmatpush.msrb.mxu1 %v1350_v20  ;;  %v1743_v19 = vld [vmem:[#allocation11 + $0x90] sm:$0xff]  ;;  %v1742_v20 = vld [vmem:[#allocation11 + $0x88] sm:$0xff] }
 0x23f   : > { %1651 = vmatpush.msrb.mxu2 %v1252_v21  ;;  %1671 = vmatpush.msrb.mxu3 %v1284_v22  ;;  %v1741_v21 = vld [vmem:[#allocation11 + $0x80] sm:$0xff]  ;;  %v1395_v22 = vperm.slane %v1375_v43, 1  ;;  %v1809_v43 = vld [vmem:[#allocation13 + $0x38] sm:$0xff] }
 0x240   : > { %1691 = vmatpush.msrb.mxu0 %v1316_v23  ;;  %1711 = vmatpush.msrb.mxu1 %v1348_v24 }
 0x241   : > { %1652 = vmatpush.msrb.mxu2 %v1250_v25  ;;  %1672 = vmatpush.msrb.mxu3 %v1282_v26 }
 0x242   : > { %1692 = vmatpush.msrb.mxu0 %v1314_v27  ;;  %1712 = vmatpush.msrb.mxu1 %v1346_v28 }
 0x243   : > { %1653 = vmatpush.msrb.mxu2 %v1248_v29  ;;  %1673 = vmatpush.msrb.mxu3 %v1280_v30 }
 0x244   : > { %1693 = vmatpush.msrb.mxu0 %v1312_v31  ;;  %1713 = vmatpush.msrb.mxu1 %v1344_v32 }
 0x245   : > { %1654 = vmatmul.f32.vlgmr.msrb.gmra.mxu2 %v1381_v60  ;;  %1674 = vmatmul.f32.vlgmr.msrb.gmra.mxu3 %v1382_v35  ;;  %v1734_v60 = vld [vmem:[#allocation11 + $0x48] sm:$0xff]  ;;  %v1732_v35 = vld [vmem:[#allocation11 + $0x38] sm:$0xff] }
 0x246   : > { %1694 = vmatmul.f32.vlgmr.msrb.gmra.mxu0 %v1383_v36  ;;  %1714 = vmatmul.f32.vlgmr.msrb.gmra.mxu1 %v1384_v37  ;;  %v1731_v36 = vld [vmem:[#allocation11 + $0x30] sm:$0xff]  ;;  %v1729_v37 = vld [vmem:[#allocation11 + $0x20] sm:$0xff] }
 0x247   : > { %1758 = vmatpush.msra.mxu2 %v1740_v33  ;;  %1778 = vmatpush.msra.mxu3 %v1756_v53 }
 0x249   : > { %1759 = vmatpush.msra.mxu2 %v1739_v34  ;;  %1779 = vmatpush.msra.mxu3 %v1755_v54 }
 0x24b   : > { %1760 = vmatpush.msra.mxu2 %v1738_v38  ;;  %1780 = vmatpush.msra.mxu3 %v1754_v57 }
 0x24d   : > { %1761 = vmatpush.msra.mxu2 %v1737_v15  ;;  %1781 = vmatpush.msra.mxu3 %v1753_v61 }
 0x24f   : > { %1762 = vmatpush.msra.mxu2 %v1736_v39  ;;  %1782 = vmatpush.msra.mxu3 %v1752_v0 }
 0x251   : > { %1763 = vmatpush.msra.mxu2 %v1735_v16  ;;  %1783 = vmatpush.msra.mxu3 %v1751_v4 }
 0x253   : > { %1764 = vmatpush.msra.mxu2 %v1734_v60  ;;  %1784 = vmatpush.msra.mxu3 %v1750_v6 }
 0x255   : > { %1765 = vmatpush.msra.mxu2 %v1733_v40  ;;  %1785 = vmatpush.msra.mxu3 %v1749_v8 }
 0x257   : > { %1766 = vmatpush.msra.mxu2 %v1732_v35  ;;  %1786 = vmatpush.msra.mxu3 %v1748_v9  ;;  %v1817_v35 = vld [vmem:[#allocation13 + $0x78] sm:$0xff] }
 0x258   : > { %1819 = vmatpush.msra.mxu0 %v1817_v35 }
 0x259   : > { %1767 = vmatpush.msra.mxu2 %v1731_v36  ;;  %1787 = vmatpush.msra.mxu3 %v1747_v10  ;;  %v1816_v36 = vld [vmem:[#allocation13 + $0x70] sm:$0xff] }
 0x25a   : > { %1820 = vmatpush.msra.mxu0 %v1816_v36 }
 0x25b   : > { %1768 = vmatpush.msra.mxu2 %v1730_v14  ;;  %1788 = vmatpush.msra.mxu3 %v1746_v11  ;;  %v1815_v14 = vld [vmem:[#allocation13 + $0x68] sm:$0xff] }
 0x25c   : > { %1821 = vmatpush.msra.mxu0 %v1815_v14 }
 0x25d   : > { %1769 = vmatpush.msra.mxu2 %v1729_v37  ;;  %1789 = vmatpush.msra.mxu3 %v1745_v12  ;;  %v1814_v37 = vld [vmem:[#allocation13 + $0x60] sm:$0xff] }
 0x25e   : > { %1822 = vmatpush.msra.mxu0 %v1814_v37 }
 0x25f   : > { %1770 = vmatpush.msra.mxu2 %v1728_v17  ;;  %1790 = vmatpush.msra.mxu3 %v1744_v13  ;;  %v1813_v17 = vld [vmem:[#allocation13 + $0x58] sm:$0xff] }
 0x260   : > { %1823 = vmatpush.msra.mxu0 %v1813_v17 }
 0x261   : > { %1771 = vmatpush.msra.mxu2 %v1727_v41  ;;  %1791 = vmatpush.msra.mxu3 %v1743_v19  ;;  %v1812_v41 = vld [vmem:[#allocation13 + $0x50] sm:$0xff] }
 0x262   : > { %1824 = vmatpush.msra.mxu0 %v1812_v41 }
 0x263   : > { %1772 = vmatpush.msra.mxu2 %v1726_v18  ;;  %1792 = vmatpush.msra.mxu3 %v1742_v20  ;;  %v1811_v18 = vld [vmem:[#allocation13 + $0x48] sm:$0xff] }
 0x264   : > { %1825 = vmatpush.msra.mxu0 %v1811_v18 }
 0x265   : > { %1773 = vmatpush.msra.mxu2 %v1725_v42  ;;  %1793 = vmatpush.msra.mxu3 %v1741_v21  ;;  %v1810_v42 = vld [vmem:[#allocation13 + $0x40] sm:$0xff] }
 0x266   : > { %1826 = vmatpush.msra.mxu0 %v1810_v42 }
 0x268   : > { %1827 = vmatpush.msra.mxu0 %v1809_v43 }
 0x27d   : > { %v1455_v49 = vpop.f32.mrf.mxu0  ;;  %v1475_v51 = vpop.f32.mrf.mxu1 }
 0x282   : > { %v1415_v45 = vpop.f32.mrf.mxu2  ;;  %v1435_v47 = vpop.f32.mrf.mxu3 }
 0x283   : > { %v1416_v46 = vadd.f32 %v1415_v45, %v1394_v44  ;;  %v1808_v44 = vld [vmem:[#allocation13 + $0x30] sm:$0xff]  ;;  %v1807_v45 = vld [vmem:[#allocation13 + $0x28] sm:$0xff] }
 0x284   : > { %1828 = vmatpush.msra.mxu0 %v1808_v44 }
 0x285   : > { %v1436_v48 = vadd.f32 %v1435_v47, %v1416_v46  ;;  %v1806_v46 = vld [vmem:[#allocation13 + $0x20] sm:$0xff]  ;;  %v1805_v47 = vld [vmem:[#allocation13 + $0x18] sm:$0xff] }
 0x286   : > { %1829 = vmatpush.msra.mxu0 %v1807_v45 }
 0x287   : > { %v1456_v50 = vadd.f32 %v1455_v49, %v1436_v48  ;;  %v1535_v62 = vpop.f32.mrf.mxu0  ;;  %v1555_v1 = vpop.f32.mrf.mxu1  ;;  %v1804_v48 = vld [vmem:[#allocation13 + $0x10] sm:$0xff]  ;;  %v1803_v49 = vld [vmem:[#allocation13 + $0x8] sm:$0xff] }
 0x288   : > { %1830 = vmatpush.msra.mxu0 %v1806_v46 }
 0x289   : > { %v1476_v52 = vadd.f32 %v1475_v51, %v1456_v50  ;;  %v1802_v50 = vld [vmem:[#allocation13] sm:$0xff] }
 0x28a   : > { %1831 = vmatpush.msra.mxu0 %v1805_v47  ;;  %v1757_v51 = vld [vmem:[%s2748_s11] sm:$0x1] }
 0x28c   : > { %v1495_v55 = vpop.f32.mrf.mxu2  ;;  %v1515_v58 = vpop.f32.mrf.mxu3  ;;  %1832 = vmatpush.msra.mxu0 %v1804_v48 }
 0x28d   : > { %v1496_v56 = vadd.f32 %v1495_v55, %v1476_v52  ;;  %v1799_v55 = vstv %s2005_s25  ;;  %s2323_s25 = scalar_lea.hbm %s2783_s27, 2 }
 0x28e   : > { %1833 = vmatpush.msra.mxu0 %v1803_v49  ;;  %p2325_p6 = scmp.lt.s32.totalorder %s2323_s25, %s2319_s24 }
 0x28f   : > { %v1516_v59 = vadd.f32 %v1515_v58, %v1496_v56 }
 0x290   : > { %1834 = vmatpush.msra.mxu0 %v1802_v50  ;;  %p2326_p7 = por %p2325_p6, %p2324_p5 }
 0x291   : > { %v1536_v63 = vadd.f32 %v1535_v62, %v1516_v59  ;;  %v1818_v59 = vld [vmem:[%s2785_s6] sm:$0x1] }
 0x292   : > { %p2327_p9 = pnand %p2326_p7, %p2322_p3 }
 0x293   : > { %v1556_v3 = vadd.f32 %v1555_v1, %v1536_v63 }
 0x295   : > { %vm1718_vm14 = vcmp.gt.f32.partialorder %v1556_v3, 0.0  ;;  %v1721_v5 = vmul.f32 %v1720_v2, %v1556_v3 }
 0x297   : > { %v1723_v7 = vsel %vm1718_vm14, %v1556_v3, %v1721_v5 }
 0x298   : > { %1774 = vmatmul.f32.vlgmr.msra.gmra.mxu2 %v1723_v7 }
 0x2a1   : > { %v1615_v27 = vpop.f32.mrf.mxu0  ;;  %v1635_v29 = vpop.f32.mrf.mxu1 }
 0x2a6   : > { %v1575_v23 = vpop.f32.mrf.mxu2  ;;  %v1595_v25 = vpop.f32.mrf.mxu3 }
 0x2a7   : > { %v1576_v24 = vadd.f32 %v1575_v23, %v1395_v22 }
 0x2a9   : > { %v1596_v26 = vadd.f32 %v1595_v25, %v1576_v24 }
 0x2ab   : > { %v1616_v28 = vadd.f32 %v1615_v27, %v1596_v26 }
 0x2ad   : > { %v1636_v30 = vadd.f32 %v1635_v29, %v1616_v28 }
 0x2c3   : > { %v1695_v38 = vpop.f32.mrf.mxu0  ;;  %v1715_v39 = vpop.f32.mrf.mxu1 }
 0x2c8   : > { %v1655_v31 = vpop.f32.mrf.mxu2  ;;  %v1675_v33 = vpop.f32.mrf.mxu3 }
 0x2c9   : > { %v1656_v32 = vadd.f32 %v1655_v31, %v1636_v30 }
 0x2cb   : > { %v1676_v34 = vadd.f32 %v1675_v33, %v1656_v32 }
 0x2cd   : > { %v1696_v15 = vadd.f32 %v1695_v38, %v1676_v34 }
 0x2cf   : > { %v1716_v16 = vadd.f32 %v1715_v39, %v1696_v15 }
 0x2d1   : > { %vm1719_vm15 = vcmp.gt.f32.partialorder %v1716_v16, 0.0  ;;  %v1722_v60 = vmul.f32 %v1720_v2, %v1716_v16 }
 0x2d3   : > { %v1724_v40 = vsel %vm1719_vm15, %v1716_v16, %v1722_v60 }
 0x2d4   : > { %1794 = vmatmul.f32.vlgmr.msra.gmra.mxu3 %v1724_v40 }
 0x31b   : > { %v1775_v52 = vpop.f32.mrf.mxu2 }
 0x31c   : > { %v1776_v53 = vadd.f32 %v1775_v52, %v1757_v51 }
 0x357   : > { %v1795_v54 = vpop.f32.mrf.mxu3 }
 0x358   : > { %v1796_v56 = vadd.f32 %v1795_v54, %v1776_v53 }
 0x35a   : > { %vm1798_vm0 = vcmp.gt.f32.partialorder %v1796_v56, 0.0  ;;  %v1800_v57 = vmul.f32 %v1799_v55, %v1796_v56 }
 0x35c   : > { %v1801_v58 = vsel %vm1798_vm0, %v1796_v56, %v1800_v57 }
 0x35d   : > { %1835 = vmatmul.f32.vlgmr.msra.gmra.mxu0 %v1801_v58 }
 0x3da   : > { %v1836_v61 = vpop.f32.mrf.mxu0 }
 0x3db   : > { %v1837_v62 = vadd.f32 %v1836_v61, %v1818_v59 }
 0x3dd   : > { %1839 = vst [vmem:[%s579_s17] sm:$0x1] %v1837_v62 }
 0x3de   : > { %2330 = shalt.err (!%p2327_p9)
}
 0x3df   : > { %2038 = dma.vmem_to_hbm [thread:$0]  (%p2526_p4), %s1852_s13, 16, %s1854_s23, %s1841_s14  }
 0x3e0 PF: > { %s2786_s29 = sld [smem:[#allocation23_spill]] }
 0x3e1   : > { %s2787_s18 = sld [smem:[#allocation20_spill]] }
 0x3e6   : > { %p2075_p10 = scmp.ge.s32.totalorder %s2786_s29, 2 }
 0x3e7   : > { %s1865_s19 = sand.u32 1, %s2787_s18  }
 0x3e8   : > { %p2060_p11 = pnand %p2075_p10, %p2533_p8  ;;  %s1866_s21 = scalar_lea.sflag [#allocation5], %s1865_s19 }
 0x3ea   : > { %p2061_p12 = pneg %p2060_p11 }
 0x3ec   : > { %2372 = dma.done.wait (%p2061_p12), %s1866_s21, 16  }
 0x3ed   : > { %2374 = vsyncadd (%p2061_p12), %s1866_s21, 4294967280  ;;  %s31_s18 = sadd.s32 1, %s2786_s29   ;;  %s2789_s20 = sld [smem:[#allocation21_spill]] }
 0x3ee   : > { %p28_p13 = scmp.ge.s32.totalorder %s31_s18, 4   ;;  %s2790_s15 = sld [smem:[#allocation27_spill]] }
 0x3ef   : > { %s2791_s16 = sld [smem:[#allocation22_spill]]  ;;  %s2793_s29 = smov %s2381_s30 }
 0x3f0   : > { %s2792_s17 = sld [smem:[#allocation24_spill]]  ;;  %30 = sbr.rel (!%p28_p13) target bundleno = 14 (0xe), region = 145 }
 0x3f3   : > { %s2794_s30 = smov %s2789_s20 }
 0x3f5   :  { %1871 = vsyncpa [#allocation4], 1 }
 0x3f6   :  { %1873 = vsyncpa [#allocation4 + $0x1], 1 }
 0x3f7   :  { %1874 = vsyncpa [#allocation9], 1 }
 0x3f8   :  { %1875 = vsyncpa [#allocation12], 1 }
 0x3f9   :  { %1876 = vsyncpa [#allocation5], 1 }
 0x3fa   :  { %1878 = vsyncpa [#allocation5 + $0x1], 1 }
 0x3fb   :  { %1879 = vsyncpa [#allocation6], 1 }
 0x3fc   :  { %1881 = vsyncpa [#allocation6 + $0x1], 1 }

</bundles_post_ra>
